<compile_context>
chip_gen: v7x
topology: tpu7x:2x2x1
jax: 0.10.0
libtpu: 0.0.40
codegen_flags: <defaults>
</compile_context>

<pallas_src>
import functools

import jax
import jax.numpy as jnp
from jax.experimental import pallas as pl
from jax.experimental.pallas import tpu as pltpu


def _round_up(x, m):
    return (x + m - 1) // m * m


# --------------------------------------------------------------------------
# Pass 1: conv taps (shift + MXU dot) + streamed InstanceNorm statistics.
# --------------------------------------------------------------------------
def _conv_stats_kernel(x_ref, w_ref, m_ref, y_ref, st_ref, sum_sc, ssq_sc,
                       *, tap_offsets, chunk_width, inv_count, eps):
    """One (sample n, flat-output tile t) grid step.

    x_ref : [Cin, Q_in]    bf16  flattened zero-padded input (whole sample,
                                 VMEM-resident across the t axis)
    w_ref : [k^3, Cm, Cin] bf16  conv taps (tap-major)
    m_ref : [1, TQ]        f32   1.0 where the flat position is a kept output
    y_ref : [Cm, TQ]       f32   raw (un-normalized) conv output tile
    st_ref: [Cm, 2]        f32   (mean, inv_std) per (n, channel), last t only
    sum_sc/ssq_sc: [Cm,1]  f32   streamed per-channel sum / sum-of-squares
    """
    t = pl.program_id(1)

    @pl.when(t == 0)
    def _():
        sum_sc[...] = jnp.zeros_like(sum_sc)
        ssq_sc[...] = jnp.zeros_like(ssq_sc)

    cm, tq = y_ref.shape
    q0 = pl.multiple_of(t * tq, 128)
    # One 128-aligned dynamic-start load of tile + halo; every per-tap view is
    # then a cheap *static* slice of this value (no unaligned dynamic slices).
    chunk = x_ref[:, pl.ds(q0, chunk_width)]          # [Cin, TQ + halo] bf16

    acc = jnp.zeros((cm, tq), jnp.float32)
    for tap, off in enumerate(tap_offsets):           # k^3 static taps
        acc = acc + jnp.dot(w_ref[tap], chunk[:, off:off + tq],
                            preferred_element_type=jnp.float32)
    y_ref[...] = acc

    # Streamed InstanceNorm statistics (mask excludes padded/garbage lanes);
    # done while `acc` is still live, hides under the next tile's DMA.
    masked = acc * m_ref[...]
    sum_sc[...] += jnp.sum(masked, axis=-1, keepdims=True)
    ssq_sc[...] += jnp.sum(masked * acc, axis=-1, keepdims=True)

    @pl.when(t == pl.num_programs(1) - 1)
    def _():
        mean = sum_sc[...] * inv_count
        var = jnp.maximum(ssq_sc[...] * inv_count - mean * mean, 0.0)
        st_ref[:, 0:1] = mean
        st_ref[:, 1:2] = jax.lax.rsqrt(var + eps)


# --------------------------------------------------------------------------
# Pass 2: per-tile normalize + ReLU (no full-P VMEM residency; in place).
# --------------------------------------------------------------------------
def _norm_relu_kernel(st_ref, y_ref, o_ref):
    mean = st_ref[:, 0:1]
    inv_std = st_ref[:, 1:2]
    o_ref[...] = jnp.maximum((y_ref[...] - mean) * inv_std, 0.0)


# --------------------------------------------------------------------------
# Host-side helpers.
# --------------------------------------------------------------------------
def _vmem_cap_bytes():
    try:
        return int(pltpu.get_tpu_info().vmem_capacity_bytes)
    except Exception:
        return 64 * 1024 * 1024          # v7x per-TensorCore VMEM (smallest)


def _vmem_limit(need_bytes, cap_bytes):
    headroom = 16 * 1024 * 1024          # Mosaic internal scratch / spills
    limit = max(32 * 1024 * 1024, 2 * need_bytes)
    limit = min(limit, cap_bytes - headroom)
    return int(max(limit, need_bytes + (4 << 20)))


def _pick_q_tile(q_total, cm, vmem_cap):
    """128-aligned flat-output tile derived from the VMEM budget (>=512 floor
    unless the whole problem is small)."""
    if q_total <= 4096:                  # small problem: single tile
        return int(_round_up(q_total, 128))
    # Bytes per output lane that scale with the tile (double-buffered blocks).
    per_lane = 2 * (cm * 4 + 4) + 2 * 2 * cm * 4
    budget = max(vmem_cap // 4, 4 * 1024 * 1024)
    tq = (budget // per_lane) // 128 * 128
    return int(min(max(tq, 512), 8192))


def conv_forward(x, weight, bias, *, stride, kernel_size, padding=1,
                 q_tile=None):
    """x: [N, Cin, D, H, W], weight: [Cm, Cin, k, k, k], bias: [Cm].
    Returns float32 [N, Cm, Do, Ho, Wo] = ReLU(InstanceNorm3d(Conv3d(x)))."""
    N, Cin, D, H, W = x.shape
    Cm = weight.shape[0]
    k, s, p = kernel_size, stride, padding
    Dp, Hp, Wp = D + 2 * p, H + 2 * p, W + 2 * p
    Do = (D + 2 * p - k) // s + 1
    Ho = (H + 2 * p - k) // s + 1
    Wo = (W + 2 * p - k) // s + 1
    P = Do * Ho * Wo                      # voxels InstanceNorm averages over
    Q = Dp * Hp * Wp                      # stride-1 conv positions computed
    k3 = k * k * k
    del bias                              # cancels exactly in affine=False IN

    cap = _vmem_cap_bytes()
    tq = q_tile if q_tile is not None else _pick_q_tile(Q, Cm, cap)
    assert tq % 128 == 0, tq
    Qc = _round_up(Q, tq)
    n_t = Qc // tq

    # Per-tap flat offsets into the padded volume (stride-1 shift conv).
    tap_offsets = tuple(kd * Hp * Wp + kh * Wp + kw
                        for kd in range(k)
                        for kh in range(k)
                        for kw in range(k))
    halo = _round_up(tap_offsets[-1], 128)
    chunk_width = tq + halo
    Q_in = Qc + halo

    # ---- wrapper glue: 1x input volume, NO im2col materialization ----------
    xp = jnp.pad(x, ((0, 0), (0, 0), (p, p), (p, p), (p, p)))
    xflat = xp.reshape(N, Cin, Q)
    xflat = jnp.pad(xflat, ((0, 0), (0, 0), (0, Q_in - Q))).astype(jnp.bfloat16)

    # weights -> [k^3, Cm, Cin], tap-major (same ordering as tap_offsets).
    w_taps = jnp.transpose(weight, (2, 3, 4, 0, 1)).reshape(k3, Cm, Cin)
    w_taps = w_taps.astype(jnp.bfloat16)

    # Mask of kept conv outputs in the flat padded volume (handles the padded
    # border and the stride-s subsampling).  Number of ones == P.
    dd = (jnp.arange(Dp) % s == 0) & (jnp.arange(Dp) <= (Do - 1) * s)
    hh = (jnp.arange(Hp) % s == 0) & (jnp.arange(Hp) <= (Ho - 1) * s)
    ww = (jnp.arange(Wp) % s == 0) & (jnp.arange(Wp) <= (Wo - 1) * s)
    mask = dd[:, None, None] & hh[None, :, None] & ww[None, None, :]
    mask = jnp.pad(mask.reshape(1, Q), ((0, 0), (0, Qc - Q))).astype(jnp.float32)

    # ---- pass 1: conv taps + streamed InstanceNorm statistics --------------
    need1 = (2 * Cin * Q_in * 2                       # x slab (bf16, 2 bufs)
             + 2 * k3 * _round_up(Cm, 16) * 128 * 2   # weights (layout padded)
             + 2 * tq * 4                             # mask
             + 2 * _round_up(Cm, 8) * tq * 4          # y tile out
             + Cin * chunk_width * 4 + Cm * tq * 4)   # in-kernel values
    kernel1 = functools.partial(_conv_stats_kernel, tap_offsets=tap_offsets,
                                chunk_width=chunk_width, inv_count=1.0 / P,
                                eps=1e-5)
    y_raw, stats = pl.pallas_call(
        kernel1,
        out_shape=(jax.ShapeDtypeStruct((N, Cm, Qc), jnp.float32),
                   jax.ShapeDtypeStruct((N, Cm, 2), jnp.float32)),
        grid_spec=pltpu.PrefetchScalarGridSpec(
            num_scalar_prefetch=0,
            grid=(N, n_t),
            in_specs=[
                pl.BlockSpec((None, Cin, Q_in), lambda n, t: (n, 0, 0)),
                pl.BlockSpec((k3, Cm, Cin), lambda n, t: (0, 0, 0)),
                pl.BlockSpec((1, tq), lambda n, t: (0, t)),
            ],
            out_specs=[
                pl.BlockSpec((None, Cm, tq), lambda n, t: (n, 0, t)),
                pl.BlockSpec((None, Cm, 2), lambda n, t: (n, 0, 0)),
            ],
            scratch_shapes=[pltpu.VMEM((Cm, 1), jnp.float32),
                            pltpu.VMEM((Cm, 1), jnp.float32)]),
        compiler_params=pltpu.CompilerParams(
            dimension_semantics=("parallel", "arbitrary"),
            vmem_limit_bytes=_vmem_limit(need1, cap)),
    )(xflat, w_taps, mask)

    # ---- pass 2: normalize + ReLU, per tile, in place -----------------------
    need2 = 2 * 2 * _round_up(Cm, 8) * tq * 4 + 2 * _round_up(Cm, 8) * 128 * 4
    y_norm = pl.pallas_call(
        _norm_relu_kernel,
        out_shape=jax.ShapeDtypeStruct((N, Cm, Qc), jnp.float32),
        grid_spec=pltpu.PrefetchScalarGridSpec(
            num_scalar_prefetch=0,
            grid=(N, n_t),
            in_specs=[
                pl.BlockSpec((None, Cm, 2), lambda n, t: (n, 0, 0)),
                pl.BlockSpec((None, Cm, tq), lambda n, t: (n, 0, t)),
            ],
            out_specs=pl.BlockSpec((None, Cm, tq), lambda n, t: (n, 0, t))),
        compiler_params=pltpu.CompilerParams(
            dimension_semantics=("parallel", "parallel"),
            vmem_limit_bytes=_vmem_limit(need2, cap)),
        input_output_aliases={1: 0},      # overwrite the raw-conv buffer
    )(stats, y_raw)

    # ---- extraction glue: keep only the real conv outputs (pure layout) -----
    y5 = y_norm[:, :, :Q].reshape(N, Cm, Dp, Hp, Wp)
    return y5[:, :,
              0:(Do - 1) * s + 1:s,
              0:(Ho - 1) * s + 1:s,
              0:(Wo - 1) * s + 1:s]


def _reference(x, weight, bias, *, stride, kernel_size, padding=1,
               compute_dtype=jnp.bfloat16):
    s = (stride,) * 3
    pad = ((padding, padding),) * 3
    y = jax.lax.conv_general_dilated(
        x.astype(compute_dtype), weight.astype(compute_dtype),
        window_strides=s, padding=pad,
        dimension_numbers=("NCDHW", "OIDHW", "NCDHW"),
        preferred_element_type=jnp.float32)
    y = y + bias.reshape(1, -1, 1, 1, 1).astype(jnp.float32)
    mean = jnp.mean(y, axis=(2, 3, 4), keepdims=True)
    var = jnp.mean(jnp.square(y - mean), axis=(2, 3, 4), keepdims=True)
    return jnp.maximum((y - mean) * jax.lax.rsqrt(var + 1e-5), 0.0)


if __name__ == "__main__":
    N, Cin, Cout = 2, 4, 8
    D = H = W = 8
    kernel_size, stride = 3, 1

    key = jax.random.PRNGKey(0)
    kx, kw, kb = jax.random.split(key, 3)
    x = jax.random.normal(kx, (N, Cin, D, H, W), dtype=jnp.float32)
    fan_in = Cin * kernel_size ** 3
    weight = jax.random.normal(
        kw, (Cout, Cin, kernel_size, kernel_size, kernel_size),
        dtype=jnp.float32) / jnp.sqrt(fan_in)
    bias = 0.1 * jax.random.normal(kb, (Cout,), dtype=jnp.float32)

    # Default (VMEM-budget-derived tile; single tile at this small shape).
    fwd = jax.jit(functools.partial(conv_forward, stride=stride,
                                    kernel_size=kernel_size))
    out = jax.block_until_ready(fwd(x, weight, bias))

    # Explicitly exercise the multi-tile path (streamed stats across tiles).
    fwd_tiled = jax.jit(functools.partial(conv_forward, stride=stride,
                                          kernel_size=kernel_size, q_tile=128))
    out_tiled = jax.block_until_ready(fwd_tiled(x, weight, bias))

    ref_bf16 = _reference(x, weight, bias, stride=stride,
                          kernel_size=kernel_size)
    ref_f32 = _reference(x, weight, bias, stride=stride,
                         kernel_size=kernel_size, compute_dtype=jnp.float32)

    assert out.shape == ref_bf16.shape, (out.shape, ref_bf16.shape)
    assert jnp.allclose(out, ref_bf16, rtol=2e-3, atol=2e-3), float(
        jnp.max(jnp.abs(out - ref_bf16)))
    assert jnp.allclose(out_tiled, ref_bf16, rtol=2e-3, atol=2e-3), float(
        jnp.max(jnp.abs(out_tiled - ref_bf16)))
    # Sanity vs. full-f32 reference (looser: inputs were cast to bf16).
    assert jnp.allclose(out, ref_f32, rtol=5e-2, atol=5e-2), float(
        jnp.max(jnp.abs(out - ref_f32)))

    print("KERNEL_OK")
</pallas_src>

<mosaic_0001>
module attributes {stable_mosaic.version = 11 : i64} {
  func.func @_norm_relu_kernel(%arg0: i32, %arg1: i32, %arg2: memref<1x8x2xf32, #tpu.memory_space<vmem>>, %arg3: memref<1x8x1024xf32, #tpu.memory_space<vmem>>, %arg4: memref<1x8x1024xf32, #tpu.memory_space<vmem>>) attributes {dimension_semantics = [#tpu.dimension_semantics<parallel>, #tpu.dimension_semantics<parallel>], iteration_bounds = array<i64: 2, 1>, scalar_prefetch = 0 : i64, scratch_operands = 0 : i64, tpu.core_type = #tpu.core_type<tc>, window_params = [{transform_indices = @transform_0, window_bounds = array<i64: 1, 8, 2>}, {transform_indices = @transform_1, window_bounds = array<i64: 1, 8, 1024>}, {transform_indices = @transform_2, window_bounds = array<i64: 1, 8, 1024>}]} {
    %c0 = arith.constant 0 : index
    %c0_0 = arith.constant 0 : index
    %c0_1 = arith.constant 0 : index
    %0 = vector.load %arg2[%c0, %c0_0, %c0_1] : memref<1x8x2xf32, #tpu.memory_space<vmem>>, vector<1x8x1xf32>
    %1 = vector.shape_cast %0 : vector<1x8x1xf32> to vector<8x1xf32>
    %c0_2 = arith.constant 0 : index
    %c0_3 = arith.constant 0 : index
    %c1 = arith.constant 1 : index
    %2 = vector.load %arg2[%c0_2, %c0_3, %c1] : memref<1x8x2xf32, #tpu.memory_space<vmem>>, vector<1x8x1xf32>
    %3 = vector.shape_cast %2 : vector<1x8x1xf32> to vector<8x1xf32>
    %c0_4 = arith.constant 0 : index
    %c0_5 = arith.constant 0 : index
    %c0_6 = arith.constant 0 : index
    %4 = vector.load %arg3[%c0_4, %c0_5, %c0_6] : memref<1x8x1024xf32, #tpu.memory_space<vmem>>, vector<1x8x1024xf32>
    %5 = vector.shape_cast %4 : vector<1x8x1024xf32> to vector<8x1024xf32>
    %6 = vector.broadcast %1 : vector<8x1xf32> to vector<8x1024xf32>
    %7 = arith.subf %5, %6 : vector<8x1024xf32>
    %8 = vector.broadcast %3 : vector<8x1xf32> to vector<8x1024xf32>
    %9 = arith.mulf %7, %8 : vector<8x1024xf32>
    %cst = arith.constant 0.000000e+00 : f32
    %10 = vector.broadcast %cst : f32 to vector<8x1024xf32>
    %11 = arith.maximumf %9, %10 : vector<8x1024xf32>
    %c0_7 = arith.constant 0 : index
    %c0_8 = arith.constant 0 : index
    %c0_9 = arith.constant 0 : index
    %12 = vector.load %arg4[%c0_7, %c0_8, %c0_9] : memref<1x8x1024xf32, #tpu.memory_space<vmem>>, vector<1x8x1024xf32>
    %13 = vector.shape_cast %12 : vector<1x8x1024xf32> to vector<8x1024xf32>
    %14 = vector.shape_cast %11 : vector<8x1024xf32> to vector<1x8x1024xf32>
    tpu.vector_store %arg4[%c0_7, %c0_8, %c0_9], %14 {strides = array<i32>} : memref<1x8x1024xf32, #tpu.memory_space<vmem>>, vector<1x8x1024xf32>,
    return
  }
  func.func @transform_0(%arg0: i32, %arg1: i32) -> (i32, i32, i32) {
    %c0_i32 = arith.constant 0 : i32
    %c0_i32_0 = arith.constant 0 : i32
    %c0_i32_1 = arith.constant 0 : i32
    return %arg0, %c0_i32, %c0_i32_0 : i32, i32, i32
  }
  func.func @transform_1(%arg0: i32, %arg1: i32) -> (i32, i32, i32) {
    %c0_i32 = arith.constant 0 : i32
    %c0_i32_0 = arith.constant 0 : i32
    return %arg0, %c0_i32, %arg1 : i32, i32, i32
  }
  func.func @transform_2(%arg0: i32, %arg1: i32) -> (i32, i32, i32) {
    %c0_i32 = arith.constant 0 : i32
    %c0_i32_0 = arith.constant 0 : i32
    return %arg0, %c0_i32, %arg1 : i32, i32, i32
  }
}

module attributes {stable_mosaic.version = 11 : i64} {
  func.func @_conv_stats_kernel(%arg0: i32, %arg1: i32, %arg2: memref<1x4x1280xbf16, #tpu.memory_space<vmem>>, %arg3: memref<27x8x4xbf16, #tpu.memory_space<vmem>>, %arg4: memref<1x1024xf32, #tpu.memory_space<vmem>>, %arg5: memref<1x8x1024xf32, #tpu.memory_space<vmem>>, %arg6: memref<1x8x2xf32, #tpu.memory_space<vmem>>, %arg7: memref<8x1xf32, #tpu.memory_space<vmem>>, %arg8: memref<8x1xf32, #tpu.memory_space<vmem>>) attributes {dimension_semantics = [#tpu.dimension_semantics<parallel>, #tpu.dimension_semantics<arbitrary>], iteration_bounds = array<i64: 2, 1>, scalar_prefetch = 0 : i64, scratch_operands = 2 : i64, tpu.core_type = #tpu.core_type<tc>, window_params = [{transform_indices = @transform_0, window_bounds = array<i64: 1, 4, 1280>}, {pipeline_mode = #tpu.pipeline_mode<synchronous>, transform_indices = @transform_1, window_bounds = array<i64: 27, 8, 4>}, {transform_indices = @transform_2, window_bounds = array<i64: 1, 1024>}, {transform_indices = @transform_3, window_bounds = array<i64: 1, 8, 1024>}, {transform_indices = @transform_4, window_bounds = array<i64: 1, 8, 2>}]} {
    %c0_i32 = arith.constant 0 : i32
    %0 = arith.cmpi eq, %arg1, %c0_i32 : i32
    %1 = arith.extui %0 : i1 to i32
    %c0_i32_0 = arith.constant 0 : i32
    %2 = arith.cmpi ne, %1, %c0_i32_0 : i32
    scf.if %2 {
      %cst_101 = arith.constant 0.000000e+00 : f32
      %164 = vector.broadcast %cst_101 : f32 to vector<8x1xf32>
      %c0_102 = arith.constant 0 : index
      %c0_103 = arith.constant 0 : index
      %165 = vector.load %arg7[%c0_102, %c0_103] : memref<8x1xf32, #tpu.memory_space<vmem>>, vector<8x1xf32>
      tpu.vector_store %arg7[%c0_102, %c0_103], %164 {strides = array<i32>} : memref<8x1xf32, #tpu.memory_space<vmem>>, vector<8x1xf32>,
      %cst_104 = arith.constant 0.000000e+00 : f32
      %166 = vector.broadcast %cst_104 : f32 to vector<8x1xf32>
      %c0_105 = arith.constant 0 : index
      %c0_106 = arith.constant 0 : index
      %167 = vector.load %arg8[%c0_105, %c0_106] : memref<8x1xf32, #tpu.memory_space<vmem>>, vector<8x1xf32>
      tpu.vector_store %arg8[%c0_105, %c0_106], %166 {strides = array<i32>} : memref<8x1xf32, #tpu.memory_space<vmem>>, vector<8x1xf32>,
    } else {
    }
    %c1024_i32 = arith.constant 1024 : i32
    %3 = arith.muli %arg1, %c1024_i32 : i32
    %4 = tpu.assume_multiple %3, 128 : i32
    %c0 = arith.constant 0 : index
    %c0_1 = arith.constant 0 : index
    %5 = arith.index_cast %4 : i32 to index
    %6 = vector.load %arg2[%c0, %c0_1, %5] : memref<1x4x1280xbf16, #tpu.memory_space<vmem>>, vector<1x4x1280xbf16>
    %7 = vector.shape_cast %6 : vector<1x4x1280xbf16> to vector<4x1280xbf16>
    %cst = arith.constant 0.000000e+00 : f32
    %8 = vector.broadcast %cst : f32 to vector<8x1024xf32>
    %c0_2 = arith.constant 0 : index
    %c0_3 = arith.constant 0 : index
    %c0_4 = arith.constant 0 : index
    %9 = vector.load %arg3[%c0_2, %c0_3, %c0_4] : memref<27x8x4xbf16, #tpu.memory_space<vmem>>, vector<1x8x4xbf16>
    %10 = vector.shape_cast %9 : vector<1x8x4xbf16> to vector<8x4xbf16>
    %11 = vector.extract_strided_slice %7 {offsets = [0, 0], sizes = [4, 1024], strides = [1, 1]} : vector<4x1280xbf16> to vector<4x1024xbf16>
    %cst_5 = arith.constant dense<0.000000e+00> : vector<8x1024xf32>
    %12 = tpu.matmul %10, %11, %cst_5 {dimension_numbers = #tpu.dot_dimension_numbers<[1], [0], [0], [1], [0, 0, 1, 1], [], []>} : vector<8x4xbf16>, vector<4x1024xbf16>, vector<8x1024xf32> -> vector<8x1024xf32>
    %13 = arith.addf %8, %12 : vector<8x1024xf32>
    %c1 = arith.constant 1 : index
    %c0_6 = arith.constant 0 : index
    %c0_7 = arith.constant 0 : index
    %14 = vector.load %arg3[%c1, %c0_6, %c0_7] : memref<27x8x4xbf16, #tpu.memory_space<vmem>>, vector<1x8x4xbf16>
    %15 = vector.shape_cast %14 : vector<1x8x4xbf16> to vector<8x4xbf16>
    %16 = vector.extract_strided_slice %7 {offsets = [0, 1], sizes = [4, 1024], strides = [1, 1]} : vector<4x1280xbf16> to vector<4x1024xbf16>
    %cst_8 = arith.constant dense<0.000000e+00> : vector<8x1024xf32>
    %17 = tpu.matmul %15, %16, %cst_8 {dimension_numbers = #tpu.dot_dimension_numbers<[1], [0], [0], [1], [0, 0, 1, 1], [], []>} : vector<8x4xbf16>, vector<4x1024xbf16>, vector<8x1024xf32> -> vector<8x1024xf32>
    %18 = arith.addf %13, %17 : vector<8x1024xf32>
    %c2 = arith.constant 2 : index
    %c0_9 = arith.constant 0 : index
    %c0_10 = arith.constant 0 : index
    %19 = vector.load %arg3[%c2, %c0_9, %c0_10] : memref<27x8x4xbf16, #tpu.memory_space<vmem>>, vector<1x8x4xbf16>
    %20 = vector.shape_cast %19 : vector<1x8x4xbf16> to vector<8x4xbf16>
    %21 = vector.extract_strided_slice %7 {offsets = [0, 2], sizes = [4, 1024], strides = [1, 1]} : vector<4x1280xbf16> to vector<4x1024xbf16>
    %cst_11 = arith.constant dense<0.000000e+00> : vector<8x1024xf32>
    %22 = tpu.matmul %20, %21, %cst_11 {dimension_numbers = #tpu.dot_dimension_numbers<[1], [0], [0], [1], [0, 0, 1, 1], [], []>} : vector<8x4xbf16>, vector<4x1024xbf16>, vector<8x1024xf32> -> vector<8x1024xf32>
    %23 = arith.addf %18, %22 : vector<8x1024xf32>
    %c3 = arith.constant 3 : index
    %c0_12 = arith.constant 0 : index
    %c0_13 = arith.constant 0 : index
    %24 = vector.load %arg3[%c3, %c0_12, %c0_13] : memref<27x8x4xbf16, #tpu.memory_space<vmem>>, vector<1x8x4xbf16>
    %25 = vector.shape_cast %24 : vector<1x8x4xbf16> to vector<8x4xbf16>
    %26 = vector.extract_strided_slice %7 {offsets = [0, 10], sizes = [4, 1024], strides = [1, 1]} : vector<4x1280xbf16> to vector<4x1024xbf16>
    %cst_14 = arith.constant dense<0.000000e+00> : vector<8x1024xf32>
    %27 = tpu.matmul %25, %26, %cst_14 {dimension_numbers = #tpu.dot_dimension_numbers<[1], [0], [0], [1], [0, 0, 1, 1], [], []>} : vector<8x4xbf16>, vector<4x1024xbf16>, vector<8x1024xf32> -> vector<8x1024xf32>
    %28 = arith.addf %23, %27 : vector<8x1024xf32>
    %c4 = arith.constant 4 : index
    %c0_15 = arith.constant 0 : index
    %c0_16 = arith.constant 0 : index
    %29 = vector.load %arg3[%c4, %c0_15, %c0_16] : memref<27x8x4xbf16, #tpu.memory_space<vmem>>, vector<1x8x4xbf16>
    %30 = vector.shape_cast %29 : vector<1x8x4xbf16> to vector<8x4xbf16>
    %31 = vector.extract_strided_slice %7 {offsets = [0, 11], sizes = [4, 1024], strides = [1, 1]} : vector<4x1280xbf16> to vector<4x1024xbf16>
    %cst_17 = arith.constant dense<0.000000e+00> : vector<8x1024xf32>
    %32 = tpu.matmul %30, %31, %cst_17 {dimension_numbers = #tpu.dot_dimension_numbers<[1], [0], [0], [1], [0, 0, 1, 1], [], []>} : vector<8x4xbf16>, vector<4x1024xbf16>, vector<8x1024xf32> -> vector<8x1024xf32>
    %33 = arith.addf %28, %32 : vector<8x1024xf32>
    %c5 = arith.constant 5 : index
    %c0_18 = arith.constant 0 : index
    %c0_19 = arith.constant 0 : index
    %34 = vector.load %arg3[%c5, %c0_18, %c0_19] : memref<27x8x4xbf16, #tpu.memory_space<vmem>>, vector<1x8x4xbf16>
    %35 = vector.shape_cast %34 : vector<1x8x4xbf16> to vector<8x4xbf16>
    %36 = vector.extract_strided_slice %7 {offsets = [0, 12], sizes = [4, 1024], strides = [1, 1]} : vector<4x1280xbf16> to vector<4x1024xbf16>
    %cst_20 = arith.constant dense<0.000000e+00> : vector<8x1024xf32>
    %37 = tpu.matmul %35, %36, %cst_20 {dimension_numbers = #tpu.dot_dimension_numbers<[1], [0], [0], [1], [0, 0, 1, 1], [], []>} : vector<8x4xbf16>, vector<4x1024xbf16>, vector<8x1024xf32> -> vector<8x1024xf32>
    %38 = arith.addf %33, %37 : vector<8x1024xf32>
    %c6 = arith.constant 6 : index
    %c0_21 = arith.constant 0 : index
    %c0_22 = arith.constant 0 : index
    %39 = vector.load %arg3[%c6, %c0_21, %c0_22] : memref<27x8x4xbf16, #tpu.memory_space<vmem>>, vector<1x8x4xbf16>
    %40 = vector.shape_cast %39 : vector<1x8x4xbf16> to vector<8x4xbf16>
    %41 = vector.extract_strided_slice %7 {offsets = [0, 20], sizes = [4, 1024], strides = [1, 1]} : vector<4x1280xbf16> to vector<4x1024xbf16>
    %cst_23 = arith.constant dense<0.000000e+00> : vector<8x1024xf32>
    %42 = tpu.matmul %40, %41, %cst_23 {dimension_numbers = #tpu.dot_dimension_numbers<[1], [0], [0], [1], [0, 0, 1, 1], [], []>} : vector<8x4xbf16>, vector<4x1024xbf16>, vector<8x1024xf32> -> vector<8x1024xf32>
    %43 = arith.addf %38, %42 : vector<8x1024xf32>
    %c7 = arith.constant 7 : index
    %c0_24 = arith.constant 0 : index
    %c0_25 = arith.constant 0 : index
    %44 = vector.load %arg3[%c7, %c0_24, %c0_25] : memref<27x8x4xbf16, #tpu.memory_space<vmem>>, vector<1x8x4xbf16>
    %45 = vector.shape_cast %44 : vector<1x8x4xbf16> to vector<8x4xbf16>
    %46 = vector.extract_strided_slice %7 {offsets = [0, 21], sizes = [4, 1024], strides = [1, 1]} : vector<4x1280xbf16> to vector<4x1024xbf16>
    %cst_26 = arith.constant dense<0.000000e+00> : vector<8x1024xf32>
    %47 = tpu.matmul %45, %46, %cst_26 {dimension_numbers = #tpu.dot_dimension_numbers<[1], [0], [0], [1], [0, 0, 1, 1], [], []>} : vector<8x4xbf16>, vector<4x1024xbf16>, vector<8x1024xf32> -> vector<8x1024xf32>
    %48 = arith.addf %43, %47 : vector<8x1024xf32>
    %c8 = arith.constant 8 : index
    %c0_27 = arith.constant 0 : index
    %c0_28 = arith.constant 0 : index
    %49 = vector.load %arg3[%c8, %c0_27, %c0_28] : memref<27x8x4xbf16, #tpu.memory_space<vmem>>, vector<1x8x4xbf16>
    %50 = vector.shape_cast %49 : vector<1x8x4xbf16> to vector<8x4xbf16>
    %51 = vector.extract_strided_slice %7 {offsets = [0, 22], sizes = [4, 1024], strides = [1, 1]} : vector<4x1280xbf16> to vector<4x1024xbf16>
    %cst_29 = arith.constant dense<0.000000e+00> : vector<8x1024xf32>
    %52 = tpu.matmul %50, %51, %cst_29 {dimension_numbers = #tpu.dot_dimension_numbers<[1], [0], [0], [1], [0, 0, 1, 1], [], []>} : vector<8x4xbf16>, vector<4x1024xbf16>, vector<8x1024xf32> -> vector<8x1024xf32>
    %53 = arith.addf %48, %52 : vector<8x1024xf32>
    %c9 = arith.constant 9 : index
    %c0_30 = arith.constant 0 : index
    %c0_31 = arith.constant 0 : index
    %54 = vector.load %arg3[%c9, %c0_30, %c0_31] : memref<27x8x4xbf16, #tpu.memory_space<vmem>>, vector<1x8x4xbf16>
    %55 = vector.shape_cast %54 : vector<1x8x4xbf16> to vector<8x4xbf16>
    %56 = vector.extract_strided_slice %7 {offsets = [0, 100], sizes = [4, 1024], strides = [1, 1]} : vector<4x1280xbf16> to vector<4x1024xbf16>
    %cst_32 = arith.constant dense<0.000000e+00> : vector<8x1024xf32>
    %57 = tpu.matmul %55, %56, %cst_32 {dimension_numbers = #tpu.dot_dimension_numbers<[1], [0], [0], [1], [0, 0, 1, 1], [], []>} : vector<8x4xbf16>, vector<4x1024xbf16>, vector<8x1024xf32> -> vector<8x1024xf32>
    %58 = arith.addf %53, %57 : vector<8x1024xf32>
    %c10 = arith.constant 10 : index
    %c0_33 = arith.constant 0 : index
    %c0_34 = arith.constant 0 : index
    %59 = vector.load %arg3[%c10, %c0_33, %c0_34] : memref<27x8x4xbf16, #tpu.memory_space<vmem>>, vector<1x8x4xbf16>
    %60 = vector.shape_cast %59 : vector<1x8x4xbf16> to vector<8x4xbf16>
    %61 = vector.extract_strided_slice %7 {offsets = [0, 101], sizes = [4, 1024], strides = [1, 1]} : vector<4x1280xbf16> to vector<4x1024xbf16>
    %cst_35 = arith.constant dense<0.000000e+00> : vector<8x1024xf32>
    %62 = tpu.matmul %60, %61, %cst_35 {dimension_numbers = #tpu.dot_dimension_numbers<[1], [0], [0], [1], [0, 0, 1, 1], [], []>} : vector<8x4xbf16>, vector<4x1024xbf16>, vector<8x1024xf32> -> vector<8x1024xf32>
    %63 = arith.addf %58, %62 : vector<8x1024xf32>
    %c11 = arith.constant 11 : index
    %c0_36 = arith.constant 0 : index
    %c0_37 = arith.constant 0 : index
    %64 = vector.load %arg3[%c11, %c0_36, %c0_37] : memref<27x8x4xbf16, #tpu.memory_space<vmem>>, vector<1x8x4xbf16>
    %65 = vector.shape_cast %64 : vector<1x8x4xbf16> to vector<8x4xbf16>
    %66 = vector.extract_strided_slice %7 {offsets = [0, 102], sizes = [4, 1024], strides = [1, 1]} : vector<4x1280xbf16> to vector<4x1024xbf16>
    %cst_38 = arith.constant dense<0.000000e+00> : vector<8x1024xf32>
    %67 = tpu.matmul %65, %66, %cst_38 {dimension_numbers = #tpu.dot_dimension_numbers<[1], [0], [0], [1], [0, 0, 1, 1], [], []>} : vector<8x4xbf16>, vector<4x1024xbf16>, vector<8x1024xf32> -> vector<8x1024xf32>
    %68 = arith.addf %63, %67 : vector<8x1024xf32>
    %c12 = arith.constant 12 : index
    %c0_39 = arith.constant 0 : index
    %c0_40 = arith.constant 0 : index
    %69 = vector.load %arg3[%c12, %c0_39, %c0_40] : memref<27x8x4xbf16, #tpu.memory_space<vmem>>, vector<1x8x4xbf16>
    %70 = vector.shape_cast %69 : vector<1x8x4xbf16> to vector<8x4xbf16>
    %71 = vector.extract_strided_slice %7 {offsets = [0, 110], sizes = [4, 1024], strides = [1, 1]} : vector<4x1280xbf16> to vector<4x1024xbf16>
    %cst_41 = arith.constant dense<0.000000e+00> : vector<8x1024xf32>
    %72 = tpu.matmul %70, %71, %cst_41 {dimension_numbers = #tpu.dot_dimension_numbers<[1], [0], [0], [1], [0, 0, 1, 1], [], []>} : vector<8x4xbf16>, vector<4x1024xbf16>, vector<8x1024xf32> -> vector<8x1024xf32>
    %73 = arith.addf %68, %72 : vector<8x1024xf32>
    %c13 = arith.constant 13 : index
    %c0_42 = arith.constant 0 : index
    %c0_43 = arith.constant 0 : index
    %74 = vector.load %arg3[%c13, %c0_42, %c0_43] : memref<27x8x4xbf16, #tpu.memory_space<vmem>>, vector<1x8x4xbf16>
    %75 = vector.shape_cast %74 : vector<1x8x4xbf16> to vector<8x4xbf16>
    %76 = vector.extract_strided_slice %7 {offsets = [0, 111], sizes = [4, 1024], strides = [1, 1]} : vector<4x1280xbf16> to vector<4x1024xbf16>
    %cst_44 = arith.constant dense<0.000000e+00> : vector<8x1024xf32>
    %77 = tpu.matmul %75, %76, %cst_44 {dimension_numbers = #tpu.dot_dimension_numbers<[1], [0], [0], [1], [0, 0, 1, 1], [], []>} : vector<8x4xbf16>, vector<4x1024xbf16>, vector<8x1024xf32> -> vector<8x1024xf32>
    %78 = arith.addf %73, %77 : vector<8x1024xf32>
    %c14 = arith.constant 14 : index
    %c0_45 = arith.constant 0 : index
    %c0_46 = arith.constant 0 : index
    %79 = vector.load %arg3[%c14, %c0_45, %c0_46] : memref<27x8x4xbf16, #tpu.memory_space<vmem>>, vector<1x8x4xbf16>
    %80 = vector.shape_cast %79 : vector<1x8x4xbf16> to vector<8x4xbf16>
    %81 = vector.extract_strided_slice %7 {offsets = [0, 112], sizes = [4, 1024], strides = [1, 1]} : vector<4x1280xbf16> to vector<4x1024xbf16>
    %cst_47 = arith.constant dense<0.000000e+00> : vector<8x1024xf32>
    %82 = tpu.matmul %80, %81, %cst_47 {dimension_numbers = #tpu.dot_dimension_numbers<[1], [0], [0], [1], [0, 0, 1, 1], [], []>} : vector<8x4xbf16>, vector<4x1024xbf16>, vector<8x1024xf32> -> vector<8x1024xf32>
    %83 = arith.addf %78, %82 : vector<8x1024xf32>
    %c15 = arith.constant 15 : index
    %c0_48 = arith.constant 0 : index
    %c0_49 = arith.constant 0 : index
    %84 = vector.load %arg3[%c15, %c0_48, %c0_49] : memref<27x8x4xbf16, #tpu.memory_space<vmem>>, vector<1x8x4xbf16>
    %85 = vector.shape_cast %84 : vector<1x8x4xbf16> to vector<8x4xbf16>
    %86 = vector.extract_strided_slice %7 {offsets = [0, 120], sizes = [4, 1024], strides = [1, 1]} : vector<4x1280xbf16> to vector<4x1024xbf16>
    %cst_50 = arith.constant dense<0.000000e+00> : vector<8x1024xf32>
    %87 = tpu.matmul %85, %86, %cst_50 {dimension_numbers = #tpu.dot_dimension_numbers<[1], [0], [0], [1], [0, 0, 1, 1], [], []>} : vector<8x4xbf16>, vector<4x1024xbf16>, vector<8x1024xf32> -> vector<8x1024xf32>
    %88 = arith.addf %83, %87 : vector<8x1024xf32>
    %c16 = arith.constant 16 : index
    %c0_51 = arith.constant 0 : index
    %c0_52 = arith.constant 0 : index
    %89 = vector.load %arg3[%c16, %c0_51, %c0_52] : memref<27x8x4xbf16, #tpu.memory_space<vmem>>, vector<1x8x4xbf16>
    %90 = vector.shape_cast %89 : vector<1x8x4xbf16> to vector<8x4xbf16>
    %91 = vector.extract_strided_slice %7 {offsets = [0, 121], sizes = [4, 1024], strides = [1, 1]} : vector<4x1280xbf16> to vector<4x1024xbf16>
    %cst_53 = arith.constant dense<0.000000e+00> : vector<8x1024xf32>
    %92 = tpu.matmul %90, %91, %cst_53 {dimension_numbers = #tpu.dot_dimension_numbers<[1], [0], [0], [1], [0, 0, 1, 1], [], []>} : vector<8x4xbf16>, vector<4x1024xbf16>, vector<8x1024xf32> -> vector<8x1024xf32>
    %93 = arith.addf %88, %92 : vector<8x1024xf32>
    %c17 = arith.constant 17 : index
    %c0_54 = arith.constant 0 : index
    %c0_55 = arith.constant 0 : index
    %94 = vector.load %arg3[%c17, %c0_54, %c0_55] : memref<27x8x4xbf16, #tpu.memory_space<vmem>>, vector<1x8x4xbf16>
    %95 = vector.shape_cast %94 : vector<1x8x4xbf16> to vector<8x4xbf16>
    %96 = vector.extract_strided_slice %7 {offsets = [0, 122], sizes = [4, 1024], strides = [1, 1]} : vector<4x1280xbf16> to vector<4x1024xbf16>
    %cst_56 = arith.constant dense<0.000000e+00> : vector<8x1024xf32>
    %97 = tpu.matmul %95, %96, %cst_56 {dimension_numbers = #tpu.dot_dimension_numbers<[1], [0], [0], [1], [0, 0, 1, 1], [], []>} : vector<8x4xbf16>, vector<4x1024xbf16>, vector<8x1024xf32> -> vector<8x1024xf32>
    %98 = arith.addf %93, %97 : vector<8x1024xf32>
    %c18 = arith.constant 18 : index
    %c0_57 = arith.constant 0 : index
    %c0_58 = arith.constant 0 : index
    %99 = vector.load %arg3[%c18, %c0_57, %c0_58] : memref<27x8x4xbf16, #tpu.memory_space<vmem>>, vector<1x8x4xbf16>
    %100 = vector.shape_cast %99 : vector<1x8x4xbf16> to vector<8x4xbf16>
    %101 = vector.extract_strided_slice %7 {offsets = [0, 200], sizes = [4, 1024], strides = [1, 1]} : vector<4x1280xbf16> to vector<4x1024xbf16>
    %cst_59 = arith.constant dense<0.000000e+00> : vector<8x1024xf32>
    %102 = tpu.matmul %100, %101, %cst_59 {dimension_numbers = #tpu.dot_dimension_numbers<[1], [0], [0], [1], [0, 0, 1, 1], [], []>} : vector<8x4xbf16>, vector<4x1024xbf16>, vector<8x1024xf32> -> vector<8x1024xf32>
    %103 = arith.addf %98, %102 : vector<8x1024xf32>
    %c19 = arith.constant 19 : index
    %c0_60 = arith.constant 0 : index
    %c0_61 = arith.constant 0 : index
    %104 = vector.load %arg3[%c19, %c0_60, %c0_61] : memref<27x8x4xbf16, #tpu.memory_space<vmem>>, vector<1x8x4xbf16>
    %105 = vector.shape_cast %104 : vector<1x8x4xbf16> to vector<8x4xbf16>
    %106 = vector.extract_strided_slice %7 {offsets = [0, 201], sizes = [4, 1024], strides = [1, 1]} : vector<4x1280xbf16> to vector<4x1024xbf16>
    %cst_62 = arith.constant dense<0.000000e+00> : vector<8x1024xf32>
    %107 = tpu.matmul %105, %106, %cst_62 {dimension_numbers = #tpu.dot_dimension_numbers<[1], [0], [0], [1], [0, 0, 1, 1], [], []>} : vector<8x4xbf16>, vector<4x1024xbf16>, vector<8x1024xf32> -> vector<8x1024xf32>
    %108 = arith.addf %103, %107 : vector<8x1024xf32>
    %c20 = arith.constant 20 : index
    %c0_63 = arith.constant 0 : index
    %c0_64 = arith.constant 0 : index
    %109 = vector.load %arg3[%c20, %c0_63, %c0_64] : memref<27x8x4xbf16, #tpu.memory_space<vmem>>, vector<1x8x4xbf16>
    %110 = vector.shape_cast %109 : vector<1x8x4xbf16> to vector<8x4xbf16>
    %111 = vector.extract_strided_slice %7 {offsets = [0, 202], sizes = [4, 1024], strides = [1, 1]} : vector<4x1280xbf16> to vector<4x1024xbf16>
    %cst_65 = arith.constant dense<0.000000e+00> : vector<8x1024xf32>
    %112 = tpu.matmul %110, %111, %cst_65 {dimension_numbers = #tpu.dot_dimension_numbers<[1], [0], [0], [1], [0, 0, 1, 1], [], []>} : vector<8x4xbf16>, vector<4x1024xbf16>, vector<8x1024xf32> -> vector<8x1024xf32>
    %113 = arith.addf %108, %112 : vector<8x1024xf32>
    %c21 = arith.constant 21 : index
    %c0_66 = arith.constant 0 : index
    %c0_67 = arith.constant 0 : index
    %114 = vector.load %arg3[%c21, %c0_66, %c0_67] : memref<27x8x4xbf16, #tpu.memory_space<vmem>>, vector<1x8x4xbf16>
    %115 = vector.shape_cast %114 : vector<1x8x4xbf16> to vector<8x4xbf16>
    %116 = vector.extract_strided_slice %7 {offsets = [0, 210], sizes = [4, 1024], strides = [1, 1]} : vector<4x1280xbf16> to vector<4x1024xbf16>
    %cst_68 = arith.constant dense<0.000000e+00> : vector<8x1024xf32>
    %117 = tpu.matmul %115, %116, %cst_68 {dimension_numbers = #tpu.dot_dimension_numbers<[1], [0], [0], [1], [0, 0, 1, 1], [], []>} : vector<8x4xbf16>, vector<4x1024xbf16>, vector<8x1024xf32> -> vector<8x1024xf32>
    %118 = arith.addf %113, %117 : vector<8x1024xf32>
    %c22 = arith.constant 22 : index
    %c0_69 = arith.constant 0 : index
    %c0_70 = arith.constant 0 : index
    %119 = vector.load %arg3[%c22, %c0_69, %c0_70] : memref<27x8x4xbf16, #tpu.memory_space<vmem>>, vector<1x8x4xbf16>
    %120 = vector.shape_cast %119 : vector<1x8x4xbf16> to vector<8x4xbf16>
    %121 = vector.extract_strided_slice %7 {offsets = [0, 211], sizes = [4, 1024], strides = [1, 1]} : vector<4x1280xbf16> to vector<4x1024xbf16>
    %cst_71 = arith.constant dense<0.000000e+00> : vector<8x1024xf32>
    %122 = tpu.matmul %120, %121, %cst_71 {dimension_numbers = #tpu.dot_dimension_numbers<[1], [0], [0], [1], [0, 0, 1, 1], [], []>} : vector<8x4xbf16>, vector<4x1024xbf16>, vector<8x1024xf32> -> vector<8x1024xf32>
    %123 = arith.addf %118, %122 : vector<8x1024xf32>
    %c23 = arith.constant 23 : index
    %c0_72 = arith.constant 0 : index
    %c0_73 = arith.constant 0 : index
    %124 = vector.load %arg3[%c23, %c0_72, %c0_73] : memref<27x8x4xbf16, #tpu.memory_space<vmem>>, vector<1x8x4xbf16>
    %125 = vector.shape_cast %124 : vector<1x8x4xbf16> to vector<8x4xbf16>
    %126 = vector.extract_strided_slice %7 {offsets = [0, 212], sizes = [4, 1024], strides = [1, 1]} : vector<4x1280xbf16> to vector<4x1024xbf16>
    %cst_74 = arith.constant dense<0.000000e+00> : vector<8x1024xf32>
    %127 = tpu.matmul %125, %126, %cst_74 {dimension_numbers = #tpu.dot_dimension_numbers<[1], [0], [0], [1], [0, 0, 1, 1], [], []>} : vector<8x4xbf16>, vector<4x1024xbf16>, vector<8x1024xf32> -> vector<8x1024xf32>
    %128 = arith.addf %123, %127 : vector<8x1024xf32>
    %c24 = arith.constant 24 : index
    %c0_75 = arith.constant 0 : index
    %c0_76 = arith.constant 0 : index
    %129 = vector.load %arg3[%c24, %c0_75, %c0_76] : memref<27x8x4xbf16, #tpu.memory_space<vmem>>, vector<1x8x4xbf16>
    %130 = vector.shape_cast %129 : vector<1x8x4xbf16> to vector<8x4xbf16>
    %131 = vector.extract_strided_slice %7 {offsets = [0, 220], sizes = [4, 1024], strides = [1, 1]} : vector<4x1280xbf16> to vector<4x1024xbf16>
    %cst_77 = arith.constant dense<0.000000e+00> : vector<8x1024xf32>
    %132 = tpu.matmul %130, %131, %cst_77 {dimension_numbers = #tpu.dot_dimension_numbers<[1], [0], [0], [1], [0, 0, 1, 1], [], []>} : vector<8x4xbf16>, vector<4x1024xbf16>, vector<8x1024xf32> -> vector<8x1024xf32>
    %133 = arith.addf %128, %132 : vector<8x1024xf32>
    %c25 = arith.constant 25 : index
    %c0_78 = arith.constant 0 : index
    %c0_79 = arith.constant 0 : index
    %134 = vector.load %arg3[%c25, %c0_78, %c0_79] : memref<27x8x4xbf16, #tpu.memory_space<vmem>>, vector<1x8x4xbf16>
    %135 = vector.shape_cast %134 : vector<1x8x4xbf16> to vector<8x4xbf16>
    %136 = vector.extract_strided_slice %7 {offsets = [0, 221], sizes = [4, 1024], strides = [1, 1]} : vector<4x1280xbf16> to vector<4x1024xbf16>
    %cst_80 = arith.constant dense<0.000000e+00> : vector<8x1024xf32>
    %137 = tpu.matmul %135, %136, %cst_80 {dimension_numbers = #tpu.dot_dimension_numbers<[1], [0], [0], [1], [0, 0, 1, 1], [], []>} : vector<8x4xbf16>, vector<4x1024xbf16>, vector<8x1024xf32> -> vector<8x1024xf32>
    %138 = arith.addf %133, %137 : vector<8x1024xf32>
    %c26 = arith.constant 26 : index
    %c0_81 = arith.constant 0 : index
    %c0_82 = arith.constant 0 : index
    %139 = vector.load %arg3[%c26, %c0_81, %c0_82] : memref<27x8x4xbf16, #tpu.memory_space<vmem>>, vector<1x8x4xbf16>
    %140 = vector.shape_cast %139 : vector<1x8x4xbf16> to vector<8x4xbf16>
    %141 = vector.extract_strided_slice %7 {offsets = [0, 222], sizes = [4, 1024], strides = [1, 1]} : vector<4x1280xbf16> to vector<4x1024xbf16>
    %cst_83 = arith.constant dense<0.000000e+00> : vector<8x1024xf32>
    %142 = tpu.matmul %140, %141, %cst_83 {dimension_numbers = #tpu.dot_dimension_numbers<[1], [0], [0], [1], [0, 0, 1, 1], [], []>} : vector<8x4xbf16>, vector<4x1024xbf16>, vector<8x1024xf32> -> vector<8x1024xf32>
    %143 = arith.addf %138, %142 : vector<8x1024xf32>
    %c0_84 = arith.constant 0 : index
    %c0_85 = arith.constant 0 : index
    %c0_86 = arith.constant 0 : index
    %144 = vector.load %arg5[%c0_84, %c0_85, %c0_86] : memref<1x8x1024xf32, #tpu.memory_space<vmem>>, vector<1x8x1024xf32>
    %145 = vector.shape_cast %144 : vector<1x8x1024xf32> to vector<8x1024xf32>
    %146 = vector.shape_cast %143 : vector<8x1024xf32> to vector<1x8x1024xf32>
    tpu.vector_store %arg5[%c0_84, %c0_85, %c0_86], %146 {strides = array<i32>} : memref<1x8x1024xf32, #tpu.memory_space<vmem>>, vector<1x8x1024xf32>,
    %c0_87 = arith.constant 0 : index
    %c0_88 = arith.constant 0 : index
    %147 = vector.load %arg4[%c0_87, %c0_88] : memref<1x1024xf32, #tpu.memory_space<vmem>>, vector<1x1024xf32>
    %148 = vector.broadcast %147 : vector<1x1024xf32> to vector<8x1024xf32>
    %149 = arith.mulf %143, %148 : vector<8x1024xf32>
    %c0_89 = arith.constant 0 : index
    %c0_90 = arith.constant 0 : index
    %150 = vector.load %arg7[%c0_89, %c0_90] : memref<8x1xf32, #tpu.memory_space<vmem>>, vector<8x1xf32>
    %cst_91 = arith.constant dense<0.000000e+00> : vector<8xf32>
    %151 = vector.multi_reduction <add>, %149, %cst_91 [1] : vector<8x1024xf32> to vector<8xf32>
    %152 = vector.shape_cast %151 : vector<8xf32> to vector<8x1xf32>
    %153 = arith.addf %150, %152 : vector<8x1xf32>
    %c0_92 = arith.constant 0 : index
    %c0_93 = arith.constant 0 : index
    %154 = vector.load %arg7[%c0_92, %c0_93] : memref<8x1xf32, #tpu.memory_space<vmem>>, vector<8x1xf32>
    tpu.vector_store %arg7[%c0_92, %c0_93], %153 {strides = array<i32>} : memref<8x1xf32, #tpu.memory_space<vmem>>, vector<8x1xf32>,
    %c0_94 = arith.constant 0 : index
    %c0_95 = arith.constant 0 : index
    %155 = vector.load %arg8[%c0_94, %c0_95] : memref<8x1xf32, #tpu.memory_space<vmem>>, vector<8x1xf32>
    %156 = arith.mulf %149, %143 : vector<8x1024xf32>
    %cst_96 = arith.constant dense<0.000000e+00> : vector<8xf32>
    %157 = vector.multi_reduction <add>, %156, %cst_96 [1] : vector<8x1024xf32> to vector<8xf32>
    %158 = vector.shape_cast %157 : vector<8xf32> to vector<8x1xf32>
    %159 = arith.addf %155, %158 : vector<8x1xf32>
    %c0_97 = arith.constant 0 : index
    %c0_98 = arith.constant 0 : index
    %160 = vector.load %arg8[%c0_97, %c0_98] : memref<8x1xf32, #tpu.memory_space<vmem>>, vector<8x1xf32>
    tpu.vector_store %arg8[%c0_97, %c0_98], %159 {strides = array<i32>} : memref<8x1xf32, #tpu.memory_space<vmem>>, vector<8x1xf32>,
    %c0_i32_99 = arith.constant 0 : i32
    %161 = arith.cmpi eq, %arg1, %c0_i32_99 : i32
    %162 = arith.extui %161 : i1 to i32
    %c0_i32_100 = arith.constant 0 : i32
    %163 = arith.cmpi ne, %162, %c0_i32_100 : i32
    scf.if %163 {
      %c0_101 = arith.constant 0 : index
      %c0_102 = arith.constant 0 : index
      %164 = vector.load %arg7[%c0_101, %c0_102] : memref<8x1xf32, #tpu.memory_space<vmem>>, vector<8x1xf32>
      %cst_103 = arith.constant 0.001953125 : f32
      %165 = vector.broadcast %cst_103 : f32 to vector<8x1xf32>
      %166 = arith.mulf %164, %165 : vector<8x1xf32>
      %c0_104 = arith.constant 0 : index
      %c0_105 = arith.constant 0 : index
      %167 = vector.load %arg8[%c0_104, %c0_105] : memref<8x1xf32, #tpu.memory_space<vmem>>, vector<8x1xf32>
      %cst_106 = arith.constant 0.001953125 : f32
      %168 = vector.broadcast %cst_106 : f32 to vector<8x1xf32>
      %169 = arith.mulf %167, %168 : vector<8x1xf32>
      %170 = arith.mulf %166, %166 : vector<8x1xf32>
      %171 = arith.subf %169, %170 : vector<8x1xf32>
      %cst_107 = arith.constant 0.000000e+00 : f32
      %172 = vector.broadcast %cst_107 : f32 to vector<8x1xf32>
      %173 = arith.maximumf %171, %172 : vector<8x1xf32>
      %c0_108 = arith.constant 0 : index
      %c0_109 = arith.constant 0 : index
      %c0_110 = arith.constant 0 : index
      %174 = vector.load %arg6[%c0_108, %c0_109, %c0_110] : memref<1x8x2xf32, #tpu.memory_space<vmem>>, vector<1x8x1xf32>
      %175 = vector.shape_cast %174 : vector<1x8x1xf32> to vector<8x1xf32>
      %176 = vector.shape_cast %166 : vector<8x1xf32> to vector<1x8x1xf32>
      tpu.vector_store %arg6[%c0_108, %c0_109, %c0_110], %176 {strides = array<i32>} : memref<1x8x2xf32, #tpu.memory_space<vmem>>, vector<1x8x1xf32>,
      %cst_111 = arith.constant 9.99999974E-6 : f32
      %177 = vector.broadcast %cst_111 : f32 to vector<8x1xf32>
      %178 = arith.addf %173, %177 : vector<8x1xf32>
      %179 = math.rsqrt %178 : vector<8x1xf32>
      %c0_112 = arith.constant 0 : index
      %c0_113 = arith.constant 0 : index
      %c1_114 = arith.constant 1 : index
      %180 = vector.load %arg6[%c0_112, %c0_113, %c1_114] : memref<1x8x2xf32, #tpu.memory_space<vmem>>, vector<1x8x1xf32>
      %181 = vector.shape_cast %180 : vector<1x8x1xf32> to vector<8x1xf32>
      %182 = vector.shape_cast %179 : vector<8x1xf32> to vector<1x8x1xf32>
      tpu.vector_store %arg6[%c0_112, %c0_113, %c1_114], %182 {strides = array<i32>} : memref<1x8x2xf32, #tpu.memory_space<vmem>>, vector<1x8x1xf32>,
    } else {
    }
    return
  }
  func.func @transform_0(%arg0: i32, %arg1: i32) -> (i32, i32, i32) {
    %c0_i32 = arith.constant 0 : i32
    %c0_i32_0 = arith.constant 0 : i32
    %c0_i32_1 = arith.constant 0 : i32
    return %arg0, %c0_i32, %c0_i32_0 : i32, i32, i32
  }
  func.func @transform_1(%arg0: i32, %arg1: i32) -> (i32, i32, i32) {
    %c0_i32 = arith.constant 0 : i32
    %c0_i32_0 = arith.constant 0 : i32
    %c0_i32_1 = arith.constant 0 : i32
    %c0_i32_2 = arith.constant 0 : i32
    return %c0_i32, %c0_i32_0, %c0_i32_1 : i32, i32, i32
  }
  func.func @transform_2(%arg0: i32, %arg1: i32) -> (i32, i32) {
    %c0_i32 = arith.constant 0 : i32
    %c0_i32_0 = arith.constant 0 : i32
    return %c0_i32, %arg1 : i32, i32
  }
  func.func @transform_3(%arg0: i32, %arg1: i32) -> (i32, i32, i32) {
    %c0_i32 = arith.constant 0 : i32
    %c0_i32_0 = arith.constant 0 : i32
    return %arg0, %c0_i32, %arg1 : i32, i32, i32
  }
  func.func @transform_4(%arg0: i32, %arg1: i32) -> (i32, i32, i32) {
    %c0_i32 = arith.constant 0 : i32
    %c0_i32_0 = arith.constant 0 : i32
    %c0_i32_1 = arith.constant 0 : i32
    return %arg0, %c0_i32, %c0_i32_0 : i32, i32, i32
  }
}

</mosaic_0001>

<bundles_post_ra>
// kernel: conv_forward.3
= control target key start
LH: loop header
LB: loop body
LE: loop exit
PB: predicated region body
PF: predicated region fallthrough
CT: control target
= control target key end

     0   :  { %s432_s9 = smov 0   ;;  %s434_s10 = smov 0   ;;  %s472_s0 = inlined_call_operand.vmem [shape: f32[2,8,2], index: 0, kind: input, shape index: {}]   ;;  %s473_s1 = inlined_call_operand.vmem [shape: f32[2,8,1024], index: 1, kind: input, shape index: {}, may-alias: {1,2}]   ;;  %s474_s2 = inlined_call_operand.vmem [shape: f32[2,8,1024], index: 2, kind: output, shape index: {}, may-alias: {1,2}]  }
   0x1   :  { %s436_s11 = smov 0  }
   0x2 LB: > { %s24_s12 = sadd.s32 1, %s409_s10  ;;  %p353_p0 = scmp.ge.s32.totalorder %s413_s11, 1  ;;  %s413_s11 = sphi %s436_s11, %s12_s11   ;;  %s409_s10 = sphi %s434_s10, %s476_s10   ;;  %s405_s9 = sphi %s432_s9, %s475_s9  }
   0x3   : > { %p26_p1 = scmp.ge.s32.totalorder %s24_s12, 2  ;;  %p142_p2 = scmp.lt.s32.totalorder %s413_s11, 3 }
   0x5   : > { %s478_s12 = smov (%p26_p1, %s24_s12), 0  ;;  %p143_p3 = pnand %p353_p0, %p142_p2 }
   0x6   : > { %p176_p4 = scmp.lt.s32.totalorder (!%p143_p3), %s405_s9, 1  ;;  %v415_v0 = vmov (!%p143_p3), 0   ;;  %v416_v2 = vmov (!%p143_p3), 1  }
   0x7   : > { %146 = sbr.rel (%p143_p3) target bundleno = 159 (0x9f), region = 28  ;;  %389 = vset.pattern.permute.xlu0 (!%p143_p3), %v415_v0 }
   0xe   : > { %s480_s9 = smov (!%p176_p4, %s405_s9), 1 }
   0xf   : > { %s354_s13 = sshll.u32 %s480_s9, 3  ;;  %s361_s17 = sshll.u32 %s480_s9, 6 }
  0x10   : > { %s179_s16 = scalar_lea.vmem %s472_s0, %s354_s13  ;;  %s188_s20 = scalar_lea.vmem %s473_s1, %s361_s17 }
  0x11   : > { %v200_v1 = vld [vmem:[%s179_s16] sm:$0xff]  ;;  %v202_v4 = vld [vmem:[%s188_s20 + $0x8] sm:$0xff]  ;;  %v203_v6 = vld [vmem:[%s188_s20 + $0x10] sm:$0xff]  ;;  %s198_s23 = scalar_lea.vmem %s474_s2, %s361_s17 }
  0x12   : > { %211 = vperm.xlu0 %389, %v200_v1   ;;  %v201_v3 = vld [vmem:[%s188_s20] sm:$0xff]  ;;  %v204_v7 = vld [vmem:[%s188_s20 + $0x18] sm:$0xff]  ;;  %v206_v9 = vld [vmem:[%s188_s20 + $0x28] sm:$0xff] }
  0x13   : > { %v205_v8 = vld [vmem:[%s188_s20 + $0x20] sm:$0xff]  ;;  %v207_v10 = vld [vmem:[%s188_s20 + $0x30] sm:$0xff]  ;;  %v208_v11 = vld [vmem:[%s188_s20 + $0x38] sm:$0xff] }
  0x16   : > { %390 = vset.pattern.permute.xlu0 %v416_v2 }
  0x17   : > { %223 = vperm.xlu0 %390, %v200_v1  }
  0x91   : > { %v212_v5 = vpop.permute.xlu0 %211 }
  0x92   : > { %v214_v12 = vsub.f32 %v201_v3, %v212_v5  ;;  %v215_v13 = vsub.f32 %v202_v4, %v212_v5  ;;  %v216_v14 = vsub.f32 %v203_v6, %v212_v5  ;;  %v217_v15 = vsub.f32 %v204_v7, %v212_v5 }
  0x93   : > { %v218_v16 = vsub.f32 %v205_v8, %v212_v5  ;;  %v219_v17 = vsub.f32 %v206_v9, %v212_v5  ;;  %v220_v18 = vsub.f32 %v207_v10, %v212_v5  ;;  %v221_v19 = vsub.f32 %v208_v11, %v212_v5 }
  0x96   : > { %v224_v20 = vpop.permute.xlu0 %223 }
  0x97   : > { %v226_v21 = vmul.f32 %v224_v20, %v214_v12  ;;  %v227_v22 = vmul.f32 %v224_v20, %v215_v13  ;;  %v228_v23 = vmul.f32 %v224_v20, %v216_v14  ;;  %v229_v24 = vmul.f32 %v224_v20, %v217_v15 }
  0x98   : > { %v230_v25 = vmul.f32 %v224_v20, %v218_v16  ;;  %v231_v26 = vmul.f32 %v224_v20, %v219_v17  ;;  %v232_v27 = vmul.f32 %v224_v20, %v220_v18  ;;  %v233_v28 = vmul.f32 %v224_v20, %v221_v19 }
  0x99   : > { %v234_v29 = vmax.f32 %v226_v21, 0.0  ;;  %v235_v30 = vmax.f32 %v227_v22, 0.0  ;;  %v236_v31 = vmax.f32 %v228_v23, 0.0  ;;  %v237_v32 = vmax.f32 %v229_v24, 0.0 }
  0x9a   : > { %v238_v33 = vmax.f32 %v230_v25, 0.0  ;;  %v239_v34 = vmax.f32 %v231_v26, 0.0  ;;  %v240_v35 = vmax.f32 %v232_v27, 0.0  ;;  %v241_v36 = vmax.f32 %v233_v28, 0.0 }
  0x9b   : > { %242 = vst [vmem:[%s198_s23] sm:$0xff] %v234_v29  ;;  %243 = vst [vmem:[%s198_s23 + $0x8] sm:$0xff] %v235_v30 }
  0x9c   : > { %244 = vst [vmem:[%s198_s23 + $0x10] sm:$0xff] %v236_v31  ;;  %245 = vst [vmem:[%s198_s23 + $0x18] sm:$0xff] %v237_v32 }
  0x9d   : > { %246 = vst [vmem:[%s198_s23 + $0x20] sm:$0xff] %v238_v33  ;;  %247 = vst [vmem:[%s198_s23 + $0x28] sm:$0xff] %v239_v34 }
  0x9e   : > { %248 = vst [vmem:[%s198_s23 + $0x30] sm:$0xff] %v240_v35  ;;  %249 = vst [vmem:[%s198_s23 + $0x38] sm:$0xff] %v241_v36 }
  0x9f PF: > { %s12_s11 = sadd.s32 1, %s413_s11   ;;  %s475_s9 = smov %s409_s10 }
  0xa0   : > { %p9_p5 = scmp.ge.s32.totalorder %s12_s11, 4   ;;  %s476_s10 = smov %s478_s12 }
  0xa2   :  { %11 = sbr.rel (!%p9_p5) target bundleno = 2 (0x2), region = 61 }

// kernel: conv_forward.2
= control target key start
LH: loop header
LB: loop body
LE: loop exit
PB: predicated region body
PF: predicated region fallthrough
CT: control target
= control target key end

     0   :  { %s7473_s15 = smov 0   ;;  %s7475_s16 = smov 0   ;;  %s8715_s0 = inlined_call_operand.vmem [shape: bf16[2,4,1280], index: 0, kind: input, shape index: {}]   ;;  %s8716_s1 = inlined_call_operand.vmem [shape: bf16[27,8,4], index: 1, kind: input, shape index: {}]   ;;  %s8717_s2 = inlined_call_operand.vmem [shape: f32[1,1024], index: 2, kind: input, shape index: {}]   ;;  %s8718_s3 = inlined_call_operand.vmem [shape: f32[2,8,1024], index: 3, kind: output, shape index: {0}]   ;;  %s8719_s4 = inlined_call_operand.vmem [shape: f32[2,8,2], index: 4, kind: output, shape index: {1}]  }
   0x1   :  { %s7477_s17 = smov 0  }
   0x2 LB: > { %s27_s18 = sadd.s32 1, %s7412_s16  ;;  %p6667_p0 = scmp.ge.s32.totalorder %s7416_s17, 1  ;;  %s7416_s17 = sphi %s7477_s17, %s15_s17   ;;  %s7412_s16 = sphi %s7475_s16, %s8721_s16   ;;  %s7408_s15 = sphi %s7473_s15, %s8720_s15  }
   0x3   : > { %p29_p1 = scmp.ge.s32.totalorder %s27_s18, 2  ;;  %p189_p2 = scmp.lt.s32.totalorder %s7416_s17, 3 }
   0x5   : > { %s8723_s18 = smov (%p29_p1, %s27_s18), 0  ;;  %p190_p3 = pnand %p6667_p0, %p189_p2 }
   0x6   : > { %p227_p4 = scmp.lt.s32.totalorder (!%p190_p3), %s7408_s15, 1  ;;  %v277_v0 = vlaneseq (!%p190_p3)  ;;  %v7418_v1 = vmov (!%p190_p3), 1983009808   ;;  %s7419_s23 = smov (!%p190_p3), 127   ;;  %v7420_v12 = vmov (!%p190_p3), 0   ;;  %vm332_vm0 = vcmask (!%p190_p3), 1039360  }
   0x7   : > { %193 = sbr.rel (%p190_p3) target bundleno = 1114 (0x45a), region = 32  ;;  %v275_v2 = vunpack.c.l.s4 (!%p190_p3), %v7418_v1  ;;  %402 = vmatprep.mubr.bf16.mxu0 (!%p190_p3), %v7420_v12  ;;  %443 = vmatprep.mubr.bf16.mxu1 (!%p190_p3), %v7420_v12  ;;  %s7421_s24 = smov (!%p190_p3), 126   ;;  %vm345_vm1 = vcmask (!%p190_p3), 1041408   ;;  %v6672_v32 = vld [vmem:[%s8716_s1 + $0x4] sm:$0xf] (!%p190_p3)  ;;  %vm341_vm2 = vcmask (!%p190_p3), 31744  }
   0x8   : > { %v7493_v3 = vshrl.u32 (!%p190_p3), %v277_v0, 7  ;;  %s7422_s25 = smov (!%p190_p3), 118   ;;  %s7423_s26 = smov (!%p190_p3), 117   ;;  %v267_v49 = vld [vmem:[%s8716_s1] sm:$0xf] (!%p190_p3)  ;;  %vm745_vm3 = vcmask (!%p190_p3), 1031168  }
   0x9   : > { %v276_v4 = vunpack.c.0.s8 (!%p190_p3), %v275_v2  ;;  %s7424_s27 = smov (!%p190_p3), 116   ;;  %s7425_s28 = smov (!%p190_p3), 108   ;;  %vm973_vm4 = vcmask (!%p190_p3), 965632   ;;  %vm1201_vm5 = vcmask (!%p190_p3), 957440   ;;  %vm1429_vm6 = vcmask (!%p190_p3), 949248  }
   0xa   : > { %s7426_s29 = smov (!%p190_p3), 107   ;;  %s7427_s6 = smov (!%p190_p3), 106   ;;  %vm1657_vm7 = vcmask (!%p190_p3), 883712   ;;  %vm1885_vm8 = vcmask (!%p190_p3), 875520   ;;  %vm2113_vm9 = vcmask (!%p190_p3), 867328   ;;  %vm2341_vm10 = vcmask (!%p190_p3), 228352  }
   0xb   : > { %v279_v5 = vsub.s32 (!%p190_p3), %v276_v4, %v7493_v3  ;;  %s7428_s9 = smov (!%p190_p3), 28   ;;  %s7429_s12 = smov (!%p190_p3), 27   ;;  %vm2569_vm11 = vcmask (!%p190_p3), 220160   ;;  %vm2797_vm12 = vcmask (!%p190_p3), 211968   ;;  %vm3025_vm13 = vcmask (!%p190_p3), 146432  }
   0xc   : > { %s7435_s11 = smov (!%p190_p3), 7   ;;  %s7436_s14 = smov (!%p190_p3), 6   ;;  %vm3253_vm14 = vcmask (!%p190_p3), 138240   ;;  %vm3481_vm15 = vcmask (!%p190_p3), 130048  }
   0xd   : > { %s7437_s20 = smov (!%p190_p3), 56   ;;  %s7440_s30 = smov (!%p190_p3), 46  }
   0xe   : > { %s8725_s15 = smov (!%p227_p4, %s7408_s15), 1  ;;  %s7441_s7 = smov 45  }
   0xf   : > { %s7334_s19 = smul.u32 20, %s8725_s15  ;;  %s7442_s10 = smov 44  }
  0x10   : > { %s7443_s13 = smov 36   ;;  %s6671_s21 = sshll.u32 %s8725_s15, 3 }
  0x11   : > { %s7500_s22 = scalar_lea.vmem %s8715_s0, %s7334_s19  ;;  %s7430_s19 = smov 26  }
  0x12   : > { %v264_v6 = vld [vmem:[%s7500_s22] sm:$0xff]  ;;  %v265_v7 = vld [vmem:[%s7500_s22 + $0x8] sm:$0xff]  ;;  %v7538_v19 = vld.sshfl [vmem:[%s7500_s22 + $0x10] sm:$0x33 pattern:$0x76325410] }
  0x13   : > { %v7504_v8 = vrot.slane %v264_v6, %v279_v5  ;;  %v7506_v9 = vrot.slane %v265_v7, %v279_v5  ;;  %v273_v10 = vcombine.high %v264_v6, %v264_v6  ;;  %v290_v13 = vcombine.high %v265_v7, %v265_v7  ;;  %v6690_v6 = vld [vmem:[%s8716_s1 + $0x8] sm:$0xf] }
  0x15   : > { %314 = vrot.lane.b32.xlu0 %v7504_v8, %s7419_s23  ;;  %v7509_v11 = vrot.slane %v273_v10, %v279_v5  ;;  %v7516_v14 = vcombine.high %v7506_v9, %v7506_v9  ;;  %v7520_v15 = vcombine.high %v7504_v8, %v7504_v8  ;;  %v7523_v16 = vrot.slane %v290_v13, %v279_v5 }
  0x16   : > { %v538_v44 = vsel %vm345_vm1, %v7504_v8, 0  ;;  %v550_v51 = vsel %vm345_vm1, %v7506_v9, 0 }
  0x17   : > { %318 = vrot.lane.b32.xlu1 %v7509_v11, %s7419_s23  ;;  %v7528_v17 = vcombine.high %v7509_v11, %v7509_v11  ;;  %v7534_v18 = vcombine.high %v7523_v16, %v7523_v16  ;;  %v544_v46 = vsel %vm345_vm1, %v7509_v11, 0  ;;  %v556_v54 = vsel %vm345_vm1, %v7523_v16, 0 }
  0x19   : > { %322 = vrot.lane.b32.xlu0 %v7506_v9, %s7419_s23 }
  0x1b   : > { %324 = vrot.lane.b32.xlu1 %v7516_v14, %s7419_s23 }
  0x1d   : > { %316 = vrot.lane.b32.xlu0 %v7520_v15, %s7419_s23 }
  0x1f   : > { %320 = vrot.lane.b32.xlu1 %v7528_v17, %s7419_s23 }
  0x21   : > { %326 = vrot.lane.b32.xlu0 %v7523_v16, %s7419_s23 }
  0x23   : > { %328 = vrot.lane.b32.xlu1 %v7534_v18, %s7419_s23 }
  0x25   : > { %330 = vrot.lane.b32.xlu0 %v7538_v19, %s7419_s23  ;;  %s7431_s23 = smov 18  }
  0x27   : > { %727 = vrot.lane.b32.xlu1 %v7504_v8, %s7421_s24 }
  0x29   : > { %729 = vrot.lane.b32.xlu0 %v7520_v15, %s7421_s24 }
  0x2b   : > { %731 = vrot.lane.b32.xlu1 %v7509_v11, %s7421_s24 }
  0x2d   : > { %733 = vrot.lane.b32.xlu0 %v7528_v17, %s7421_s24 }
  0x2f   : > { %735 = vrot.lane.b32.xlu1 %v7506_v9, %s7421_s24 }
  0x31   : > { %737 = vrot.lane.b32.xlu0 %v7516_v14, %s7421_s24 }
  0x33   : > { %739 = vrot.lane.b32.xlu1 %v7523_v16, %s7421_s24 }
  0x35   : > { %741 = vrot.lane.b32.xlu0 %v7534_v18, %s7421_s24 }
  0x37   : > { %743 = vrot.lane.b32.xlu1 %v7538_v19, %s7421_s24  ;;  %s7438_s24 = smov 55  }
  0x39   : > { %955 = vrot.lane.b32.xlu0 %v7504_v8, %s7422_s25 }
  0x3b   : > { %957 = vrot.lane.b32.xlu1 %v7520_v15, %s7422_s25 }
  0x3d   : > { %959 = vrot.lane.b32.xlu0 %v7509_v11, %s7422_s25 }
  0x3f   : > { %961 = vrot.lane.b32.xlu1 %v7528_v17, %s7422_s25 }
  0x41   : > { %963 = vrot.lane.b32.xlu0 %v7506_v9, %s7422_s25 }
  0x43   : > { %965 = vrot.lane.b32.xlu1 %v7516_v14, %s7422_s25 }
  0x45   : > { %967 = vrot.lane.b32.xlu0 %v7523_v16, %s7422_s25 }
  0x47   : > { %969 = vrot.lane.b32.xlu1 %v7534_v18, %s7422_s25 }
  0x49   : > { %971 = vrot.lane.b32.xlu0 %v7538_v19, %s7422_s25  ;;  %s250_s25 = scalar_lea.vmem %s8719_s4, %s6671_s21 }
  0x4b   : > { %1183 = vrot.lane.b32.xlu1 %v7504_v8, %s7423_s26 }
  0x4d   : > { %1185 = vrot.lane.b32.xlu0 %v7520_v15, %s7423_s26 }
  0x4f   : > { %1187 = vrot.lane.b32.xlu1 %v7509_v11, %s7423_s26 }
  0x51   : > { %1189 = vrot.lane.b32.xlu0 %v7528_v17, %s7423_s26 }
  0x53   : > { %1191 = vrot.lane.b32.xlu1 %v7506_v9, %s7423_s26 }
  0x55   : > { %1193 = vrot.lane.b32.xlu0 %v7516_v14, %s7423_s26 }
  0x57   : > { %1195 = vrot.lane.b32.xlu1 %v7523_v16, %s7423_s26 }
  0x59   : > { %1197 = vrot.lane.b32.xlu0 %v7534_v18, %s7423_s26 }
  0x5b   : > { %1199 = vrot.lane.b32.xlu1 %v7538_v19, %s7423_s26  ;;  %s7432_s26 = smov 17  }
  0x5d   : > { %1411 = vrot.lane.b32.xlu0 %v7504_v8, %s7424_s27 }
  0x5f   : > { %1413 = vrot.lane.b32.xlu1 %v7520_v15, %s7424_s27 }
  0x61   : > { %1415 = vrot.lane.b32.xlu0 %v7509_v11, %s7424_s27 }
  0x63   : > { %1417 = vrot.lane.b32.xlu1 %v7528_v17, %s7424_s27 }
  0x65   : > { %1419 = vrot.lane.b32.xlu0 %v7506_v9, %s7424_s27 }
  0x67   : > { %1421 = vrot.lane.b32.xlu1 %v7516_v14, %s7424_s27 }
  0x69   : > { %1423 = vrot.lane.b32.xlu0 %v7523_v16, %s7424_s27 }
  0x6b   : > { %1425 = vrot.lane.b32.xlu1 %v7534_v18, %s7424_s27 }
  0x6d   : > { %1427 = vrot.lane.b32.xlu0 %v7538_v19, %s7424_s27  ;;  %s7439_s27 = smov 54  }
  0x6f   : > { %1639 = vrot.lane.b32.xlu1 %v7504_v8, %s7425_s28 }
  0x71   : > { %1641 = vrot.lane.b32.xlu0 %v7520_v15, %s7425_s28 }
  0x73   : > { %1643 = vrot.lane.b32.xlu1 %v7509_v11, %s7425_s28 }
  0x75   : > { %1645 = vrot.lane.b32.xlu0 %v7528_v17, %s7425_s28 }
  0x77   : > { %1647 = vrot.lane.b32.xlu1 %v7506_v9, %s7425_s28 }
  0x79   : > { %1649 = vrot.lane.b32.xlu0 %v7516_v14, %s7425_s28 }
  0x7b   : > { %1651 = vrot.lane.b32.xlu1 %v7523_v16, %s7425_s28 }
  0x7d   : > { %1653 = vrot.lane.b32.xlu0 %v7534_v18, %s7425_s28 }
  0x7f   : > { %1655 = vrot.lane.b32.xlu1 %v7538_v19, %s7425_s28 }
  0x81   : > { %1867 = vrot.lane.b32.xlu0 %v7504_v8, %s7426_s29 }
  0x83   : > { %1869 = vrot.lane.b32.xlu1 %v7520_v15, %s7426_s29 }
  0x85   : > { %1871 = vrot.lane.b32.xlu0 %v7509_v11, %s7426_s29 }
  0x87   : > { %v315_v20 = vpop.permute.xlu0 %314  ;;  %1873 = vrot.lane.b32.xlu1 %v7528_v17, %s7426_s29 }
  0x89   : > { %v319_v21 = vpop.permute.xlu1 %318  ;;  %1875 = vrot.lane.b32.xlu0 %v7506_v9, %s7426_s29 }
  0x8b   : > { %v323_v22 = vpop.permute.xlu0 %322  ;;  %1877 = vrot.lane.b32.xlu1 %v7516_v14, %s7426_s29 }
  0x8d   : > { %v325_v23 = vpop.permute.xlu1 %324  ;;  %1879 = vrot.lane.b32.xlu0 %v7523_v16, %s7426_s29 }
  0x8e   : > { %v337_v29 = vsel %vm332_vm0, %v323_v22, %v325_v23 }
  0x8f   : > { %v317_v24 = vpop.permute.xlu0 %316  ;;  %1881 = vrot.lane.b32.xlu1 %v7534_v18, %s7426_s29  ;;  %v359_v37 = vsel %vm345_vm1, %v337_v29, 0 }
  0x90   : > { %v334_v25 = vsel %vm332_vm0, %v317_v24, %v319_v21  ;;  %v333_v26 = vsel %vm332_vm0, %v315_v20, %v317_v24 }
  0x91   : > { %6674 = vmatprep.subr.msk.bf16.mxu0 %vm345_vm1, %v334_v25  ;;  %1883 = vrot.lane.b32.xlu0 %v7538_v19, %s7426_s29  ;;  %v321_v27 = vpop.permute.xlu1 %320  ;;  %v347_v28 = vsel %vm345_vm1, %v333_v26, 0  ;;  %s7433_s29 = smov 16  }
  0x92   : > { %371 = vmatpush1.bf16.msra.mxu0 %v347_v28  ;;  %v336_v30 = vsel %vm332_vm0, %v321_v27, %v323_v22  ;;  %v335_v31 = vsel %vm332_vm0, %v319_v21, %v321_v27 }
  0x93   : > { %v327_v33 = vpop.permute.xlu0 %326  ;;  %2095 = vrot.lane.b32.xlu1 %v7504_v8, %s7427_s6  ;;  %6676 = vmatprep.subr.msk.bf16.mxu1 %vm345_vm1, %v336_v30  ;;  %v353_v34 = vsel %vm345_vm1, %v335_v31, 0 }
  0x94   : > { %412 = vmatpush1.bf16.msra.mxu1 %v353_v34  ;;  %v338_v35 = vsel %vm332_vm0, %v325_v23, %v327_v33 }
  0x95   : > { %6675 = vmatmul.mubr.msk.bf16.vlgmr.msra.gmra.mrb[0].mxu0 %vm341_vm2, %v6672_v32  ;;  %6678 = vmatprep.subr.msk.bf16.mxu0 %vm345_vm1, %v338_v35  ;;  %v329_v36 = vpop.permute.xlu1 %328 }
  0x96   : > { %2097 = vrot.lane.b32.xlu0 %v7520_v15, %s7427_s6  ;;  %v339_v38 = vsel %vm332_vm0, %v327_v33, %v329_v36  ;;  %453 = vmatpush1.bf16.msra.mxu0 %v359_v37  ;;  %v6699_v37 = vld [vmem:[%s8716_s1 + $0xc] sm:$0xf] }
  0x97   : > { %v331_v39 = vpop.permute.xlu0 %330  ;;  %2099 = vrot.lane.b32.xlu1 %v7509_v11, %s7427_s6  ;;  %6677 = vmatmul.mubr.msk.bf16.vlgmr.msra.gmra.mrb[0].mxu1 %vm341_vm2, %v6672_v32  ;;  %v365_v42 = vsel %vm345_vm1, %v339_v38, 0 }
  0x98   : > { %v340_v40 = vsel %vm332_vm0, %v329_v36, %v331_v39  ;;  %484 = vmatprep.mubr.bf16.mxu0 %v7420_v12  ;;  %525 = vmatprep.mubr.bf16.mxu1 %v7420_v12  ;;  %vm3709_vm0 = vcmask 64512  }
  0x99   : > { %6680 = vmatprep.subr.msk.bf16.mxu1 %vm345_vm1, %v340_v40  ;;  %v728_v41 = vpop.permute.xlu1 %727  ;;  %6682 = vmatprep.subr.msk.bf16.mxu0 %vm345_vm1, %v7520_v15 }
  0x9a   : > { %2101 = vrot.lane.b32.xlu0 %v7528_v17, %s7427_s6  ;;  %494 = vmatpush1.bf16.msra.mxu1 %v365_v42 }
  0x9b   : > { %v730_v43 = vpop.permute.xlu0 %729  ;;  %2103 = vrot.lane.b32.xlu1 %v7506_v9, %s7427_s6  ;;  %6684 = vmatprep.subr.msk.bf16.mxu1 %vm345_vm1, %v7528_v17 }
  0x9c   : > { %v746_v58 = vsel %vm745_vm3, %v728_v41, %v730_v43 }
  0x9d   : > { %6679 = vmatmul.mubr.msk.bf16.vlgmr.msra.gmra.mrb[4].mxu0 %vm341_vm2, %v6672_v32  ;;  %v732_v45 = vpop.permute.xlu1 %731  ;;  %v758_v61 = vsel %vm345_vm1, %v746_v58, 0  ;;  %v6708_v58 = vld [vmem:[%s8716_s1 + $0x10] sm:$0xf] }
  0x9e   : > { %2105 = vrot.lane.b32.xlu0 %v7516_v14, %s7427_s6  ;;  %562 = vmatpush1.bf16.msra.mxu0 %v538_v44  ;;  %v747_v53 = vsel %vm745_vm3, %v730_v43, %v732_v45 }
  0x9f   : > { %v734_v47 = vpop.permute.xlu0 %733  ;;  %2107 = vrot.lane.b32.xlu1 %v7523_v16, %s7427_s6  ;;  %6681 = vmatmul.mubr.msk.bf16.vlgmr.msra.gmra.mrb[4].mxu1 %vm341_vm2, %v6672_v32 }
  0xa0   : > { %603 = vmatpush1.bf16.msra.mxu1 %v544_v46  ;;  %593 = vmatprep.mubr.bf16.mxu0 %v7420_v12  ;;  %v748_v60 = vsel %vm745_vm3, %v732_v45, %v734_v47 }
  0xa1   : > { %v736_v48 = vpop.permute.xlu1 %735  ;;  %6686 = vmatprep.subr.msk.bf16.mxu0 %vm345_vm1, %v7516_v14  ;;  %634 = vmatprep.mubr.bf16.mxu1 %v7420_v12  ;;  %v764_v1 = vsel %vm345_vm1, %v748_v60, 0 }
  0xa2   : > { %2109 = vrot.lane.b32.xlu0 %v7534_v18, %s7427_s6  ;;  %6688 = vmatprep.subr.msk.bf16.mxu1 %vm345_vm1, %v7534_v18  ;;  %v749_v56 = vsel %vm745_vm3, %v734_v47, %v736_v48 }
  0xa3   : > { %v738_v50 = vpop.permute.xlu0 %737  ;;  %2111 = vrot.lane.b32.xlu1 %v7538_v19, %s7427_s6  ;;  %s7434_s6 = smov 8  }
  0xa4   : > { %v750_v5 = vsel %vm745_vm3, %v736_v48, %v738_v50 }
  0xa5   : > { %6683 = vmatmul.mubr.msk.bf16.vlgmr.msra.gmra.mrb[0].mxu0 %vm341_vm2, %v267_v49  ;;  %v740_v52 = vpop.permute.xlu1 %739  ;;  %v770_v13 = vsel %vm345_vm1, %v750_v5, 0 }
  0xa6   : > { %644 = vmatpush1.bf16.msra.mxu0 %v550_v51  ;;  %2323 = vrot.lane.b32.xlu0 %v7504_v8, %s7428_s9  ;;  %v751_v63 = vsel %vm745_vm3, %v738_v50, %v740_v52 }
  0xa7   : > { %6691 = vmatprep.subr.msk.bf16.mxu0 %vm345_vm1, %v747_v53  ;;  %v742_v55 = vpop.permute.xlu0 %741  ;;  %2325 = vrot.lane.b32.xlu1 %v7520_v15, %s7428_s9 }
  0xa8   : > { %6685 = vmatmul.mubr.msk.bf16.vlgmr.msra.gmra.mrb[0].mxu1 %vm341_vm2, %v267_v49  ;;  %675 = vmatprep.mubr.bf16.mxu0 %v7420_v12  ;;  %v752_v10 = vsel %vm745_vm3, %v740_v52, %v742_v55 }
  0xa9   : > { %685 = vmatpush1.bf16.msra.mxu1 %v556_v54  ;;  %v744_v57 = vpop.permute.xlu1 %743  ;;  %716 = vmatprep.mubr.bf16.mxu1 %v7420_v12  ;;  %v776_v23 = vsel %vm345_vm1, %v752_v10, 0 }
  0xaa   : > { %6693 = vmatprep.subr.msk.bf16.mxu1 %vm345_vm1, %v749_v56  ;;  %2327 = vrot.lane.b32.xlu0 %v7509_v11, %s7428_s9  ;;  %v753_v2 = vsel %vm745_vm3, %v742_v55, %v744_v57  ;;  %vm3937_vm3 = vcmask 56320  }
  0xab   : > { %v956_v59 = vpop.permute.xlu0 %955  ;;  %2329 = vrot.lane.b32.xlu1 %v7528_v17, %s7428_s9 }
  0xad   : > { %6687 = vmatmul.mubr.msk.bf16.vlgmr.msra.gmra.mrb[4].mxu0 %vm341_vm2, %v267_v49  ;;  %v958_v62 = vpop.permute.xlu1 %957 }
  0xae   : > { %2331 = vrot.lane.b32.xlu0 %v7506_v9, %s7428_s9  ;;  %782 = vmatpush1.bf16.msra.mxu0 %v758_v61  ;;  %v974_v26 = vsel %vm973_vm4, %v956_v59, %v958_v62 }
  0xaf   : > { %6695 = vmatprep.subr.msk.bf16.mxu0 %vm345_vm1, %v751_v63  ;;  %v960_v0 = vpop.permute.xlu0 %959  ;;  %2333 = vrot.lane.b32.xlu1 %v7516_v14, %s7428_s9  ;;  %v986_v29 = vsel %vm345_vm1, %v974_v26, 0  ;;  %v6717_v26 = vld [vmem:[%s8716_s1 + $0x14] sm:$0xf] }
  0xb0   : > { %6689 = vmatmul.mubr.msk.bf16.vlgmr.msra.gmra.mrb[4].mxu1 %vm341_vm2, %v267_v49  ;;  %813 = vmatprep.mubr.bf16.mxu0 %v7420_v12  ;;  %v975_v21 = vsel %vm973_vm4, %v958_v62, %v960_v0 }
  0xb1   : > { %823 = vmatpush1.bf16.msra.mxu1 %v764_v1  ;;  %v962_v4 = vpop.permute.xlu1 %961  ;;  %854 = vmatprep.mubr.bf16.mxu1 %v7420_v12 }
  0xb2   : > { %6697 = vmatprep.subr.msk.bf16.mxu1 %vm345_vm1, %v753_v2  ;;  %2335 = vrot.lane.b32.xlu0 %v7523_v16, %s7428_s9  ;;  %v976_v28 = vsel %vm973_vm4, %v960_v0, %v962_v4 }
  0xb3   : > { %v964_v7 = vpop.permute.xlu0 %963  ;;  %2337 = vrot.lane.b32.xlu1 %v7534_v18, %s7428_s9  ;;  %v992_v33 = vsel %vm345_vm1, %v976_v28, 0 }
  0xb4   : > { %v977_v24 = vsel %vm973_vm4, %v962_v4, %v964_v7 }
  0xb5   : > { %6692 = vmatmul.mubr.msk.bf16.vlgmr.msra.gmra.mrb[0].mxu0 %vm341_vm2, %v6690_v6  ;;  %v966_v20 = vpop.permute.xlu1 %965 }
  0xb6   : > { %2339 = vrot.lane.b32.xlu0 %v7538_v19, %s7428_s9  ;;  %864 = vmatpush1.bf16.msra.mxu0 %v770_v13  ;;  %v978_v36 = vsel %vm973_vm4, %v964_v7, %v966_v20 }
  0xb7   : > { %6700 = vmatprep.subr.msk.bf16.mxu0 %vm345_vm1, %v975_v21  ;;  %v968_v22 = vpop.permute.xlu0 %967  ;;  %2551 = vrot.lane.b32.xlu1 %v7504_v8, %s7429_s12  ;;  %v998_v40 = vsel %vm345_vm1, %v978_v36, 0 }
  0xb8   : > { %6694 = vmatmul.mubr.msk.bf16.vlgmr.msra.gmra.mrb[0].mxu1 %vm341_vm2, %v6690_v6  ;;  %895 = vmatprep.mubr.bf16.mxu0 %v7420_v12  ;;  %v979_v31 = vsel %vm973_vm4, %v966_v20, %v968_v22 }
  0xb9   : > { %905 = vmatpush1.bf16.msra.mxu1 %v776_v23  ;;  %v970_v25 = vpop.permute.xlu1 %969  ;;  %936 = vmatprep.mubr.bf16.mxu1 %v7420_v12 }
  0xba   : > { %6702 = vmatprep.subr.msk.bf16.mxu1 %vm345_vm1, %v977_v24  ;;  %2553 = vrot.lane.b32.xlu0 %v7520_v15, %s7429_s12  ;;  %v980_v39 = vsel %vm973_vm4, %v968_v22, %v970_v25 }
  0xbb   : > { %v972_v27 = vpop.permute.xlu0 %971  ;;  %2555 = vrot.lane.b32.xlu1 %v7509_v11, %s7429_s12  ;;  %v1004_v45 = vsel %vm345_vm1, %v980_v39, 0 }
  0xbc   : > { %v981_v34 = vsel %vm973_vm4, %v970_v25, %v972_v27  ;;  %vm4165_vm4 = vcmask 48128  }
  0xbd   : > { %6696 = vmatmul.mubr.msk.bf16.vlgmr.msra.gmra.mrb[4].mxu0 %vm341_vm2, %v6690_v6  ;;  %v1184_v30 = vpop.permute.xlu1 %1183 }
  0xbe   : > { %2557 = vrot.lane.b32.xlu0 %v7528_v17, %s7429_s12  ;;  %1010 = vmatpush1.bf16.msra.mxu0 %v986_v29 }
  0xbf   : > { %6704 = vmatprep.subr.msk.bf16.mxu0 %vm345_vm1, %v979_v31  ;;  %v1186_v32 = vpop.permute.xlu0 %1185  ;;  %2559 = vrot.lane.b32.xlu1 %v7506_v9, %s7429_s12 }
  0xc0   : > { %6698 = vmatmul.mubr.msk.bf16.vlgmr.msra.gmra.mrb[4].mxu1 %vm341_vm2, %v6690_v6  ;;  %1041 = vmatprep.mubr.bf16.mxu0 %v7420_v12  ;;  %v1202_v47 = vsel %vm1201_vm5, %v1184_v30, %v1186_v32 }
  0xc1   : > { %1051 = vmatpush1.bf16.msra.mxu1 %v992_v33  ;;  %v1188_v35 = vpop.permute.xlu1 %1187  ;;  %1082 = vmatprep.mubr.bf16.mxu1 %v7420_v12  ;;  %v1214_v50 = vsel %vm345_vm1, %v1202_v47, 0  ;;  %v6726_v47 = vld [vmem:[%s8716_s1 + $0x18] sm:$0xf] }
  0xc2   : > { %6706 = vmatprep.subr.msk.bf16.mxu1 %vm345_vm1, %v981_v34  ;;  %2561 = vrot.lane.b32.xlu0 %v7516_v14, %s7429_s12  ;;  %v1203_v42 = vsel %vm1201_vm5, %v1186_v32, %v1188_v35 }
  0xc3   : > { %v1190_v38 = vpop.permute.xlu0 %1189  ;;  %2563 = vrot.lane.b32.xlu1 %v7523_v16, %s7429_s12 }
  0xc4   : > { %v1204_v49 = vsel %vm1201_vm5, %v1188_v35, %v1190_v38 }
  0xc5   : > { %6701 = vmatmul.mubr.msk.bf16.vlgmr.msra.gmra.mrb[0].mxu0 %vm341_vm2, %v6699_v37  ;;  %v1192_v41 = vpop.permute.xlu1 %1191  ;;  %v1220_v55 = vsel %vm345_vm1, %v1204_v49, 0 }
  0xc6   : > { %2565 = vrot.lane.b32.xlu0 %v7534_v18, %s7429_s12  ;;  %1092 = vmatpush1.bf16.msra.mxu0 %v998_v40  ;;  %v1205_v44 = vsel %vm1201_vm5, %v1190_v38, %v1192_v41 }
  0xc7   : > { %6709 = vmatprep.subr.msk.bf16.mxu0 %vm345_vm1, %v1203_v42  ;;  %v1194_v43 = vpop.permute.xlu0 %1193  ;;  %2567 = vrot.lane.b32.xlu1 %v7538_v19, %s7429_s12 }
  0xc8   : > { %6703 = vmatmul.mubr.msk.bf16.vlgmr.msra.gmra.mrb[0].mxu1 %vm341_vm2, %v6699_v37  ;;  %1123 = vmatprep.mubr.bf16.mxu0 %v7420_v12  ;;  %v1206_v57 = vsel %vm1201_vm5, %v1192_v41, %v1194_v43 }
  0xc9   : > { %1133 = vmatpush1.bf16.msra.mxu1 %v1004_v45  ;;  %v1196_v46 = vpop.permute.xlu1 %1195  ;;  %1164 = vmatprep.mubr.bf16.mxu1 %v7420_v12  ;;  %v1226_v62 = vsel %vm345_vm1, %v1206_v57, 0 }
  0xca   : > { %6711 = vmatprep.subr.msk.bf16.mxu1 %vm345_vm1, %v1205_v44  ;;  %2779 = vrot.lane.b32.xlu0 %v7504_v8, %s7430_s19  ;;  %v1207_v52 = vsel %vm1201_vm5, %v1194_v43, %v1196_v46 }
  0xcb   : > { %v1198_v48 = vpop.permute.xlu0 %1197  ;;  %2781 = vrot.lane.b32.xlu1 %v7520_v15, %s7430_s19 }
  0xcc   : > { %v1208_v61 = vsel %vm1201_vm5, %v1196_v46, %v1198_v48 }
  0xcd   : > { %6705 = vmatmul.mubr.msk.bf16.vlgmr.msra.gmra.mrb[4].mxu0 %vm341_vm2, %v6699_v37  ;;  %v1200_v51 = vpop.permute.xlu1 %1199  ;;  %v1232_v1 = vsel %vm345_vm1, %v1208_v61, 0 }
  0xce   : > { %2783 = vrot.lane.b32.xlu0 %v7509_v11, %s7430_s19  ;;  %1238 = vmatpush1.bf16.msra.mxu0 %v1214_v50  ;;  %v1209_v53 = vsel %vm1201_vm5, %v1198_v48, %v1200_v51  ;;  %vm4394_vm5 = vcmask 457728  }
  0xcf   : > { %6713 = vmatprep.subr.msk.bf16.mxu0 %vm345_vm1, %v1207_v52  ;;  %v1412_v54 = vpop.permute.xlu0 %1411  ;;  %2785 = vrot.lane.b32.xlu1 %v7528_v17, %s7430_s19 }
  0xd0   : > { %6707 = vmatmul.mubr.msk.bf16.vlgmr.msra.gmra.mrb[4].mxu1 %vm341_vm2, %v6699_v37  ;;  %1269 = vmatprep.mubr.bf16.mxu0 %v7420_v12 }
  0xd1   : > { %1279 = vmatpush1.bf16.msra.mxu1 %v1220_v55  ;;  %v1414_v56 = vpop.permute.xlu1 %1413  ;;  %1310 = vmatprep.mubr.bf16.mxu1 %v7420_v12 }
  0xd2   : > { %6715 = vmatprep.subr.msk.bf16.mxu1 %vm345_vm1, %v1209_v53  ;;  %2787 = vrot.lane.b32.xlu0 %v7506_v9, %s7430_s19  ;;  %v1430_v5 = vsel %vm1429_vm6, %v1412_v54, %v1414_v56 }
  0xd3   : > { %v1416_v59 = vpop.permute.xlu0 %1415  ;;  %2789 = vrot.lane.b32.xlu1 %v7516_v14, %s7430_s19  ;;  %v1442_v13 = vsel %vm345_vm1, %v1430_v5, 0 }
  0xd4   : > { %v1431_v60 = vsel %vm1429_vm6, %v1414_v56, %v1416_v59 }
  0xd5   : > { %6710 = vmatmul.mubr.msk.bf16.vlgmr.msra.gmra.mrb[0].mxu0 %vm341_vm2, %v6708_v58  ;;  %v1418_v63 = vpop.permute.xlu1 %1417 }
  0xd6   : > { %2791 = vrot.lane.b32.xlu0 %v7523_v16, %s7430_s19  ;;  %1320 = vmatpush1.bf16.msra.mxu0 %v1226_v62  ;;  %v1432_v10 = vsel %vm1429_vm6, %v1416_v59, %v1418_v63 }
  0xd7   : > { %6718 = vmatprep.subr.msk.bf16.mxu0 %vm345_vm1, %v1431_v60  ;;  %v1420_v0 = vpop.permute.xlu0 %1419  ;;  %2793 = vrot.lane.b32.xlu1 %v7534_v18, %s7430_s19  ;;  %v1448_v23 = vsel %vm345_vm1, %v1432_v10, 0 }
  0xd8   : > { %6712 = vmatmul.mubr.msk.bf16.vlgmr.msra.gmra.mrb[0].mxu1 %vm341_vm2, %v6708_v58  ;;  %v1433_v2 = vsel %vm1429_vm6, %v1418_v63, %v1420_v0  ;;  %1351 = vmatprep.mubr.bf16.mxu0 %v7420_v12 }
  0xd9   : > { %1361 = vmatpush1.bf16.msra.mxu1 %v1232_v1  ;;  %v1422_v4 = vpop.permute.xlu1 %1421  ;;  %1392 = vmatprep.mubr.bf16.mxu1 %v7420_v12 }
  0xda   : > { %2795 = vrot.lane.b32.xlu0 %v7538_v19, %s7430_s19  ;;  %6720 = vmatprep.subr.msk.bf16.mxu1 %vm345_vm1, %v1433_v2  ;;  %v1434_v25 = vsel %vm1429_vm6, %v1420_v0, %v1422_v4  ;;  %s7444_s19 = smov 35  }
  0xdb   : > { %v1424_v6 = vpop.permute.xlu0 %1423  ;;  %3007 = vrot.lane.b32.xlu1 %v7504_v8, %s7431_s23  ;;  %v1454_v29 = vsel %vm345_vm1, %v1434_v25, 0 }
  0xdc   : > { %v1435_v7 = vsel %vm1429_vm6, %v1422_v4, %v1424_v6  ;;  %v6735_v4 = vld [vmem:[%s8716_s1 + $0x1c] sm:$0xf] }
  0xdd   : > { %6714 = vmatmul.mubr.msk.bf16.vlgmr.msra.gmra.mrb[4].mxu0 %vm341_vm2, %v6708_v58  ;;  %v1426_v20 = vpop.permute.xlu1 %1425 }
  0xde   : > { %3009 = vrot.lane.b32.xlu0 %v7520_v15, %s7431_s23  ;;  %1466 = vmatpush1.bf16.msra.mxu0 %v1442_v13  ;;  %v1436_v28 = vsel %vm1429_vm6, %v1424_v6, %v1426_v20 }
  0xdf   : > { %6722 = vmatprep.subr.msk.bf16.mxu0 %vm345_vm1, %v1435_v7  ;;  %v1428_v21 = vpop.permute.xlu0 %1427  ;;  %3011 = vrot.lane.b32.xlu1 %v7509_v11, %s7431_s23  ;;  %v1460_v33 = vsel %vm345_vm1, %v1436_v28, 0 }
  0xe0   : > { %v1437_v22 = vsel %vm1429_vm6, %v1426_v20, %v1428_v21  ;;  %6716 = vmatmul.mubr.msk.bf16.vlgmr.msra.gmra.mrb[4].mxu1 %vm341_vm2, %v6708_v58  ;;  %1497 = vmatprep.mubr.bf16.mxu0 %v7420_v12  ;;  %vm4622_vm6 = vcmask 449536  }
  0xe1   : > { %1507 = vmatpush1.bf16.msra.mxu1 %v1448_v23  ;;  %v1640_v24 = vpop.permute.xlu1 %1639  ;;  %1538 = vmatprep.mubr.bf16.mxu1 %v7420_v12 }
  0xe2   : > { %3013 = vrot.lane.b32.xlu0 %v7528_v17, %s7431_s23  ;;  %6724 = vmatprep.subr.msk.bf16.mxu1 %vm345_vm1, %v1437_v22 }
  0xe3   : > { %v1642_v27 = vpop.permute.xlu0 %1641  ;;  %3015 = vrot.lane.b32.xlu1 %v7506_v9, %s7431_s23 }
  0xe4   : > { %v1658_v35 = vsel %vm1657_vm7, %v1640_v24, %v1642_v27 }
  0xe5   : > { %6719 = vmatmul.mubr.msk.bf16.vlgmr.msra.gmra.mrb[0].mxu0 %vm341_vm2, %v6717_v26  ;;  %v1644_v30 = vpop.permute.xlu1 %1643  ;;  %v1670_v39 = vsel %vm345_vm1, %v1658_v35, 0  ;;  %v6744_v35 = vld [vmem:[%s8716_s1 + $0x20] sm:$0xf] }
  0xe6   : > { %3017 = vrot.lane.b32.xlu0 %v7516_v14, %s7431_s23  ;;  %1548 = vmatpush1.bf16.msra.mxu0 %v1454_v29  ;;  %v1659_v31 = vsel %vm1657_vm7, %v1642_v27, %v1644_v30 }
  0xe7   : > { %v1646_v32 = vpop.permute.xlu0 %1645  ;;  %3019 = vrot.lane.b32.xlu1 %v7523_v16, %s7431_s23  ;;  %6727 = vmatprep.subr.msk.bf16.mxu0 %vm345_vm1, %v1659_v31 }
  0xe8   : > { %6721 = vmatmul.mubr.msk.bf16.vlgmr.msra.gmra.mrb[0].mxu1 %vm341_vm2, %v6717_v26  ;;  %1579 = vmatprep.mubr.bf16.mxu0 %v7420_v12  ;;  %v1660_v38 = vsel %vm1657_vm7, %v1644_v30, %v1646_v32 }
  0xe9   : > { %1589 = vmatpush1.bf16.msra.mxu1 %v1460_v33  ;;  %v1648_v34 = vpop.permute.xlu1 %1647  ;;  %1620 = vmatprep.mubr.bf16.mxu1 %v7420_v12  ;;  %v1676_v43 = vsel %vm345_vm1, %v1660_v38, 0 }
  0xea   : > { %3021 = vrot.lane.b32.xlu0 %v7534_v18, %s7431_s23  ;;  %v1661_v36 = vsel %vm1657_vm7, %v1646_v32, %v1648_v34 }
  0xeb   : > { %v1650_v37 = vpop.permute.xlu0 %1649  ;;  %3023 = vrot.lane.b32.xlu1 %v7538_v19, %s7431_s23  ;;  %6729 = vmatprep.subr.msk.bf16.mxu1 %vm345_vm1, %v1661_v36  ;;  %s7445_s23 = smov 34  }
  0xec   : > { %v1662_v45 = vsel %vm1657_vm7, %v1648_v34, %v1650_v37 }
  0xed   : > { %6723 = vmatmul.mubr.msk.bf16.vlgmr.msra.gmra.mrb[4].mxu0 %vm341_vm2, %v6717_v26  ;;  %v1652_v40 = vpop.permute.xlu1 %1651  ;;  %v1682_v50 = vsel %vm345_vm1, %v1662_v45, 0 }
  0xee   : > { %3235 = vrot.lane.b32.xlu0 %v7504_v8, %s7432_s26  ;;  %1694 = vmatpush1.bf16.msra.mxu0 %v1670_v39  ;;  %v1663_v41 = vsel %vm1657_vm7, %v1650_v37, %v1652_v40 }
  0xef   : > { %v1654_v42 = vpop.permute.xlu0 %1653  ;;  %3237 = vrot.lane.b32.xlu1 %v7520_v15, %s7432_s26  ;;  %6731 = vmatprep.subr.msk.bf16.mxu0 %vm345_vm1, %v1663_v41 }
  0xf0   : > { %6725 = vmatmul.mubr.msk.bf16.vlgmr.msra.gmra.mrb[4].mxu1 %vm341_vm2, %v6717_v26  ;;  %1725 = vmatprep.mubr.bf16.mxu0 %v7420_v12  ;;  %v1664_v49 = vsel %vm1657_vm7, %v1652_v40, %v1654_v42 }
  0xf1   : > { %1735 = vmatpush1.bf16.msra.mxu1 %v1676_v43  ;;  %v1656_v44 = vpop.permute.xlu1 %1655  ;;  %1766 = vmatprep.mubr.bf16.mxu1 %v7420_v12  ;;  %v1688_v53 = vsel %vm345_vm1, %v1664_v49, 0 }
  0xf2   : > { %3239 = vrot.lane.b32.xlu0 %v7509_v11, %s7432_s26  ;;  %v1665_v46 = vsel %vm1657_vm7, %v1654_v42, %v1656_v44  ;;  %vm4850_vm7 = vcmask 441344  }
  0xf3   : > { %v1868_v48 = vpop.permute.xlu0 %1867  ;;  %3241 = vrot.lane.b32.xlu1 %v7528_v17, %s7432_s26  ;;  %6733 = vmatprep.subr.msk.bf16.mxu1 %vm345_vm1, %v1665_v46 }
  0xf5   : > { %6728 = vmatmul.mubr.msk.bf16.vlgmr.msra.gmra.mrb[0].mxu0 %vm341_vm2, %v6726_v47  ;;  %v1870_v51 = vpop.permute.xlu1 %1869 }
  0xf6   : > { %3243 = vrot.lane.b32.xlu0 %v7506_v9, %s7432_s26  ;;  %1776 = vmatpush1.bf16.msra.mxu0 %v1682_v50  ;;  %v1886_v56 = vsel %vm1885_vm8, %v1868_v48, %v1870_v51 }
  0xf7   : > { %v1872_v52 = vpop.permute.xlu0 %1871  ;;  %3245 = vrot.lane.b32.xlu1 %v7516_v14, %s7432_s26  ;;  %1807 = vmatprep.mubr.bf16.mxu0 %v7420_v12  ;;  %v1898_v60 = vsel %vm345_vm1, %v1886_v56, 0 }
  0xf8   : > { %6730 = vmatmul.mubr.msk.bf16.vlgmr.msra.gmra.mrb[0].mxu1 %vm341_vm2, %v6726_v47  ;;  %v1887_v54 = vsel %vm1885_vm8, %v1870_v51, %v1872_v52 }
  0xf9   : > { %1817 = vmatpush1.bf16.msra.mxu1 %v1688_v53  ;;  %6736 = vmatprep.subr.msk.bf16.mxu0 %vm345_vm1, %v1887_v54  ;;  %v1874_v55 = vpop.permute.xlu1 %1873  ;;  %v6753_v54 = vld [vmem:[%s8716_s1 + $0x24] sm:$0xf] }
  0xfa   : > { %3247 = vrot.lane.b32.xlu0 %v7523_v16, %s7432_s26  ;;  %1848 = vmatprep.mubr.bf16.mxu1 %v7420_v12  ;;  %v1888_v59 = vsel %vm1885_vm8, %v1872_v52, %v1874_v55 }
  0xfb   : > { %v1876_v57 = vpop.permute.xlu0 %1875  ;;  %3249 = vrot.lane.b32.xlu1 %v7534_v18, %s7432_s26  ;;  %v1904_v63 = vsel %vm345_vm1, %v1888_v59, 0 }
  0xfc   : > { %v1889_v58 = vsel %vm1885_vm8, %v1874_v55, %v1876_v57 }
  0xfd   : > { %6732 = vmatmul.mubr.msk.bf16.vlgmr.msra.gmra.mrb[4].mxu0 %vm341_vm2, %v6726_v47  ;;  %6738 = vmatprep.subr.msk.bf16.mxu1 %vm345_vm1, %v1889_v58  ;;  %v1878_v61 = vpop.permute.xlu1 %1877 }
  0xfe   : > { %3251 = vrot.lane.b32.xlu0 %v7538_v19, %s7432_s26  ;;  %1922 = vmatpush1.bf16.msra.mxu0 %v1898_v60  ;;  %v1890_v2 = vsel %vm1885_vm8, %v1876_v57, %v1878_v61  ;;  %s7447_s26 = smov 1  }
  0xff   : > { %v1880_v62 = vpop.permute.xlu0 %1879  ;;  %3463 = vrot.lane.b32.xlu1 %v7504_v8, %s7433_s29  ;;  %1953 = vmatprep.mubr.bf16.mxu0 %v7420_v12  ;;  %v1910_v10 = vsel %vm345_vm1, %v1890_v2, 0 }
 0x100   : > { %6734 = vmatmul.mubr.msk.bf16.vlgmr.msra.gmra.mrb[4].mxu1 %vm341_vm2, %v6726_v47  ;;  %v1891_v0 = vsel %vm1885_vm8, %v1878_v61, %v1880_v62 }
 0x101   : > { %1963 = vmatpush1.bf16.msra.mxu1 %v1904_v63  ;;  %6740 = vmatprep.subr.msk.bf16.mxu0 %vm345_vm1, %v1891_v0  ;;  %v1882_v1 = vpop.permute.xlu1 %1881 }
 0x102   : > { %3465 = vrot.lane.b32.xlu0 %v7520_v15, %s7433_s29  ;;  %1994 = vmatprep.mubr.bf16.mxu1 %v7420_v12  ;;  %v1892_v7 = vsel %vm1885_vm8, %v1880_v62, %v1882_v1 }
 0x103   : > { %v1884_v5 = vpop.permute.xlu0 %1883  ;;  %3467 = vrot.lane.b32.xlu1 %v7509_v11, %s7433_s29  ;;  %v1916_v21 = vsel %vm345_vm1, %v1892_v7, 0 }
 0x104   : > { %v1893_v6 = vsel %vm1885_vm8, %v1882_v1, %v1884_v5  ;;  %vm5078_vm8 = vcmask 375808  }
 0x105   : > { %6737 = vmatmul.mubr.msk.bf16.vlgmr.msra.gmra.mrb[0].mxu0 %vm341_vm2, %v6735_v4  ;;  %6742 = vmatprep.subr.msk.bf16.mxu1 %vm345_vm1, %v1893_v6  ;;  %v2096_v13 = vpop.permute.xlu1 %2095 }
 0x106   : > { %3469 = vrot.lane.b32.xlu0 %v7528_v17, %s7433_s29  ;;  %2004 = vmatpush1.bf16.msra.mxu0 %v1910_v10 }
 0x107   : > { %3471 = vrot.lane.b32.xlu1 %v7506_v9, %s7433_s29  ;;  %2035 = vmatprep.mubr.bf16.mxu0 %v7420_v12 }
 0x108   : > { %v2098_v20 = vpop.permute.xlu0 %2097  ;;  %6739 = vmatmul.mubr.msk.bf16.vlgmr.msra.gmra.mrb[0].mxu1 %vm341_vm2, %v6735_v4 }
 0x109   : > { %2045 = vmatpush1.bf16.msra.mxu1 %v1916_v21  ;;  %v2100_v22 = vpop.permute.xlu1 %2099  ;;  %2076 = vmatprep.mubr.bf16.mxu1 %v7420_v12  ;;  %v2114_v23 = vsel %vm2113_vm9, %v2096_v13, %v2098_v20  ;;  %v8036_v21 = vld.sshfl [vmem:[%s7500_s22 + $0x10] sm:$0x33 pattern:$0x76325410] }
 0x10a   : > { %3473 = vrot.lane.b32.xlu0 %v7516_v14, %s7433_s29  ;;  %v2115_v24 = vsel %vm2113_vm9, %v2098_v20, %v2100_v22  ;;  %v2126_v27 = vsel %vm345_vm1, %v2114_v23, 0  ;;  %v6762_v20 = vld [vmem:[%s8716_s1 + $0x28] sm:$0xf] }
 0x10b   : > { %3475 = vrot.lane.b32.xlu1 %v7523_v16, %s7433_s29  ;;  %6745 = vmatprep.subr.msk.bf16.mxu0 %vm345_vm1, %v2115_v24 }
 0x10c   : > { %v2102_v25 = vpop.permute.xlu0 %2101 }
 0x10d   : > { %v2116_v26 = vsel %vm2113_vm9, %v2100_v22, %v2102_v25  ;;  %6741 = vmatmul.mubr.msk.bf16.vlgmr.msra.gmra.mrb[4].mxu0 %vm341_vm2, %v6735_v4  ;;  %v2104_v28 = vpop.permute.xlu1 %2103 }
 0x10e   : > { %3477 = vrot.lane.b32.xlu0 %v7534_v18, %s7433_s29  ;;  %2150 = vmatpush1.bf16.msra.mxu0 %v2126_v27  ;;  %v2117_v29 = vsel %vm2113_vm9, %v2102_v25, %v2104_v28  ;;  %v2132_v31 = vsel %vm345_vm1, %v2116_v26, 0 }
 0x10f   : > { %3479 = vrot.lane.b32.xlu1 %v7538_v19, %s7433_s29  ;;  %6747 = vmatprep.subr.msk.bf16.mxu1 %vm345_vm1, %v2117_v29 }
 0x110   : > { %v2106_v30 = vpop.permute.xlu0 %2105  ;;  %6743 = vmatmul.mubr.msk.bf16.vlgmr.msra.gmra.mrb[4].mxu1 %vm341_vm2, %v6735_v4  ;;  %2181 = vmatprep.mubr.bf16.mxu0 %v7420_v12 }
 0x111   : > { %2191 = vmatpush1.bf16.msra.mxu1 %v2132_v31  ;;  %v2108_v32 = vpop.permute.xlu1 %2107  ;;  %2222 = vmatprep.mubr.bf16.mxu1 %v7420_v12  ;;  %v2118_v33 = vsel %vm2113_vm9, %v2104_v28, %v2106_v30 }
 0x112   : > { %3691 = vrot.lane.b32.xlu0 %v7504_v8, %s7434_s6  ;;  %v2119_v34 = vsel %vm2113_vm9, %v2106_v30, %v2108_v32  ;;  %v2138_v38 = vsel %vm345_vm1, %v2118_v33, 0 }
 0x113   : > { %3693 = vrot.lane.b32.xlu1 %v7520_v15, %s7434_s6  ;;  %6749 = vmatprep.subr.msk.bf16.mxu0 %vm345_vm1, %v2119_v34 }
 0x114   : > { %v2110_v36 = vpop.permute.xlu0 %2109 }
 0x115   : > { %v2120_v37 = vsel %vm2113_vm9, %v2108_v32, %v2110_v36  ;;  %6746 = vmatmul.mubr.msk.bf16.vlgmr.msra.gmra.mrb[0].mxu0 %vm341_vm2, %v6744_v35  ;;  %v2112_v39 = vpop.permute.xlu1 %2111 }
 0x116   : > { %3695 = vrot.lane.b32.xlu0 %v7509_v11, %s7434_s6  ;;  %2232 = vmatpush1.bf16.msra.mxu0 %v2138_v38  ;;  %v2121_v40 = vsel %vm2113_vm9, %v2110_v36, %v2112_v39  ;;  %v2144_v42 = vsel %vm345_vm1, %v2120_v37, 0  ;;  %vm5306_vm9 = vcmask 367616  }
 0x117   : > { %3697 = vrot.lane.b32.xlu1 %v7528_v17, %s7434_s6  ;;  %6751 = vmatprep.subr.msk.bf16.mxu1 %vm345_vm1, %v2121_v40 }
 0x118   : > { %v2324_v41 = vpop.permute.xlu0 %2323  ;;  %6748 = vmatmul.mubr.msk.bf16.vlgmr.msra.gmra.mrb[0].mxu1 %vm341_vm2, %v6744_v35  ;;  %2263 = vmatprep.mubr.bf16.mxu0 %v7420_v12 }
 0x119   : > { %2273 = vmatpush1.bf16.msra.mxu1 %v2144_v42  ;;  %v2326_v43 = vpop.permute.xlu1 %2325  ;;  %2304 = vmatprep.mubr.bf16.mxu1 %v7420_v12 }
 0x11a   : > { %3699 = vrot.lane.b32.xlu0 %v7506_v9, %s7434_s6  ;;  %v2342_v44 = vsel %vm2341_vm10, %v2324_v41, %v2326_v43 }
 0x11b   : > { %3701 = vrot.lane.b32.xlu1 %v7516_v14, %s7434_s6  ;;  %v2354_v48 = vsel %vm345_vm1, %v2342_v44, 0 }
 0x11c   : > { %v2328_v45 = vpop.permute.xlu0 %2327 }
 0x11d   : > { %v2343_v46 = vsel %vm2341_vm10, %v2326_v43, %v2328_v45  ;;  %v2330_v47 = vpop.permute.xlu1 %2329  ;;  %6750 = vmatmul.mubr.msk.bf16.vlgmr.msra.gmra.mrb[4].mxu0 %vm341_vm2, %v6744_v35  ;;  %v6771_v43 = vld [vmem:[%s8716_s1 + $0x2c] sm:$0xf] }
 0x11e   : > { %3703 = vrot.lane.b32.xlu0 %v7523_v16, %s7434_s6  ;;  %6754 = vmatprep.subr.msk.bf16.mxu0 %vm345_vm1, %v2343_v46  ;;  %v2344_v49 = vsel %vm2341_vm10, %v2328_v45, %v2330_v47 }
 0x11f   : > { %2378 = vmatpush1.bf16.msra.mxu0 %v2354_v48  ;;  %3705 = vrot.lane.b32.xlu1 %v7534_v18, %s7434_s6  ;;  %v2360_v53 = vsel %vm345_vm1, %v2344_v49, 0 }
 0x120   : > { %v2332_v50 = vpop.permute.xlu0 %2331  ;;  %6752 = vmatmul.mubr.msk.bf16.vlgmr.msra.gmra.mrb[4].mxu1 %vm341_vm2, %v6744_v35  ;;  %2409 = vmatprep.mubr.bf16.mxu0 %v7420_v12 }
 0x121   : > { %v2345_v51 = vsel %vm2341_vm10, %v2330_v47, %v2332_v50  ;;  %v2334_v52 = vpop.permute.xlu1 %2333  ;;  %2450 = vmatprep.mubr.bf16.mxu1 %v7420_v12 }
 0x122   : > { %3707 = vrot.lane.b32.xlu0 %v7538_v19, %s7434_s6  ;;  %6756 = vmatprep.subr.msk.bf16.mxu1 %vm345_vm1, %v2345_v51  ;;  %v2346_v55 = vsel %vm2341_vm10, %v2332_v50, %v2334_v52 }
 0x123   : > { %2419 = vmatpush1.bf16.msra.mxu1 %v2360_v53  ;;  %3919 = vrot.lane.b32.xlu1 %v7504_v8, %s7435_s11  ;;  %v2366_v19 = vsel %vm345_vm1, %v2346_v55, 0 }
 0x124   : > { %v2336_v56 = vpop.permute.xlu0 %2335 }
 0x125   : > { %v2347_v57 = vsel %vm2341_vm10, %v2334_v52, %v2336_v56  ;;  %v2338_v58 = vpop.permute.xlu1 %2337  ;;  %6755 = vmatmul.mubr.msk.bf16.vlgmr.msra.gmra.mrb[0].mxu0 %vm341_vm2, %v6753_v54 }
 0x126   : > { %3921 = vrot.lane.b32.xlu0 %v7520_v15, %s7435_s11  ;;  %6758 = vmatprep.subr.msk.bf16.mxu0 %vm345_vm1, %v2347_v57  ;;  %v2348_v59 = vsel %vm2341_vm10, %v2336_v56, %v2338_v58 }
 0x127   : > { %2460 = vmatpush1.bf16.msra.mxu0 %v2366_v19  ;;  %3923 = vrot.lane.b32.xlu1 %v7509_v11, %s7435_s11  ;;  %v2372_v63 = vsel %vm345_vm1, %v2348_v59, 0  ;;  %v8121_v59 = vcombine.high %v8036_v21, %v8036_v21 }
 0x128   : > { %v2340_v60 = vpop.permute.xlu0 %2339  ;;  %6757 = vmatmul.mubr.msk.bf16.vlgmr.msra.gmra.mrb[0].mxu1 %vm341_vm2, %v6753_v54  ;;  %2491 = vmatprep.mubr.bf16.mxu0 %v7420_v12 }
 0x129   : > { %v2349_v61 = vsel %vm2341_vm10, %v2338_v58, %v2340_v60  ;;  %v2552_v62 = vpop.permute.xlu1 %2551  ;;  %2532 = vmatprep.mubr.bf16.mxu1 %v7420_v12  ;;  %vm5534_vm10 = vcmask 359424  }
 0x12a   : > { %3925 = vrot.lane.b32.xlu0 %v7528_v17, %s7435_s11  ;;  %6760 = vmatprep.subr.msk.bf16.mxu1 %vm345_vm1, %v2349_v61 }
 0x12b   : > { %2501 = vmatpush1.bf16.msra.mxu1 %v2372_v63  ;;  %3927 = vrot.lane.b32.xlu1 %v7506_v9, %s7435_s11  ;;  %v6780_v63 = vld [vmem:[%s8716_s1 + $0x30] sm:$0xf] }
 0x12c   : > { %v2554_v0 = vpop.permute.xlu0 %2553 }
 0x12d   : > { %v2570_v1 = vsel %vm2569_vm11, %v2552_v62, %v2554_v0  ;;  %v2556_v2 = vpop.permute.xlu1 %2555  ;;  %6759 = vmatmul.mubr.msk.bf16.vlgmr.msra.gmra.mrb[4].mxu0 %vm341_vm2, %v6753_v54 }
 0x12e   : > { %3929 = vrot.lane.b32.xlu0 %v7516_v14, %s7435_s11  ;;  %v2571_v4 = vsel %vm2569_vm11, %v2554_v0, %v2556_v2  ;;  %2637 = vmatprep.mubr.bf16.mxu0 %v7420_v12  ;;  %v2582_v5 = vsel %vm345_vm1, %v2570_v1, 0 }
 0x12f   : > { %3931 = vrot.lane.b32.xlu1 %v7523_v16, %s7435_s11  ;;  %6763 = vmatprep.subr.msk.bf16.mxu0 %vm345_vm1, %v2571_v4 }
 0x130   : > { %v2558_v6 = vpop.permute.xlu0 %2557  ;;  %2606 = vmatpush1.bf16.msra.mxu0 %v2582_v5  ;;  %6761 = vmatmul.mubr.msk.bf16.vlgmr.msra.gmra.mrb[4].mxu1 %vm341_vm2, %v6753_v54 }
 0x131   : > { %v2572_v7 = vsel %vm2569_vm11, %v2556_v2, %v2558_v6  ;;  %v2560_v10 = vpop.permute.xlu1 %2559  ;;  %2678 = vmatprep.mubr.bf16.mxu1 %v7420_v12 }
 0x132   : > { %3933 = vrot.lane.b32.xlu0 %v7534_v18, %s7435_s11  ;;  %v2573_v13 = vsel %vm2569_vm11, %v2558_v6, %v2560_v10  ;;  %v2588_v22 = vsel %vm345_vm1, %v2572_v7, 0 }
 0x133   : > { %3935 = vrot.lane.b32.xlu1 %v8036_v21, %s7435_s11  ;;  %6765 = vmatprep.subr.msk.bf16.mxu1 %vm345_vm1, %v2573_v13 }
 0x134   : > { %v2562_v23 = vpop.permute.xlu0 %2561  ;;  %2647 = vmatpush1.bf16.msra.mxu1 %v2588_v22 }
 0x135   : > { %v2574_v24 = vsel %vm2569_vm11, %v2560_v10, %v2562_v23  ;;  %v2564_v25 = vpop.permute.xlu1 %2563  ;;  %6764 = vmatmul.mubr.msk.bf16.vlgmr.msra.gmra.mrb[0].mxu0 %vm341_vm2, %v6762_v20 }
 0x136   : > { %4147 = vrot.lane.b32.xlu0 %v7504_v8, %s7436_s14  ;;  %v2575_v26 = vsel %vm2569_vm11, %v2562_v23, %v2564_v25  ;;  %2719 = vmatprep.mubr.bf16.mxu0 %v7420_v12  ;;  %v2594_v27 = vsel %vm345_vm1, %v2574_v24, 0 }
 0x137   : > { %4149 = vrot.lane.b32.xlu1 %v7520_v15, %s7436_s14  ;;  %6767 = vmatprep.subr.msk.bf16.mxu0 %vm345_vm1, %v2575_v26 }
 0x138   : > { %v2566_v28 = vpop.permute.xlu0 %2565  ;;  %2688 = vmatpush1.bf16.msra.mxu0 %v2594_v27  ;;  %6766 = vmatmul.mubr.msk.bf16.vlgmr.msra.gmra.mrb[0].mxu1 %vm341_vm2, %v6762_v20 }
 0x139   : > { %v2576_v29 = vsel %vm2569_vm11, %v2564_v25, %v2566_v28  ;;  %v2568_v30 = vpop.permute.xlu1 %2567  ;;  %2760 = vmatprep.mubr.bf16.mxu1 %v7420_v12 }
 0x13a   : > { %4151 = vrot.lane.b32.xlu0 %v7509_v11, %s7436_s14  ;;  %v2577_v8 = vsel %vm2569_vm11, %v2566_v28, %v2568_v30  ;;  %v2600_v31 = vsel %vm345_vm1, %v2576_v29, 0  ;;  %vm5762_vm11 = vcmask 293888  }
 0x13b   : > { %4153 = vrot.lane.b32.xlu1 %v7528_v17, %s7436_s14  ;;  %6769 = vmatprep.subr.msk.bf16.mxu1 %vm345_vm1, %v2577_v8 }
 0x13c   : > { %v2780_v32 = vpop.permute.xlu0 %2779  ;;  %2729 = vmatpush1.bf16.msra.mxu1 %v2600_v31 }
 0x13d   : > { %v2782_v33 = vpop.permute.xlu1 %2781  ;;  %6768 = vmatmul.mubr.msk.bf16.vlgmr.msra.gmra.mrb[4].mxu0 %vm341_vm2, %v6762_v20 }
 0x13e   : > { %4155 = vrot.lane.b32.xlu0 %v7506_v9, %s7436_s14  ;;  %2865 = vmatprep.mubr.bf16.mxu0 %v7420_v12  ;;  %v2798_v34 = vsel %vm2797_vm12, %v2780_v32, %v2782_v33 }
 0x13f   : > { %4157 = vrot.lane.b32.xlu1 %v7516_v14, %s7436_s14  ;;  %v2810_v38 = vsel %vm345_vm1, %v2798_v34, 0  ;;  %v6789_v34 = vld [vmem:[%s8716_s1 + $0x34] sm:$0xf] }
 0x140   : > { %v2784_v35 = vpop.permute.xlu0 %2783  ;;  %6770 = vmatmul.mubr.msk.bf16.vlgmr.msra.gmra.mrb[4].mxu1 %vm341_vm2, %v6762_v20 }
 0x141   : > { %v2799_v36 = vsel %vm2797_vm12, %v2782_v33, %v2784_v35  ;;  %v2786_v37 = vpop.permute.xlu1 %2785  ;;  %2906 = vmatprep.mubr.bf16.mxu1 %v7420_v12 }
 0x142   : > { %4159 = vrot.lane.b32.xlu0 %v7523_v16, %s7436_s14  ;;  %6772 = vmatprep.subr.msk.bf16.mxu0 %vm345_vm1, %v2799_v36  ;;  %v2800_v39 = vsel %vm2797_vm12, %v2784_v35, %v2786_v37 }
 0x143   : > { %2834 = vmatpush1.bf16.msra.mxu0 %v2810_v38  ;;  %4161 = vrot.lane.b32.xlu1 %v7534_v18, %s7436_s14  ;;  %v2816_v44 = vsel %vm345_vm1, %v2800_v39, 0 }
 0x144   : > { %v2788_v40 = vpop.permute.xlu0 %2787 }
 0x145   : > { %v2801_v41 = vsel %vm2797_vm12, %v2786_v37, %v2788_v40  ;;  %v2790_v42 = vpop.permute.xlu1 %2789 }
 0x146   : > { %4163 = vrot.lane.b32.xlu0 %v8036_v21, %s7436_s14  ;;  %6774 = vmatprep.subr.msk.bf16.mxu1 %vm345_vm1, %v2801_v41  ;;  %v2802_v45 = vsel %vm2797_vm12, %v2788_v40, %v2790_v42  ;;  %s6917_s14 = sshll.u32 %s8725_s15, 6 }
 0x147   : > { %2875 = vmatpush1.bf16.msra.mxu1 %v2816_v44  ;;  %4376 = vrot.lane.b32.xlu1 %v7520_v15, %s7437_s20  ;;  %v2822_v49 = vsel %vm345_vm1, %v2802_v45, 0 }
 0x148   : > { %v2792_v46 = vpop.permute.xlu0 %2791  ;;  %6773 = vmatmul.mubr.msk.bf16.vlgmr.msra.gmra.mrb[0].mxu0 %vm341_vm2, %v6771_v43 }
 0x149   : > { %v2803_v47 = vsel %vm2797_vm12, %v2790_v42, %v2792_v46  ;;  %v2794_v48 = vpop.permute.xlu1 %2793  ;;  %2947 = vmatprep.mubr.bf16.mxu0 %v7420_v12 }
 0x14a   : > { %4378 = vrot.lane.b32.xlu0 %v7509_v11, %s7437_s20  ;;  %6776 = vmatprep.subr.msk.bf16.mxu0 %vm345_vm1, %v2803_v47  ;;  %v2804_v50 = vsel %vm2797_vm12, %v2792_v46, %v2794_v48 }
 0x14b   : > { %2916 = vmatpush1.bf16.msra.mxu0 %v2822_v49  ;;  %4380 = vrot.lane.b32.xlu1 %v7528_v17, %s7437_s20  ;;  %v2828_v54 = vsel %vm345_vm1, %v2804_v50, 0 }
 0x14c   : > { %v2796_v51 = vpop.permute.xlu0 %2795  ;;  %6775 = vmatmul.mubr.msk.bf16.vlgmr.msra.gmra.mrb[0].mxu1 %vm341_vm2, %v6771_v43 }
 0x14d   : > { %v2805_v52 = vsel %vm2797_vm12, %v2794_v48, %v2796_v51  ;;  %v3008_v53 = vpop.permute.xlu1 %3007  ;;  %2988 = vmatprep.mubr.bf16.mxu1 %v7420_v12  ;;  %vm5990_vm12 = vcmask 285696  }
 0x14e   : > { %4382 = vrot.lane.b32.xlu0 %v7506_v9, %s7437_s20  ;;  %6778 = vmatprep.subr.msk.bf16.mxu1 %vm345_vm1, %v2805_v52 }
 0x14f   : > { %2957 = vmatpush1.bf16.msra.mxu1 %v2828_v54  ;;  %4384 = vrot.lane.b32.xlu1 %v7516_v14, %s7437_s20  ;;  %v6798_v54 = vld [vmem:[%s8716_s1 + $0x38] sm:$0xf] }
 0x150   : > { %v3010_v55 = vpop.permute.xlu0 %3009  ;;  %6777 = vmatmul.mubr.msk.bf16.vlgmr.msra.gmra.mrb[4].mxu0 %vm341_vm2, %v6771_v43 }
 0x151   : > { %v3026_v56 = vsel %vm3025_vm13, %v3008_v53, %v3010_v55  ;;  %v3012_v57 = vpop.permute.xlu1 %3011  ;;  %3093 = vmatprep.mubr.bf16.mxu0 %v7420_v12 }
 0x152   : > { %4386 = vrot.lane.b32.xlu0 %v7523_v16, %s7437_s20  ;;  %v3027_v58 = vsel %vm3025_vm13, %v3010_v55, %v3012_v57  ;;  %v3038_v19 = vsel %vm345_vm1, %v3026_v56, 0 }
 0x153   : > { %4388 = vrot.lane.b32.xlu1 %v7534_v18, %s7437_s20  ;;  %6781 = vmatprep.subr.msk.bf16.mxu0 %vm345_vm1, %v3027_v58 }
 0x154   : > { %v3014_v60 = vpop.permute.xlu0 %3013  ;;  %3062 = vmatpush1.bf16.msra.mxu0 %v3038_v19  ;;  %6779 = vmatmul.mubr.msk.bf16.vlgmr.msra.gmra.mrb[4].mxu1 %vm341_vm2, %v6771_v43 }
 0x155   : > { %v3028_v61 = vsel %vm3025_vm13, %v3012_v57, %v3014_v60  ;;  %v3016_v62 = vpop.permute.xlu1 %3015  ;;  %3134 = vmatprep.mubr.bf16.mxu1 %v7420_v12 }
 0x156   : > { %4390 = vrot.lane.b32.xlu0 %v8036_v21, %s7437_s20  ;;  %v3029_v0 = vsel %vm3025_vm13, %v3014_v60, %v3016_v62  ;;  %v3044_v1 = vsel %vm345_vm1, %v3028_v61, 0 }
 0x157   : > { %4392 = vrot.lane.b32.xlu1 %v8121_v59, %s7437_s20  ;;  %6783 = vmatprep.subr.msk.bf16.mxu1 %vm345_vm1, %v3029_v0  ;;  %s8684_s20 = scalar_lea.vmem %s8718_s3, %s6917_s14 }
 0x158   : > { %v3018_v2 = vpop.permute.xlu0 %3017  ;;  %3103 = vmatpush1.bf16.msra.mxu1 %v3044_v1  ;;  %6782 = vmatmul.mubr.msk.bf16.vlgmr.msra.gmra.mrb[0].mxu0 %vm341_vm2, %v6780_v63 }
 0x159   : > { %v3030_v4 = vsel %vm3025_vm13, %v3016_v62, %v3018_v2  ;;  %v3020_v5 = vpop.permute.xlu1 %3019  ;;  %3175 = vmatprep.mubr.bf16.mxu0 %v7420_v12 }
 0x15a   : > { %4604 = vrot.lane.b32.xlu0 %v7520_v15, %s7438_s24  ;;  %v3031_v6 = vsel %vm3025_vm13, %v3018_v2, %v3020_v5  ;;  %v3050_v7 = vsel %vm345_vm1, %v3030_v4, 0 }
 0x15b   : > { %4606 = vrot.lane.b32.xlu1 %v7509_v11, %s7438_s24  ;;  %6785 = vmatprep.subr.msk.bf16.mxu0 %vm345_vm1, %v3031_v6 }
 0x15c   : > { %v3022_v10 = vpop.permute.xlu0 %3021  ;;  %3144 = vmatpush1.bf16.msra.mxu0 %v3050_v7  ;;  %6784 = vmatmul.mubr.msk.bf16.vlgmr.msra.gmra.mrb[0].mxu1 %vm341_vm2, %v6780_v63 }
 0x15d   : > { %v3032_v13 = vsel %vm3025_vm13, %v3020_v5, %v3022_v10  ;;  %v3024_v20 = vpop.permute.xlu1 %3023  ;;  %3216 = vmatprep.mubr.bf16.mxu1 %v7420_v12 }
 0x15e   : > { %4608 = vrot.lane.b32.xlu0 %v7528_v17, %s7438_s24  ;;  %v3033_v22 = vsel %vm3025_vm13, %v3022_v10, %v3024_v20  ;;  %v3056_v23 = vsel %vm345_vm1, %v3032_v13, 0  ;;  %vm6218_vm13 = vcmask 277504  }
 0x15f   : > { %4610 = vrot.lane.b32.xlu1 %v7506_v9, %s7438_s24  ;;  %6787 = vmatprep.subr.msk.bf16.mxu1 %vm345_vm1, %v3033_v22 }
 0x160   : > { %v3236_v24 = vpop.permute.xlu0 %3235  ;;  %3185 = vmatpush1.bf16.msra.mxu1 %v3056_v23  ;;  %6786 = vmatmul.mubr.msk.bf16.vlgmr.msra.gmra.mrb[4].mxu0 %vm341_vm2, %v6780_v63 }
 0x161   : > { %v3238_v25 = vpop.permute.xlu1 %3237  ;;  %3321 = vmatprep.mubr.bf16.mxu0 %v7420_v12 }
 0x162   : > { %4612 = vrot.lane.b32.xlu0 %v7516_v14, %s7438_s24  ;;  %v3254_v26 = vsel %vm3253_vm14, %v3236_v24, %v3238_v25 }
 0x163   : > { %4614 = vrot.lane.b32.xlu1 %v7523_v16, %s7438_s24  ;;  %v3266_v30 = vsel %vm345_vm1, %v3254_v26, 0  ;;  %v6807_v26 = vld [vmem:[%s8716_s1 + $0x3c] sm:$0xf] }
 0x164   : > { %v3240_v27 = vpop.permute.xlu0 %3239  ;;  %6788 = vmatmul.mubr.msk.bf16.vlgmr.msra.gmra.mrb[4].mxu1 %vm341_vm2, %v6780_v63 }
 0x165   : > { %v3255_v28 = vsel %vm3253_vm14, %v3238_v25, %v3240_v27  ;;  %v3242_v29 = vpop.permute.xlu1 %3241  ;;  %3362 = vmatprep.mubr.bf16.mxu1 %v7420_v12 }
 0x166   : > { %4616 = vrot.lane.b32.xlu0 %v7534_v18, %s7438_s24  ;;  %6790 = vmatprep.subr.msk.bf16.mxu0 %vm345_vm1, %v3255_v28  ;;  %v3256_v8 = vsel %vm3253_vm14, %v3240_v27, %v3242_v29 }
 0x167   : > { %3290 = vmatpush1.bf16.msra.mxu0 %v3266_v30  ;;  %4618 = vrot.lane.b32.xlu1 %v8036_v21, %s7438_s24  ;;  %v3272_v35 = vsel %vm345_vm1, %v3256_v8, 0 }
 0x168   : > { %v3244_v31 = vpop.permute.xlu0 %3243 }
 0x169   : > { %v3257_v32 = vsel %vm3253_vm14, %v3242_v29, %v3244_v31  ;;  %v3246_v33 = vpop.permute.xlu1 %3245 }
 0x16a   : > { %4620 = vrot.lane.b32.xlu0 %v8121_v59, %s7438_s24  ;;  %6792 = vmatprep.subr.msk.bf16.mxu1 %vm345_vm1, %v3257_v32  ;;  %v3258_v36 = vsel %vm3253_vm14, %v3244_v31, %v3246_v33 }
 0x16b   : > { %3331 = vmatpush1.bf16.msra.mxu1 %v3272_v35  ;;  %4832 = vrot.lane.b32.xlu1 %v7520_v15, %s7439_s27  ;;  %v3278_v40 = vsel %vm345_vm1, %v3258_v36, 0 }
 0x16c   : > { %v3248_v37 = vpop.permute.xlu0 %3247  ;;  %6791 = vmatmul.mubr.msk.bf16.vlgmr.msra.gmra.mrb[0].mxu0 %vm341_vm2, %v6789_v34 }
 0x16d   : > { %v3259_v38 = vsel %vm3253_vm14, %v3246_v33, %v3248_v37  ;;  %v3250_v39 = vpop.permute.xlu1 %3249  ;;  %3403 = vmatprep.mubr.bf16.mxu0 %v7420_v12 }
 0x16e   : > { %4834 = vrot.lane.b32.xlu0 %v7509_v11, %s7439_s27  ;;  %6794 = vmatprep.subr.msk.bf16.mxu0 %vm345_vm1, %v3259_v38  ;;  %v3260_v41 = vsel %vm3253_vm14, %v3248_v37, %v3250_v39 }
 0x16f   : > { %3372 = vmatpush1.bf16.msra.mxu0 %v3278_v40  ;;  %4836 = vrot.lane.b32.xlu1 %v7528_v17, %s7439_s27  ;;  %v3284_v45 = vsel %vm345_vm1, %v3260_v41, 0 }
 0x170   : > { %v3252_v42 = vpop.permute.xlu0 %3251  ;;  %6793 = vmatmul.mubr.msk.bf16.vlgmr.msra.gmra.mrb[0].mxu1 %vm341_vm2, %v6789_v34 }
 0x171   : > { %v3261_v43 = vsel %vm3253_vm14, %v3250_v39, %v3252_v42  ;;  %v3464_v44 = vpop.permute.xlu1 %3463  ;;  %3444 = vmatprep.mubr.bf16.mxu1 %v7420_v12  ;;  %vm256_vm14 = vcmask 7168  }
 0x172   : > { %4838 = vrot.lane.b32.xlu0 %v7506_v9, %s7439_s27  ;;  %6796 = vmatprep.subr.msk.bf16.mxu1 %vm345_vm1, %v3261_v43 }
 0x173   : > { %3413 = vmatpush1.bf16.msra.mxu1 %v3284_v45  ;;  %4840 = vrot.lane.b32.xlu1 %v7516_v14, %s7439_s27  ;;  %v6816_v45 = vld [vmem:[%s8716_s1 + $0x40] sm:$0xf] }
 0x174   : > { %v3466_v46 = vpop.permute.xlu0 %3465  ;;  %6795 = vmatmul.mubr.msk.bf16.vlgmr.msra.gmra.mrb[4].mxu0 %vm341_vm2, %v6789_v34 }
 0x175   : > { %v3482_v47 = vsel %vm3481_vm15, %v3464_v44, %v3466_v46  ;;  %v3468_v48 = vpop.permute.xlu1 %3467  ;;  %3549 = vmatprep.mubr.bf16.mxu0 %v7420_v12 }
 0x176   : > { %4842 = vrot.lane.b32.xlu0 %v7523_v16, %s7439_s27  ;;  %v3483_v49 = vsel %vm3481_vm15, %v3466_v46, %v3468_v48  ;;  %v3494_v50 = vsel %vm345_vm1, %v3482_v47, 0 }
 0x177   : > { %4844 = vrot.lane.b32.xlu1 %v7534_v18, %s7439_s27  ;;  %6799 = vmatprep.subr.msk.bf16.mxu0 %vm345_vm1, %v3483_v49 }
 0x178   : > { %v3470_v51 = vpop.permute.xlu0 %3469  ;;  %3518 = vmatpush1.bf16.msra.mxu0 %v3494_v50  ;;  %6797 = vmatmul.mubr.msk.bf16.vlgmr.msra.gmra.mrb[4].mxu1 %vm341_vm2, %v6789_v34 }
 0x179   : > { %v3484_v52 = vsel %vm3481_vm15, %v3468_v48, %v3470_v51  ;;  %v3472_v53 = vpop.permute.xlu1 %3471  ;;  %3590 = vmatprep.mubr.bf16.mxu1 %v7420_v12 }
 0x17a   : > { %4846 = vrot.lane.b32.xlu0 %v8036_v21, %s7439_s27  ;;  %v3485_v55 = vsel %vm3481_vm15, %v3470_v51, %v3472_v53  ;;  %v3500_v56 = vsel %vm345_vm1, %v3484_v52, 0 }
 0x17b   : > { %4848 = vrot.lane.b32.xlu1 %v8121_v59, %s7439_s27  ;;  %6801 = vmatprep.subr.msk.bf16.mxu1 %vm345_vm1, %v3485_v55 }
 0x17c   : > { %v3474_v57 = vpop.permute.xlu0 %3473  ;;  %3559 = vmatpush1.bf16.msra.mxu1 %v3500_v56  ;;  %6800 = vmatmul.mubr.msk.bf16.vlgmr.msra.gmra.mrb[0].mxu0 %vm341_vm2, %v6798_v54 }
 0x17d   : > { %v3486_v58 = vsel %vm3481_vm15, %v3472_v53, %v3474_v57  ;;  %v3476_v19 = vpop.permute.xlu1 %3475  ;;  %3631 = vmatprep.mubr.bf16.mxu0 %v7420_v12 }
 0x17e   : > { %5060 = vrot.lane.b32.xlu0 %v7520_v15, %s7440_s30  ;;  %v3487_v60 = vsel %vm3481_vm15, %v3474_v57, %v3476_v19  ;;  %v3506_v61 = vsel %vm345_vm1, %v3486_v58, 0 }
 0x17f   : > { %5062 = vrot.lane.b32.xlu1 %v7509_v11, %s7440_s30  ;;  %6803 = vmatprep.subr.msk.bf16.mxu0 %vm345_vm1, %v3487_v60 }
 0x180   : > { %v3478_v62 = vpop.permute.xlu0 %3477  ;;  %3600 = vmatpush1.bf16.msra.mxu0 %v3506_v61  ;;  %6802 = vmatmul.mubr.msk.bf16.vlgmr.msra.gmra.mrb[0].mxu1 %vm341_vm2, %v6798_v54 }
 0x181   : > { %v3488_v63 = vsel %vm3481_vm15, %v3476_v19, %v3478_v62  ;;  %v3480_v0 = vpop.permute.xlu1 %3479  ;;  %3672 = vmatprep.mubr.bf16.mxu1 %v7420_v12 }
 0x182   : > { %5064 = vrot.lane.b32.xlu0 %v7528_v17, %s7440_s30  ;;  %v3489_v1 = vsel %vm3481_vm15, %v3478_v62, %v3480_v0  ;;  %v3512_v2 = vsel %vm345_vm1, %v3488_v63, 0 }
 0x183   : > { %5066 = vrot.lane.b32.xlu1 %v7506_v9, %s7440_s30  ;;  %6805 = vmatprep.subr.msk.bf16.mxu1 %vm345_vm1, %v3489_v1 }
 0x184   : > { %v3692_v4 = vpop.permute.xlu0 %3691  ;;  %3641 = vmatpush1.bf16.msra.mxu1 %v3512_v2  ;;  %6804 = vmatmul.mubr.msk.bf16.vlgmr.msra.gmra.mrb[4].mxu0 %vm341_vm2, %v6798_v54 }
 0x185   : > { %v3694_v5 = vpop.permute.xlu1 %3693  ;;  %3777 = vmatprep.mubr.bf16.mxu0 %v7420_v12 }
 0x186   : > { %5068 = vrot.lane.b32.xlu0 %v7516_v14, %s7440_s30  ;;  %v3710_v6 = vsel %vm3709_vm0, %v3692_v4, %v3694_v5 }
 0x187   : > { %5070 = vrot.lane.b32.xlu1 %v7523_v16, %s7440_s30  ;;  %v3722_v20 = vsel %vm345_vm1, %v3710_v6, 0  ;;  %v6825_v6 = vld [vmem:[%s8716_s1 + $0x44] sm:$0xf] }
 0x188   : > { %v3696_v7 = vpop.permute.xlu0 %3695  ;;  %6806 = vmatmul.mubr.msk.bf16.vlgmr.msra.gmra.mrb[4].mxu1 %vm341_vm2, %v6798_v54 }
 0x189   : > { %v3711_v10 = vsel %vm3709_vm0, %v3694_v5, %v3696_v7  ;;  %v3698_v13 = vpop.permute.xlu1 %3697  ;;  %3818 = vmatprep.mubr.bf16.mxu1 %v7420_v12 }
 0x18a   : > { %5072 = vrot.lane.b32.xlu0 %v7534_v18, %s7440_s30  ;;  %6808 = vmatprep.subr.msk.bf16.mxu0 %vm345_vm1, %v3711_v10  ;;  %v3712_v22 = vsel %vm3709_vm0, %v3696_v7, %v3698_v13 }
 0x18b   : > { %3746 = vmatpush1.bf16.msra.mxu0 %v3722_v20  ;;  %5074 = vrot.lane.b32.xlu1 %v8036_v21, %s7440_s30  ;;  %v3728_v27 = vsel %vm345_vm1, %v3712_v22, 0 }
 0x18c   : > { %v3700_v23 = vpop.permute.xlu0 %3699 }
 0x18d   : > { %v3713_v24 = vsel %vm3709_vm0, %v3698_v13, %v3700_v23  ;;  %v3702_v25 = vpop.permute.xlu1 %3701 }
 0x18e   : > { %5076 = vrot.lane.b32.xlu0 %v8121_v59, %s7440_s30  ;;  %6810 = vmatprep.subr.msk.bf16.mxu1 %vm345_vm1, %v3713_v24  ;;  %v3714_v28 = vsel %vm3709_vm0, %v3700_v23, %v3702_v25 }
 0x18f   : > { %3787 = vmatpush1.bf16.msra.mxu1 %v3728_v27  ;;  %5288 = vrot.lane.b32.xlu1 %v7520_v15, %s7441_s7  ;;  %v3734_v31 = vsel %vm345_vm1, %v3714_v28, 0 }
 0x190   : > { %v3704_v29 = vpop.permute.xlu0 %3703  ;;  %6809 = vmatmul.mubr.msk.bf16.vlgmr.msra.gmra.mrb[0].mxu0 %vm341_vm2, %v6807_v26 }
 0x191   : > { %v3715_v30 = vsel %vm3709_vm0, %v3702_v25, %v3704_v29  ;;  %v3706_v8 = vpop.permute.xlu1 %3705  ;;  %3859 = vmatprep.mubr.bf16.mxu0 %v7420_v12 }
 0x192   : > { %5290 = vrot.lane.b32.xlu0 %v7509_v11, %s7441_s7  ;;  %6812 = vmatprep.subr.msk.bf16.mxu0 %vm345_vm1, %v3715_v30  ;;  %v3716_v32 = vsel %vm3709_vm0, %v3704_v29, %v3706_v8 }
 0x193   : > { %3828 = vmatpush1.bf16.msra.mxu0 %v3734_v31  ;;  %5292 = vrot.lane.b32.xlu1 %v7528_v17, %s7441_s7  ;;  %v3740_v36 = vsel %vm345_vm1, %v3716_v32, 0 }
 0x194   : > { %v3708_v33 = vpop.permute.xlu0 %3707  ;;  %6811 = vmatmul.mubr.msk.bf16.vlgmr.msra.gmra.mrb[0].mxu1 %vm341_vm2, %v6807_v26 }
 0x195   : > { %v3717_v34 = vsel %vm3709_vm0, %v3706_v8, %v3708_v33  ;;  %v3920_v35 = vpop.permute.xlu1 %3919  ;;  %3900 = vmatprep.mubr.bf16.mxu1 %v7420_v12 }
 0x196   : > { %5294 = vrot.lane.b32.xlu0 %v7506_v9, %s7441_s7  ;;  %6814 = vmatprep.subr.msk.bf16.mxu1 %vm345_vm1, %v3717_v34 }
 0x197   : > { %3869 = vmatpush1.bf16.msra.mxu1 %v3740_v36  ;;  %5296 = vrot.lane.b32.xlu1 %v7516_v14, %s7441_s7  ;;  %v6834_v36 = vld [vmem:[%s8716_s1 + $0x48] sm:$0xf] }
 0x198   : > { %v3922_v37 = vpop.permute.xlu0 %3921  ;;  %6813 = vmatmul.mubr.msk.bf16.vlgmr.msra.gmra.mrb[4].mxu0 %vm341_vm2, %v6807_v26 }
 0x199   : > { %v3938_v38 = vsel %vm3937_vm3, %v3920_v35, %v3922_v37  ;;  %v3924_v39 = vpop.permute.xlu1 %3923  ;;  %4005 = vmatprep.mubr.bf16.mxu0 %v7420_v12 }
 0x19a   : > { %5298 = vrot.lane.b32.xlu0 %v7523_v16, %s7441_s7  ;;  %v3939_v40 = vsel %vm3937_vm3, %v3922_v37, %v3924_v39  ;;  %v3950_v41 = vsel %vm345_vm1, %v3938_v38, 0 }
 0x19b   : > { %5300 = vrot.lane.b32.xlu1 %v7534_v18, %s7441_s7  ;;  %6817 = vmatprep.subr.msk.bf16.mxu0 %vm345_vm1, %v3939_v40 }
 0x19c   : > { %v3926_v42 = vpop.permute.xlu0 %3925  ;;  %3974 = vmatpush1.bf16.msra.mxu0 %v3950_v41  ;;  %6815 = vmatmul.mubr.msk.bf16.vlgmr.msra.gmra.mrb[4].mxu1 %vm341_vm2, %v6807_v26 }
 0x19d   : > { %v3940_v43 = vsel %vm3937_vm3, %v3924_v39, %v3926_v42  ;;  %v3928_v44 = vpop.permute.xlu1 %3927  ;;  %4046 = vmatprep.mubr.bf16.mxu1 %v7420_v12 }
 0x19e   : > { %5302 = vrot.lane.b32.xlu0 %v8036_v21, %s7441_s7  ;;  %v3941_v46 = vsel %vm3937_vm3, %v3926_v42, %v3928_v44  ;;  %v3956_v47 = vsel %vm345_vm1, %v3940_v43, 0 }
 0x19f   : > { %5304 = vrot.lane.b32.xlu1 %v8121_v59, %s7441_s7  ;;  %6819 = vmatprep.subr.msk.bf16.mxu1 %vm345_vm1, %v3941_v46 }
 0x1a0   : > { %v3930_v48 = vpop.permute.xlu0 %3929  ;;  %4015 = vmatpush1.bf16.msra.mxu1 %v3956_v47  ;;  %6818 = vmatmul.mubr.msk.bf16.vlgmr.msra.gmra.mrb[0].mxu0 %vm341_vm2, %v6816_v45 }
 0x1a1   : > { %v3942_v49 = vsel %vm3937_vm3, %v3928_v44, %v3930_v48  ;;  %v3932_v50 = vpop.permute.xlu1 %3931  ;;  %4087 = vmatprep.mubr.bf16.mxu0 %v7420_v12 }
 0x1a2   : > { %5516 = vrot.lane.b32.xlu0 %v7520_v15, %s7442_s10  ;;  %v3943_v51 = vsel %vm3937_vm3, %v3930_v48, %v3932_v50  ;;  %v3962_v52 = vsel %vm345_vm1, %v3942_v49, 0 }
 0x1a3   : > { %5518 = vrot.lane.b32.xlu1 %v7509_v11, %s7442_s10  ;;  %6821 = vmatprep.subr.msk.bf16.mxu0 %vm345_vm1, %v3943_v51 }
 0x1a4   : > { %v3934_v53 = vpop.permute.xlu0 %3933  ;;  %4056 = vmatpush1.bf16.msra.mxu0 %v3962_v52  ;;  %6820 = vmatmul.mubr.msk.bf16.vlgmr.msra.gmra.mrb[0].mxu1 %vm341_vm2, %v6816_v45 }
 0x1a5   : > { %v3944_v54 = vsel %vm3937_vm3, %v3932_v50, %v3934_v53  ;;  %v3936_v55 = vpop.permute.xlu1 %3935  ;;  %4128 = vmatprep.mubr.bf16.mxu1 %v7420_v12 }
 0x1a6   : > { %5520 = vrot.lane.b32.xlu0 %v7528_v17, %s7442_s10  ;;  %v3945_v56 = vsel %vm3937_vm3, %v3934_v53, %v3936_v55  ;;  %v3968_v57 = vsel %vm345_vm1, %v3944_v54, 0 }
 0x1a7   : > { %5522 = vrot.lane.b32.xlu1 %v7506_v9, %s7442_s10  ;;  %6823 = vmatprep.subr.msk.bf16.mxu1 %vm345_vm1, %v3945_v56 }
 0x1a8   : > { %v4148_v58 = vpop.permute.xlu0 %4147  ;;  %4097 = vmatpush1.bf16.msra.mxu1 %v3968_v57  ;;  %6822 = vmatmul.mubr.msk.bf16.vlgmr.msra.gmra.mrb[4].mxu0 %vm341_vm2, %v6816_v45 }
 0x1a9   : > { %v4150_v19 = vpop.permute.xlu1 %4149  ;;  %4233 = vmatprep.mubr.bf16.mxu0 %v7420_v12 }
 0x1aa   : > { %5524 = vrot.lane.b32.xlu0 %v7516_v14, %s7442_s10  ;;  %v4166_v60 = vsel %vm4165_vm4, %v4148_v58, %v4150_v19 }
 0x1ab   : > { %5526 = vrot.lane.b32.xlu1 %v7523_v16, %s7442_s10  ;;  %v4178_v0 = vsel %vm345_vm1, %v4166_v60, 0  ;;  %v6843_v60 = vld [vmem:[%s8716_s1 + $0x4c] sm:$0xf] }
 0x1ac   : > { %v4152_v61 = vpop.permute.xlu0 %4151  ;;  %6824 = vmatmul.mubr.msk.bf16.vlgmr.msra.gmra.mrb[4].mxu1 %vm341_vm2, %v6816_v45 }
 0x1ad   : > { %v4167_v62 = vsel %vm4165_vm4, %v4150_v19, %v4152_v61  ;;  %v4154_v63 = vpop.permute.xlu1 %4153  ;;  %4274 = vmatprep.mubr.bf16.mxu1 %v7420_v12 }
 0x1ae   : > { %5528 = vrot.lane.b32.xlu0 %v7534_v18, %s7442_s10  ;;  %6826 = vmatprep.subr.msk.bf16.mxu0 %vm345_vm1, %v4167_v62  ;;  %v4168_v1 = vsel %vm4165_vm4, %v4152_v61, %v4154_v63 }
 0x1af   : > { %4202 = vmatpush1.bf16.msra.mxu0 %v4178_v0  ;;  %5530 = vrot.lane.b32.xlu1 %v8036_v21, %s7442_s10  ;;  %v4184_v7 = vsel %vm345_vm1, %v4168_v1, 0 }
 0x1b0   : > { %v4156_v2 = vpop.permute.xlu0 %4155 }
 0x1b1   : > { %v4169_v4 = vsel %vm4165_vm4, %v4154_v63, %v4156_v2  ;;  %v4158_v5 = vpop.permute.xlu1 %4157 }
 0x1b2   : > { %5532 = vrot.lane.b32.xlu0 %v8121_v59, %s7442_s10  ;;  %6828 = vmatprep.subr.msk.bf16.mxu1 %vm345_vm1, %v4169_v4  ;;  %v4170_v10 = vsel %vm4165_vm4, %v4156_v2, %v4158_v5 }
 0x1b3   : > { %4243 = vmatpush1.bf16.msra.mxu1 %v4184_v7  ;;  %5744 = vrot.lane.b32.xlu1 %v7520_v15, %s7443_s13  ;;  %v4190_v23 = vsel %vm345_vm1, %v4170_v10, 0 }
 0x1b4   : > { %v4160_v13 = vpop.permute.xlu0 %4159  ;;  %6827 = vmatmul.mubr.msk.bf16.vlgmr.msra.gmra.mrb[0].mxu0 %vm341_vm2, %v6825_v6 }
 0x1b5   : > { %v4171_v20 = vsel %vm4165_vm4, %v4158_v5, %v4160_v13  ;;  %v4162_v22 = vpop.permute.xlu1 %4161  ;;  %4315 = vmatprep.mubr.bf16.mxu0 %v7420_v12 }
 0x1b6   : > { %5746 = vrot.lane.b32.xlu0 %v7509_v11, %s7443_s13  ;;  %6830 = vmatprep.subr.msk.bf16.mxu0 %vm345_vm1, %v4171_v20  ;;  %v4172_v24 = vsel %vm4165_vm4, %v4160_v13, %v4162_v22 }
 0x1b7   : > { %4284 = vmatpush1.bf16.msra.mxu0 %v4190_v23  ;;  %5748 = vrot.lane.b32.xlu1 %v7528_v17, %s7443_s13  ;;  %v4196_v28 = vsel %vm345_vm1, %v4172_v24, 0 }
 0x1b8   : > { %v4164_v25 = vpop.permute.xlu0 %4163  ;;  %6829 = vmatmul.mubr.msk.bf16.vlgmr.msra.gmra.mrb[0].mxu1 %vm341_vm2, %v6825_v6 }
 0x1b9   : > { %v4173_v26 = vsel %vm4165_vm4, %v4162_v22, %v4164_v25  ;;  %v4377_v27 = vpop.permute.xlu1 %4376  ;;  %4356 = vmatprep.mubr.bf16.mxu1 %v7420_v12 }
 0x1ba   : > { %5750 = vrot.lane.b32.xlu0 %v7506_v9, %s7443_s13  ;;  %6832 = vmatprep.subr.msk.bf16.mxu1 %vm345_vm1, %v4173_v26 }
 0x1bb   : > { %4325 = vmatpush1.bf16.msra.mxu1 %v4196_v28  ;;  %5752 = vrot.lane.b32.xlu1 %v7516_v14, %s7443_s13 }
 0x1bc   : > { %v4379_v29 = vpop.permute.xlu0 %4378  ;;  %6831 = vmatmul.mubr.msk.bf16.vlgmr.msra.gmra.mrb[4].mxu0 %vm341_vm2, %v6825_v6 }
 0x1bd   : > { %v4395_v30 = vsel %vm4394_vm5, %v4377_v27, %v4379_v29  ;;  %v4381_v8 = vpop.permute.xlu1 %4380  ;;  %4462 = vmatprep.mubr.bf16.mxu0 %v7420_v12 }
 0x1be   : > { %5754 = vrot.lane.b32.xlu0 %v7523_v16, %s7443_s13  ;;  %v4396_v31 = vsel %vm4394_vm5, %v4379_v29, %v4381_v8  ;;  %v4407_v32 = vsel %vm345_vm1, %v4395_v30, 0 }
 0x1bf   : > { %5756 = vrot.lane.b32.xlu1 %v7534_v18, %s7443_s13  ;;  %6835 = vmatprep.subr.msk.bf16.mxu0 %vm345_vm1, %v4396_v31 }
 0x1c0   : > { %v4383_v33 = vpop.permute.xlu0 %4382  ;;  %4431 = vmatpush1.bf16.msra.mxu0 %v4407_v32  ;;  %6833 = vmatmul.mubr.msk.bf16.vlgmr.msra.gmra.mrb[4].mxu1 %vm341_vm2, %v6825_v6 }
 0x1c1   : > { %v4397_v34 = vsel %vm4394_vm5, %v4381_v8, %v4383_v33  ;;  %v4385_v35 = vpop.permute.xlu1 %4384  ;;  %4503 = vmatprep.mubr.bf16.mxu1 %v7420_v12 }
 0x1c2   : > { %5758 = vrot.lane.b32.xlu0 %v8036_v21, %s7443_s13  ;;  %v4398_v37 = vsel %vm4394_vm5, %v4383_v33, %v4385_v35  ;;  %v4413_v38 = vsel %vm345_vm1, %v4397_v34, 0 }
 0x1c3   : > { %5760 = vrot.lane.b32.xlu1 %v8121_v59, %s7443_s13  ;;  %6837 = vmatprep.subr.msk.bf16.mxu1 %vm345_vm1, %v4398_v37 }
 0x1c4   : > { %v4387_v39 = vpop.permute.xlu0 %4386  ;;  %4472 = vmatpush1.bf16.msra.mxu1 %v4413_v38  ;;  %6836 = vmatmul.mubr.msk.bf16.vlgmr.msra.gmra.mrb[0].mxu0 %vm341_vm2, %v6834_v36 }
 0x1c5   : > { %v4399_v40 = vsel %vm4394_vm5, %v4385_v35, %v4387_v39  ;;  %v4389_v41 = vpop.permute.xlu1 %4388  ;;  %4544 = vmatprep.mubr.bf16.mxu0 %v7420_v12 }
 0x1c6   : > { %5972 = vrot.lane.b32.xlu0 %v7520_v15, %s7444_s19  ;;  %v4400_v42 = vsel %vm4394_vm5, %v4387_v39, %v4389_v41  ;;  %v4419_v43 = vsel %vm345_vm1, %v4399_v40, 0  ;;  %v6861_v39 = vld [vmem:[%s8716_s1 + $0x54] sm:$0xf] }
 0x1c7   : > { %5974 = vrot.lane.b32.xlu1 %v7509_v11, %s7444_s19  ;;  %6839 = vmatprep.subr.msk.bf16.mxu0 %vm345_vm1, %v4400_v42 }
 0x1c8   : > { %v4391_v44 = vpop.permute.xlu0 %4390  ;;  %4513 = vmatpush1.bf16.msra.mxu0 %v4419_v43  ;;  %6838 = vmatmul.mubr.msk.bf16.vlgmr.msra.gmra.mrb[0].mxu1 %vm341_vm2, %v6834_v36 }
 0x1c9   : > { %v4401_v45 = vsel %vm4394_vm5, %v4389_v41, %v4391_v44  ;;  %v4393_v46 = vpop.permute.xlu1 %4392  ;;  %4585 = vmatprep.mubr.bf16.mxu1 %v7420_v12 }
 0x1ca   : > { %5976 = vrot.lane.b32.xlu0 %v7528_v17, %s7444_s19  ;;  %v4402_v47 = vsel %vm4394_vm5, %v4391_v44, %v4393_v46  ;;  %v4425_v48 = vsel %vm345_vm1, %v4401_v45, 0 }
 0x1cb   : > { %5978 = vrot.lane.b32.xlu1 %v7506_v9, %s7444_s19  ;;  %6841 = vmatprep.subr.msk.bf16.mxu1 %vm345_vm1, %v4402_v47 }
 0x1cc   : > { %v4605_v49 = vpop.permute.xlu0 %4604  ;;  %4554 = vmatpush1.bf16.msra.mxu1 %v4425_v48  ;;  %6840 = vmatmul.mubr.msk.bf16.vlgmr.msra.gmra.mrb[4].mxu0 %vm341_vm2, %v6834_v36 }
 0x1cd   : > { %v4607_v50 = vpop.permute.xlu1 %4606  ;;  %4690 = vmatprep.mubr.bf16.mxu0 %v7420_v12 }
 0x1ce   : > { %5980 = vrot.lane.b32.xlu0 %v7516_v14, %s7444_s19  ;;  %v4623_v51 = vsel %vm4622_vm6, %v4605_v49, %v4607_v50 }
 0x1cf   : > { %5982 = vrot.lane.b32.xlu1 %v7523_v16, %s7444_s19  ;;  %v4635_v55 = vsel %vm345_vm1, %v4623_v51, 0 }
 0x1d0   : > { %v4609_v52 = vpop.permute.xlu0 %4608  ;;  %6842 = vmatmul.mubr.msk.bf16.vlgmr.msra.gmra.mrb[4].mxu1 %vm341_vm2, %v6834_v36 }
 0x1d1   : > { %v4624_v53 = vsel %vm4622_vm6, %v4607_v50, %v4609_v52  ;;  %v4611_v54 = vpop.permute.xlu1 %4610  ;;  %4731 = vmatprep.mubr.bf16.mxu1 %v7420_v12 }
 0x1d2   : > { %5984 = vrot.lane.b32.xlu0 %v7534_v18, %s7444_s19  ;;  %6844 = vmatprep.subr.msk.bf16.mxu0 %vm345_vm1, %v4624_v53  ;;  %v4625_v56 = vsel %vm4622_vm6, %v4609_v52, %v4611_v54 }
 0x1d3   : > { %4659 = vmatpush1.bf16.msra.mxu0 %v4635_v55  ;;  %5986 = vrot.lane.b32.xlu1 %v8036_v21, %s7444_s19  ;;  %v4641_v61 = vsel %vm345_vm1, %v4625_v56, 0 }
 0x1d4   : > { %v4613_v57 = vpop.permute.xlu0 %4612 }
 0x1d5   : > { %v4626_v58 = vsel %vm4622_vm6, %v4611_v54, %v4613_v57  ;;  %v4615_v19 = vpop.permute.xlu1 %4614 }
 0x1d6   : > { %5988 = vrot.lane.b32.xlu0 %v8121_v59, %s7444_s19  ;;  %6846 = vmatprep.subr.msk.bf16.mxu1 %vm345_vm1, %v4626_v58  ;;  %v4627_v62 = vsel %vm4622_vm6, %v4613_v57, %v4615_v19 }
 0x1d7   : > { %4700 = vmatpush1.bf16.msra.mxu1 %v4641_v61  ;;  %6200 = vrot.lane.b32.xlu1 %v7520_v15, %s7445_s23  ;;  %v4647_v2 = vsel %vm345_vm1, %v4627_v62, 0 }
 0x1d8   : > { %v4617_v63 = vpop.permute.xlu0 %4616  ;;  %6845 = vmatmul.mubr.msk.bf16.vlgmr.msra.gmra.mrb[0].mxu0 %vm341_vm2, %v6843_v60 }
 0x1d9   : > { %v4628_v0 = vsel %vm4622_vm6, %v4615_v19, %v4617_v63  ;;  %v4619_v1 = vpop.permute.xlu1 %4618  ;;  %4772 = vmatprep.mubr.bf16.mxu0 %v7420_v12 }
 0x1da   : > { %6202 = vrot.lane.b32.xlu0 %v7509_v11, %s7445_s23  ;;  %6848 = vmatprep.subr.msk.bf16.mxu0 %vm345_vm1, %v4628_v0  ;;  %v4629_v4 = vsel %vm4622_vm6, %v4617_v63, %v4619_v1 }
 0x1db   : > { %4741 = vmatpush1.bf16.msra.mxu0 %v4647_v2  ;;  %6204 = vrot.lane.b32.xlu1 %v7528_v17, %s7445_s23  ;;  %v4653_v7 = vsel %vm345_vm1, %v4629_v4, 0 }
 0x1dc   : > { %v4621_v15 = vpop.permute.xlu0 %4620  ;;  %6847 = vmatmul.mubr.msk.bf16.vlgmr.msra.gmra.mrb[0].mxu1 %vm341_vm2, %v6843_v60 }
 0x1dd   : > { %v4630_v5 = vsel %vm4622_vm6, %v4619_v1, %v4621_v15  ;;  %v4833_v6 = vpop.permute.xlu1 %4832  ;;  %4813 = vmatprep.mubr.bf16.mxu1 %v7420_v12 }
 0x1de   : > { %6206 = vrot.lane.b32.xlu0 %v7506_v9, %s7445_s23  ;;  %6850 = vmatprep.subr.msk.bf16.mxu1 %vm345_vm1, %v4630_v5 }
 0x1df   : > { %4782 = vmatpush1.bf16.msra.mxu1 %v4653_v7  ;;  %6208 = vrot.lane.b32.xlu1 %v7516_v14, %s7445_s23 }
 0x1e0   : > { %v4835_v11 = vpop.permute.xlu0 %4834  ;;  %6849 = vmatmul.mubr.msk.bf16.vlgmr.msra.gmra.mrb[4].mxu0 %vm341_vm2, %v6843_v60 }
 0x1e1   : > { %v4851_v17 = vsel %vm4850_vm7, %v4833_v6, %v4835_v11  ;;  %v4837_v10 = vpop.permute.xlu1 %4836  ;;  %4918 = vmatprep.mubr.bf16.mxu0 %v7420_v12 }
 0x1e2   : > { %6210 = vrot.lane.b32.xlu0 %v7523_v16, %s7445_s23  ;;  %v4852_v9 = vsel %vm4850_vm7, %v4835_v11, %v4837_v10  ;;  %v4863_v13 = vsel %vm345_vm1, %v4851_v17, 0  ;;  %v6852_v16 = vld [vmem:[%s8716_s1 + $0x50] sm:$0xf] }
 0x1e3   : > { %6212 = vrot.lane.b32.xlu1 %v7534_v18, %s7445_s23  ;;  %6853 = vmatprep.subr.msk.bf16.mxu0 %vm345_vm1, %v4852_v9 }
 0x1e4   : > { %v4839_v14 = vpop.permute.xlu0 %4838  ;;  %4887 = vmatpush1.bf16.msra.mxu0 %v4863_v13  ;;  %6851 = vmatmul.mubr.msk.bf16.vlgmr.msra.gmra.mrb[4].mxu1 %vm341_vm2, %v6843_v60  ;;  %v6870_v60 = vld [vmem:[%s8716_s1 + $0x58] sm:$0xf] }
 0x1e5   : > { %v4853_v20 = vsel %vm4850_vm7, %v4837_v10, %v4839_v14  ;;  %v4841_v22 = vpop.permute.xlu1 %4840  ;;  %4959 = vmatprep.mubr.bf16.mxu1 %v7420_v12 }
 0x1e6   : > { %6214 = vrot.lane.b32.xlu0 %v8036_v21, %s7445_s23  ;;  %v4854_v18 = vsel %vm4850_vm7, %v4839_v14, %v4841_v22  ;;  %v4869_v23 = vsel %vm345_vm1, %v4853_v20, 0 }
 0x1e7   : > { %6216 = vrot.lane.b32.xlu1 %v8121_v59, %s7445_s23  ;;  %6855 = vmatprep.subr.msk.bf16.mxu1 %vm345_vm1, %v4854_v18 }
 0x1e8   : > { %v4843_v24 = vpop.permute.xlu0 %4842  ;;  %4928 = vmatpush1.bf16.msra.mxu1 %v4869_v23  ;;  %6854 = vmatmul.mubr.msk.bf16.vlgmr.msra.gmra.mrb[0].mxu0 %vm341_vm2, %v6852_v16 }
 0x1e9   : > { %v4855_v25 = vsel %vm4850_vm7, %v4841_v22, %v4843_v24  ;;  %v4845_v26 = vpop.permute.xlu1 %4844  ;;  %5000 = vmatprep.mubr.bf16.mxu0 %v7420_v12 }
 0x1ea   : > { %v4856_v21 = vsel %vm4850_vm7, %v4843_v24, %v4845_v26  ;;  %v4875_v27 = vsel %vm345_vm1, %v4855_v25, 0  ;;  %v6879_v24 = vld [vmem:[%s8716_s1 + $0x5c] sm:$0xf] }
 0x1eb   : > { %6857 = vmatprep.subr.msk.bf16.mxu0 %vm345_vm1, %v4856_v21 }
 0x1ec   : > { %v4847_v28 = vpop.permute.xlu0 %4846  ;;  %4969 = vmatpush1.bf16.msra.mxu0 %v4875_v27  ;;  %6856 = vmatmul.mubr.msk.bf16.vlgmr.msra.gmra.mrb[0].mxu1 %vm341_vm2, %v6852_v16 }
 0x1ed   : > { %v4857_v59 = vsel %vm4850_vm7, %v4845_v26, %v4847_v28  ;;  %v4849_v29 = vpop.permute.xlu1 %4848  ;;  %5041 = vmatprep.mubr.bf16.mxu1 %v7420_v12 }
 0x1ee   : > { %v4858_v30 = vsel %vm4850_vm7, %v4847_v28, %v4849_v29  ;;  %v4881_v8 = vsel %vm345_vm1, %v4857_v59, 0 }
 0x1ef   : > { %6859 = vmatprep.subr.msk.bf16.mxu1 %vm345_vm1, %v4858_v30 }
 0x1f0   : > { %v5061_v31 = vpop.permute.xlu0 %5060  ;;  %5010 = vmatpush1.bf16.msra.mxu1 %v4881_v8  ;;  %6858 = vmatmul.mubr.msk.bf16.vlgmr.msra.gmra.mrb[4].mxu0 %vm341_vm2, %v6852_v16 }
 0x1f1   : > { %v5063_v32 = vpop.permute.xlu1 %5062  ;;  %5146 = vmatprep.mubr.bf16.mxu0 %v7420_v12 }
 0x1f2   : > { %v5079_v33 = vsel %vm5078_vm8, %v5061_v31, %v5063_v32 }
 0x1f3   : > { %v5091_v37 = vsel %vm345_vm1, %v5079_v33, 0 }
 0x1f4   : > { %v5065_v34 = vpop.permute.xlu0 %5064  ;;  %6860 = vmatmul.mubr.msk.bf16.vlgmr.msra.gmra.mrb[4].mxu1 %vm341_vm2, %v6852_v16 }
 0x1f5   : > { %v5080_v35 = vsel %vm5078_vm8, %v5063_v32, %v5065_v34  ;;  %v5067_v36 = vpop.permute.xlu1 %5066  ;;  %5187 = vmatprep.mubr.bf16.mxu1 %v7420_v12 }
 0x1f6   : > { %6862 = vmatprep.subr.msk.bf16.mxu0 %vm345_vm1, %v5080_v35  ;;  %v5081_v38 = vsel %vm5078_vm8, %v5065_v34, %v5067_v36 }
 0x1f7   : > { %5115 = vmatpush1.bf16.msra.mxu0 %v5091_v37  ;;  %v5097_v43 = vsel %vm345_vm1, %v5081_v38, 0 }
 0x1f8   : > { %v5069_v40 = vpop.permute.xlu0 %5068 }
 0x1f9   : > { %v5082_v41 = vsel %vm5078_vm8, %v5067_v36, %v5069_v40  ;;  %v5071_v42 = vpop.permute.xlu1 %5070 }
 0x1fa   : > { %6864 = vmatprep.subr.msk.bf16.mxu1 %vm345_vm1, %v5082_v41  ;;  %6863 = vmatmul.mubr.msk.bf16.vlgmr.msra.gmra.mrb[0].mxu0 %vm341_vm2, %v6861_v39  ;;  %v5083_v44 = vsel %vm5078_vm8, %v5069_v40, %v5071_v42 }
 0x1fb   : > { %5156 = vmatpush1.bf16.msra.mxu1 %v5097_v43  ;;  %5228 = vmatprep.mubr.bf16.mxu0 %v7420_v12  ;;  %v5103_v48 = vsel %vm345_vm1, %v5083_v44, 0 }
 0x1fc   : > { %v5073_v45 = vpop.permute.xlu0 %5072 }
 0x1fd   : > { %v5084_v46 = vsel %vm5078_vm8, %v5071_v42, %v5073_v45  ;;  %v5075_v47 = vpop.permute.xlu1 %5074  ;;  %v6888_v42 = vld [vmem:[%s8716_s1 + $0x60] sm:$0xf] }
 0x1fe   : > { %6866 = vmatprep.subr.msk.bf16.mxu0 %vm345_vm1, %v5084_v46  ;;  %6865 = vmatmul.mubr.msk.bf16.vlgmr.msra.gmra.mrb[0].mxu1 %vm341_vm2, %v6861_v39  ;;  %v5085_v49 = vsel %vm5078_vm8, %v5073_v45, %v5075_v47 }
 0x1ff   : > { %5197 = vmatpush1.bf16.msra.mxu0 %v5103_v48  ;;  %5269 = vmatprep.mubr.bf16.mxu1 %v7420_v12  ;;  %v5109_v53 = vsel %vm345_vm1, %v5085_v49, 0 }
 0x200   : > { %v5077_v50 = vpop.permute.xlu0 %5076 }
 0x201   : > { %v5086_v51 = vsel %vm5078_vm8, %v5075_v47, %v5077_v50  ;;  %v5289_v52 = vpop.permute.xlu1 %5288 }
 0x202   : > { %6868 = vmatprep.subr.msk.bf16.mxu1 %vm345_vm1, %v5086_v51  ;;  %6867 = vmatmul.mubr.msk.bf16.vlgmr.msra.gmra.mrb[4].mxu0 %vm341_vm2, %v6861_v39 }
 0x203   : > { %5238 = vmatpush1.bf16.msra.mxu1 %v5109_v53  ;;  %5374 = vmatprep.mubr.bf16.mxu0 %v7420_v12 }
 0x204   : > { %v5291_v54 = vpop.permute.xlu0 %5290 }
 0x205   : > { %v5307_v55 = vsel %vm5306_vm9, %v5289_v52, %v5291_v54  ;;  %v5293_v56 = vpop.permute.xlu1 %5292 }
 0x206   : > { %v5308_v57 = vsel %vm5306_vm9, %v5291_v54, %v5293_v56  ;;  %6869 = vmatmul.mubr.msk.bf16.vlgmr.msra.gmra.mrb[4].mxu1 %vm341_vm2, %v6861_v39  ;;  %v5319_v58 = vsel %vm345_vm1, %v5307_v55, 0 }
 0x207   : > { %6871 = vmatprep.subr.msk.bf16.mxu0 %vm345_vm1, %v5308_v57  ;;  %5415 = vmatprep.mubr.bf16.mxu1 %v7420_v12 }
 0x208   : > { %v5295_v19 = vpop.permute.xlu0 %5294  ;;  %5343 = vmatpush1.bf16.msra.mxu0 %v5319_v58 }
 0x209   : > { %v5309_v61 = vsel %vm5306_vm9, %v5293_v56, %v5295_v19  ;;  %v5297_v62 = vpop.permute.xlu1 %5296 }
 0x20a   : > { %v5310_v63 = vsel %vm5306_vm9, %v5295_v19, %v5297_v62  ;;  %v5325_v0 = vsel %vm345_vm1, %v5309_v61, 0 }
 0x20b   : > { %6873 = vmatprep.subr.msk.bf16.mxu1 %vm345_vm1, %v5310_v63  ;;  %6872 = vmatmul.mubr.msk.bf16.vlgmr.msra.gmra.mrb[0].mxu0 %vm341_vm2, %v6870_v60 }
 0x20c   : > { %v5299_v1 = vpop.permute.xlu0 %5298  ;;  %5384 = vmatpush1.bf16.msra.mxu1 %v5325_v0  ;;  %5456 = vmatprep.mubr.bf16.mxu0 %v7420_v12 }
 0x20d   : > { %v5311_v2 = vsel %vm5306_vm9, %v5297_v62, %v5299_v1  ;;  %v5301_v4 = vpop.permute.xlu1 %5300 }
 0x20e   : > { %v5312_v15 = vsel %vm5306_vm9, %v5299_v1, %v5301_v4  ;;  %v5331_v5 = vsel %vm345_vm1, %v5311_v2, 0  ;;  %v6897_v1 = vld [vmem:[%s8716_s1 + $0x64] sm:$0xf] }
 0x20f   : > { %6875 = vmatprep.subr.msk.bf16.mxu0 %vm345_vm1, %v5312_v15  ;;  %6874 = vmatmul.mubr.msk.bf16.vlgmr.msra.gmra.mrb[0].mxu1 %vm341_vm2, %v6870_v60 }
 0x210   : > { %v5303_v6 = vpop.permute.xlu0 %5302  ;;  %5425 = vmatpush1.bf16.msra.mxu0 %v5331_v5  ;;  %5497 = vmatprep.mubr.bf16.mxu1 %v7420_v12 }
 0x211   : > { %v5313_v7 = vsel %vm5306_vm9, %v5301_v4, %v5303_v6  ;;  %v5305_v11 = vpop.permute.xlu1 %5304 }
 0x212   : > { %v5314_v17 = vsel %vm5306_vm9, %v5303_v6, %v5305_v11  ;;  %v5337_v10 = vsel %vm345_vm1, %v5313_v7, 0 }
 0x213   : > { %6877 = vmatprep.subr.msk.bf16.mxu1 %vm345_vm1, %v5314_v17  ;;  %6876 = vmatmul.mubr.msk.bf16.vlgmr.msra.gmra.mrb[4].mxu0 %vm341_vm2, %v6870_v60 }
 0x214   : > { %v5517_v9 = vpop.permute.xlu0 %5516  ;;  %5466 = vmatpush1.bf16.msra.mxu1 %v5337_v10  ;;  %5602 = vmatprep.mubr.bf16.mxu0 %v7420_v12 }
 0x215   : > { %v5519_v13 = vpop.permute.xlu1 %5518 }
 0x216   : > { %v5535_v14 = vsel %vm5534_vm10, %v5517_v9, %v5519_v13 }
 0x217   : > { %6878 = vmatmul.mubr.msk.bf16.vlgmr.msra.gmra.mrb[4].mxu1 %vm341_vm2, %v6870_v60  ;;  %v5547_v18 = vsel %vm345_vm1, %v5535_v14, 0 }
 0x218   : > { %v5521_v20 = vpop.permute.xlu0 %5520  ;;  %5643 = vmatprep.mubr.bf16.mxu1 %v7420_v12 }
 0x219   : > { %v5536_v22 = vsel %vm5534_vm10, %v5519_v13, %v5521_v20  ;;  %v5523_v16 = vpop.permute.xlu1 %5522 }
 0x21a   : > { %6880 = vmatprep.subr.msk.bf16.mxu0 %vm345_vm1, %v5536_v22  ;;  %v5537_v23 = vsel %vm5534_vm10, %v5521_v20, %v5523_v16 }
 0x21b   : > { %5571 = vmatpush1.bf16.msra.mxu0 %v5547_v18  ;;  %v5553_v27 = vsel %vm345_vm1, %v5537_v23, 0 }
 0x21c   : > { %v5525_v25 = vpop.permute.xlu0 %5524 }
 0x21d   : > { %v5538_v26 = vsel %vm5534_vm10, %v5523_v16, %v5525_v25  ;;  %v5527_v21 = vpop.permute.xlu1 %5526 }
 0x21e   : > { %6882 = vmatprep.subr.msk.bf16.mxu1 %vm345_vm1, %v5538_v26  ;;  %6881 = vmatmul.mubr.msk.bf16.vlgmr.msra.gmra.mrb[0].mxu0 %vm341_vm2, %v6879_v24  ;;  %v5539_v28 = vsel %vm5534_vm10, %v5525_v25, %v5527_v21 }
 0x21f   : > { %5612 = vmatpush1.bf16.msra.mxu1 %v5553_v27  ;;  %5684 = vmatprep.mubr.bf16.mxu0 %v7420_v12  ;;  %v5559_v8 = vsel %vm345_vm1, %v5539_v28, 0 }
 0x220   : > { %v5529_v59 = vpop.permute.xlu0 %5528 }
 0x221   : > { %v5540_v29 = vsel %vm5534_vm10, %v5527_v21, %v5529_v59  ;;  %v5531_v30 = vpop.permute.xlu1 %5530  ;;  %v6906_v21 = vld [vmem:[%s8716_s1 + $0x68] sm:$0xf] }
 0x222   : > { %6884 = vmatprep.subr.msk.bf16.mxu0 %vm345_vm1, %v5540_v29  ;;  %6883 = vmatmul.mubr.msk.bf16.vlgmr.msra.gmra.mrb[0].mxu1 %vm341_vm2, %v6879_v24  ;;  %v5541_v31 = vsel %vm5534_vm10, %v5529_v59, %v5531_v30 }
 0x223   : > { %5653 = vmatpush1.bf16.msra.mxu0 %v5559_v8  ;;  %5725 = vmatprep.mubr.bf16.mxu1 %v7420_v12  ;;  %v5565_v35 = vsel %vm345_vm1, %v5541_v31, 0 }
 0x224   : > { %v5533_v32 = vpop.permute.xlu0 %5532 }
 0x225   : > { %v5542_v33 = vsel %vm5534_vm10, %v5531_v30, %v5533_v32  ;;  %v5745_v34 = vpop.permute.xlu1 %5744 }
 0x226   : > { %6886 = vmatprep.subr.msk.bf16.mxu1 %vm345_vm1, %v5542_v33  ;;  %6885 = vmatmul.mubr.msk.bf16.vlgmr.msra.gmra.mrb[4].mxu0 %vm341_vm2, %v6879_v24 }
 0x227   : > { %5694 = vmatpush1.bf16.msra.mxu1 %v5565_v35  ;;  %5830 = vmatprep.mubr.bf16.mxu0 %v7420_v12 }
 0x228   : > { %v5747_v36 = vpop.permute.xlu0 %5746 }
 0x229   : > { %v5763_v37 = vsel %vm5762_vm11, %v5745_v34, %v5747_v36  ;;  %v5749_v38 = vpop.permute.xlu1 %5748 }
 0x22a   : > { %v5764_v39 = vsel %vm5762_vm11, %v5747_v36, %v5749_v38  ;;  %6887 = vmatmul.mubr.msk.bf16.vlgmr.msra.gmra.mrb[4].mxu1 %vm341_vm2, %v6879_v24  ;;  %v5775_v40 = vsel %vm345_vm1, %v5763_v37, 0 }
 0x22b   : > { %6889 = vmatprep.subr.msk.bf16.mxu0 %vm345_vm1, %v5764_v39  ;;  %5871 = vmatprep.mubr.bf16.mxu1 %v7420_v12  ;;  %v7446_v39 = vmov 0.0  }
 0x22c   : > { %v5751_v41 = vpop.permute.xlu0 %5750  ;;  %5799 = vmatpush1.bf16.msra.mxu0 %v5775_v40  ;;  %257 = vst.msk [vmem:[#allocation2] sm:$0xff] %vm256_vm14, %v7446_v39  ;;  %258 = vst.msk [vmem:[#allocation3] sm:$0xff] %vm256_vm14, %v7446_v39  ;;  %v6434_v40 = vld [vmem:[%s8717_s2] sm:$0xff] }
 0x22d   : > { %v5765_v43 = vsel %vm5762_vm11, %v5749_v38, %v5751_v41  ;;  %v5753_v44 = vpop.permute.xlu1 %5752 }
 0x22e   : > { %v5766_v45 = vsel %vm5762_vm11, %v5751_v41, %v5753_v44  ;;  %v5781_v46 = vsel %vm345_vm1, %v5765_v43, 0  ;;  %v6442_v41 = vsub.s32 1, %v7493_v3  ;;  %v6446_v43 = vsub.s32 2, %v7493_v3 }
 0x22f   : > { %6891 = vmatprep.subr.msk.bf16.mxu1 %vm345_vm1, %v5766_v45  ;;  %6890 = vmatmul.mubr.msk.bf16.vlgmr.msra.gmra.mrb[0].mxu0 %vm341_vm2, %v6888_v42  ;;  %v6450_v45 = vsub.s32 3, %v7493_v3 }
 0x230   : > { %v5755_v47 = vpop.permute.xlu0 %5754  ;;  %5840 = vmatpush1.bf16.msra.mxu1 %v5781_v46  ;;  %5912 = vmatprep.mubr.bf16.mxu0 %v7420_v12 }
 0x231   : > { %v5767_v48 = vsel %vm5762_vm11, %v5753_v44, %v5755_v47  ;;  %v5757_v49 = vpop.permute.xlu1 %5756  ;;  %v6443_v44 = vrot.slane %v6434_v40, %v6442_v41 }
 0x232   : > { %v5768_v50 = vsel %vm5762_vm11, %v5755_v47, %v5757_v49  ;;  %v5787_v51 = vsel %vm345_vm1, %v5767_v48, 0 }
 0x233   : > { %6893 = vmatprep.subr.msk.bf16.mxu0 %vm345_vm1, %v5768_v50  ;;  %6892 = vmatmul.mubr.msk.bf16.vlgmr.msra.gmra.mrb[0].mxu1 %vm341_vm2, %v6888_v42  ;;  %v6454_v50 = vsub.s32 4, %v7493_v3  ;;  %v6484_v39 = vld [vmem:[#allocation2] sm:$0xff] }
 0x234   : > { %v5759_v52 = vpop.permute.xlu0 %5758  ;;  %5881 = vmatpush1.bf16.msra.mxu0 %v5787_v51  ;;  %5953 = vmatprep.mubr.bf16.mxu1 %v7420_v12 }
 0x235   : > { %v5769_v53 = vsel %vm5762_vm11, %v5757_v49, %v5759_v52  ;;  %v5761_v54 = vpop.permute.xlu1 %5760  ;;  %v6447_v49 = vrot.slane %v6434_v40, %v6446_v43 }
 0x236   : > { %v5770_v55 = vsel %vm5762_vm11, %v5759_v52, %v5761_v54  ;;  %v5793_v56 = vsel %vm345_vm1, %v5769_v53, 0  ;;  %v6451_v53 = vrot.slane %v6434_v40, %v6450_v45  ;;  %v6458_v54 = vsub.s32 5, %v7493_v3 }
 0x237   : > { %6895 = vmatprep.subr.msk.bf16.mxu1 %vm345_vm1, %v5770_v55  ;;  %6894 = vmatmul.mubr.msk.bf16.vlgmr.msra.gmra.mrb[4].mxu0 %vm341_vm2, %v6888_v42 }
 0x238   : > { %v5973_v57 = vpop.permute.xlu0 %5972  ;;  %5922 = vmatpush1.bf16.msra.mxu1 %v5793_v56  ;;  %6058 = vmatprep.mubr.bf16.mxu0 %v7420_v12 }
 0x239   : > { %v5975_v58 = vpop.permute.xlu1 %5974 }
 0x23a   : > { %v5991_v19 = vsel %vm5990_vm12, %v5973_v57, %v5975_v58 }
 0x23b   : > { %6896 = vmatmul.mubr.msk.bf16.vlgmr.msra.gmra.mrb[4].mxu1 %vm341_vm2, %v6888_v42  ;;  %v6003_v63 = vsel %vm345_vm1, %v5991_v19, 0 }
 0x23c   : > { %v5977_v60 = vpop.permute.xlu0 %5976  ;;  %6099 = vmatprep.mubr.bf16.mxu1 %v7420_v12 }
 0x23d   : > { %v5992_v61 = vsel %vm5990_vm12, %v5975_v58, %v5977_v60  ;;  %v5979_v62 = vpop.permute.xlu1 %5978 }
 0x23e   : > { %6898 = vmatprep.subr.msk.bf16.mxu0 %vm345_vm1, %v5992_v61  ;;  %v5993_v0 = vsel %vm5990_vm12, %v5977_v60, %v5979_v62 }
 0x23f   : > { %6027 = vmatpush1.bf16.msra.mxu0 %v6003_v63  ;;  %v6009_v5 = vsel %vm345_vm1, %v5993_v0, 0  ;;  %v6462_v63 = vsub.s32 6, %v7493_v3 }
 0x240   : > { %v5981_v2 = vpop.permute.xlu0 %5980 }
 0x241   : > { %v5994_v4 = vsel %vm5990_vm12, %v5979_v62, %v5981_v2  ;;  %v5983_v15 = vpop.permute.xlu1 %5982  ;;  %v6455_v62 = vrot.slane %v6434_v40, %v6454_v50 }
 0x242   : > { %6900 = vmatprep.subr.msk.bf16.mxu1 %vm345_vm1, %v5994_v4  ;;  %6899 = vmatmul.mubr.msk.bf16.vlgmr.msra.gmra.mrb[0].mxu0 %vm341_vm2, %v6897_v1  ;;  %v5995_v6 = vsel %vm5990_vm12, %v5981_v2, %v5983_v15  ;;  %v6459_v4 = vrot.slane %v6434_v40, %v6458_v54 }
 0x243   : > { %6068 = vmatpush1.bf16.msra.mxu1 %v6009_v5  ;;  %6140 = vmatprep.mubr.bf16.mxu0 %v7420_v12  ;;  %v6015_v10 = vsel %vm345_vm1, %v5995_v6, 0 }
 0x244   : > { %v5985_v7 = vpop.permute.xlu0 %5984 }
 0x245   : > { %v5996_v11 = vsel %vm5990_vm12, %v5983_v15, %v5985_v7  ;;  %v5987_v17 = vpop.permute.xlu1 %5986  ;;  %v6466_v15 = vsub.s32 7, %v7493_v3 }
 0x246   : > { %6902 = vmatprep.subr.msk.bf16.mxu0 %vm345_vm1, %v5996_v11  ;;  %6901 = vmatmul.mubr.msk.bf16.vlgmr.msra.gmra.mrb[0].mxu1 %vm341_vm2, %v6897_v1  ;;  %v5997_v9 = vsel %vm5990_vm12, %v5985_v7, %v5987_v17 }
 0x247   : > { %6109 = vmatpush1.bf16.msra.mxu0 %v6015_v10  ;;  %6181 = vmatprep.mubr.bf16.mxu1 %v7420_v12  ;;  %v6021_v22 = vsel %vm345_vm1, %v5997_v9, 0 }
 0x248   : > { %v5989_v13 = vpop.permute.xlu0 %5988 }
 0x249   : > { %v5998_v14 = vsel %vm5990_vm12, %v5987_v17, %v5989_v13  ;;  %v6201_v20 = vpop.permute.xlu1 %6200 }
 0x24a   : > { %6904 = vmatprep.subr.msk.bf16.mxu1 %vm345_vm1, %v5998_v14  ;;  %6903 = vmatmul.mubr.msk.bf16.vlgmr.msra.gmra.mrb[4].mxu0 %vm341_vm2, %v6897_v1 }
 0x24b   : > { %6150 = vmatpush1.bf16.msra.mxu1 %v6021_v22  ;;  %6286 = vmatprep.mubr.bf16.mxu0 %v7420_v12 }
 0x24c   : > { %v6203_v16 = vpop.permute.xlu0 %6202 }
 0x24d   : > { %v6219_v18 = vsel %vm6218_vm13, %v6201_v20, %v6203_v16  ;;  %v6205_v23 = vpop.permute.xlu1 %6204  ;;  %v6463_v20 = vrot.slane %v6434_v40, %v6462_v63 }
 0x24e   : > { %v6220_v24 = vsel %vm6218_vm13, %v6203_v16, %v6205_v23  ;;  %6905 = vmatmul.mubr.msk.bf16.vlgmr.msra.gmra.mrb[4].mxu1 %vm341_vm2, %v6897_v1  ;;  %v6231_v25 = vsel %vm345_vm1, %v6219_v18, 0  ;;  %v6467_v18 = vrot.slane %v6434_v40, %v6466_v15 }
 0x24f   : > { %6907 = vmatprep.subr.msk.bf16.mxu0 %vm345_vm1, %v6220_v24  ;;  %6327 = vmatprep.mubr.bf16.mxu1 %v7420_v12 }
 0x250   : > { %v6207_v26 = vpop.permute.xlu0 %6206  ;;  %6255 = vmatpush1.bf16.msra.mxu0 %v6231_v25 }
 0x251   : > { %v6221_v27 = vsel %vm6218_vm13, %v6205_v23, %v6207_v26  ;;  %v6209_v28 = vpop.permute.xlu1 %6208 }
 0x252   : > { %v6222_v59 = vsel %vm6218_vm13, %v6207_v26, %v6209_v28  ;;  %v6237_v29 = vsel %vm345_vm1, %v6221_v27, 0 }
 0x253   : > { %6908 = vmatmul.mubr.msk.bf16.vlgmr.msra.gmra.mrb[0].mxu0 %vm341_vm2, %v6906_v21  ;;  %6909 = vmatprep.subr.msk.bf16.mxu1 %vm345_vm1, %v6222_v59 }
 0x254   : > { %v6211_v30 = vpop.permute.xlu0 %6210  ;;  %6296 = vmatpush1.bf16.msra.mxu1 %v6237_v29  ;;  %6368 = vmatprep.mubr.bf16.mxu0 %v7420_v12 }
 0x255   : > { %v6223_v8 = vsel %vm6218_vm13, %v6209_v28, %v6211_v30  ;;  %v6213_v31 = vpop.permute.xlu1 %6212 }
 0x256   : > { %v6224_v32 = vsel %vm6218_vm13, %v6211_v30, %v6213_v31  ;;  %v6243_v33 = vsel %vm345_vm1, %v6223_v8, 0 }
 0x257   : > { %6910 = vmatmul.mubr.msk.bf16.vlgmr.msra.gmra.mrb[0].mxu1 %vm341_vm2, %v6906_v21  ;;  %6911 = vmatprep.subr.msk.bf16.mxu0 %vm345_vm1, %v6224_v32 }
 0x258   : > { %v6215_v34 = vpop.permute.xlu0 %6214  ;;  %6337 = vmatpush1.bf16.msra.mxu0 %v6243_v33  ;;  %6409 = vmatprep.mubr.bf16.mxu1 %v7420_v12  ;;  %v6438_v12 = vsub.s32 0, %v7493_v3 }
 0x259   : > { %v6225_v35 = vsel %vm6218_vm13, %v6213_v31, %v6215_v34  ;;  %v6217_v36 = vpop.permute.xlu1 %6216 }
 0x25a   : > { %v6226_v37 = vsel %vm6218_vm13, %v6215_v34, %v6217_v36  ;;  %v6249_v38 = vsel %vm345_vm1, %v6225_v35, 0  ;;  %v6439_v42 = vrot.slane %v6434_v40, %v6438_v12  ;;  %v6497_v40 = vld [vmem:[#allocation3] sm:$0xff] }
 0x25b   : > { %6912 = vmatmul.mubr.msk.bf16.vlgmr.msra.gmra.mrb[4].mxu0 %vm341_vm2, %v6906_v21  ;;  %6913 = vmatprep.subr.msk.bf16.mxu1 %vm345_vm1, %v6226_v37  ;;  %vm6534_vm1 = vcmask 15368  }
 0x25c   : > { %6378 = vmatpush1.bf16.msra.mxu1 %v6249_v38 }
 0x25f   : > { %6914 = vmatmul.mubr.msk.bf16.vlgmr.msra.gmra.mrb[4].mxu1 %vm341_vm2, %v6906_v21 }
 0x326   : > { %v6288_v46 = vpop.f32.mrb[0].mxu0 }
 0x327   : > { %6426 = vst [vmem:[%s8684_s20] sm:$0xff] %v6288_v46  ;;  %v6476_v47 = vmul.f32 %v6439_v42, %v6288_v46  ;;  %v6290_v48 = vpop.f32.mrb[1].mxu0 }
 0x328   : > { %6427 = vst [vmem:[%s8684_s20 + $0x8] sm:$0xff] %v6290_v48  ;;  %v6477_v51 = vmul.f32 %v6443_v44, %v6290_v48  ;;  %v6292_v52 = vpop.f32.mrb[2].mxu0 }
 0x329   : > { %v6498_v55 = vmul.f32 %v6476_v47, %v6288_v46  ;;  %v6293_v56 = vpop.f32.mrb[3].mxu0 }
 0x32a   : > { %v6485_v57 = vadd.f32 %v6477_v51, %v6476_v47  ;;  %v6499_v58 = vmul.f32 %v6477_v51, %v6290_v48  ;;  %v6329_v19 = vpop.f32.mrb[0].mxu1 }
 0x32b   : > { %6428 = vst [vmem:[%s8684_s20 + $0x10] sm:$0xff] %v6329_v19  ;;  %v6478_v60 = vmul.f32 %v6447_v49, %v6329_v19  ;;  %v6331_v61 = vpop.f32.mrb[1].mxu1 }
 0x32c   : > { %v6506_v0 = vadd.f32 %v6499_v58, %v6498_v55  ;;  %6429 = vst [vmem:[%s8684_s20 + $0x18] sm:$0xff] %v6331_v61  ;;  %v6479_v1 = vmul.f32 %v6451_v53, %v6331_v61  ;;  %v6333_v2 = vpop.f32.mrb[2].mxu1 }
 0x32d   : > { %v6486_v5 = vadd.f32 %v6485_v57, %v6478_v60  ;;  %v6500_v6 = vmul.f32 %v6478_v60, %v6329_v19  ;;  %v6334_v7 = vpop.f32.mrb[3].mxu1 }
 0x32e   : > { %v6501_v11 = vmul.f32 %v6479_v1, %v6331_v61  ;;  %v6370_v17 = vpop.f32.mrb[4].mxu0 }
 0x32f   : > { %v6507_v10 = vadd.f32 %v6506_v0, %v6500_v6  ;;  %v6487_v9 = vadd.f32 %v6486_v5, %v6479_v1  ;;  %6430 = vst [vmem:[%s8684_s20 + $0x20] sm:$0xff] %v6370_v17  ;;  %v6480_v13 = vmul.f32 %v6455_v62, %v6370_v17  ;;  %v6372_v14 = vpop.f32.mrb[5].mxu0 }
 0x330   : > { %6431 = vst [vmem:[%s8684_s20 + $0x28] sm:$0xff] %v6372_v14  ;;  %v6481_v22 = vmul.f32 %v6459_v4, %v6372_v14  ;;  %v6374_v16 = vpop.f32.mrb[6].mxu0 }
 0x331   : > { %v6508_v23 = vadd.f32 %v6507_v10, %v6501_v11  ;;  %v6488_v24 = vadd.f32 %v6487_v9, %v6480_v13  ;;  %v6502_v3 = vmul.f32 %v6480_v13, %v6370_v17  ;;  %v6375_v25 = vpop.f32.mrb[7].mxu0 }
 0x332   : > { %v6503_v26 = vmul.f32 %v6481_v22, %v6372_v14  ;;  %v6411_v21 = vpop.f32.mrb[4].mxu1 }
 0x333   : > { %v6509_v27 = vadd.f32 %v6508_v23, %v6502_v3  ;;  %v6489_v28 = vadd.f32 %v6488_v24, %v6481_v22  ;;  %6432 = vst [vmem:[%s8684_s20 + $0x30] sm:$0xff] %v6411_v21  ;;  %v6482_v59 = vmul.f32 %v6463_v20, %v6411_v21  ;;  %v6413_v29 = vpop.f32.mrb[5].mxu1 }
 0x334   : > { %6433 = vst [vmem:[%s8684_s20 + $0x38] sm:$0xff] %v6413_v29  ;;  %v6483_v30 = vmul.f32 %v6467_v18, %v6413_v29  ;;  %v6415_v8 = vpop.f32.mrb[6].mxu1 }
 0x335   : > { %v6510_v31 = vadd.f32 %v6509_v27, %v6503_v26  ;;  %v6490_v32 = vadd.f32 %v6489_v28, %v6482_v59  ;;  %v6504_v33 = vmul.f32 %v6482_v59, %v6411_v21  ;;  %v6416_v34 = vpop.f32.mrb[7].mxu1 }
 0x336   : > { %v6505_v35 = vmul.f32 %v6483_v30, %v6413_v29 }
 0x337   : > { %v6511_v36 = vadd.f32 %v6510_v31, %v6504_v33  ;;  %v6491_v37 = vadd.f32 %v6490_v32, %v6483_v30 }
 0x339   : > { %6492 = vadd.xlane.f32.xlu0 %v6491_v37  ;;  %v6512_v38 = vadd.f32 %v6511_v36, %v6505_v35 }
 0x33b   : > { %6513 = vadd.xlane.f32.xlu1 %v6512_v38 }
 0x3c6   : > { %v6493_v12 = vpop.xlane.xlu0 %6492 }
 0x3c7   : > { %v6494_v41 = vadd.f32 %v6493_v12, %v6484_v39 }
 0x3c8   : > { %v6514_v42 = vpop.xlane.xlu1 %6513 }
 0x3c9   : > { %6496 = vst.msk [vmem:[#allocation2] sm:$0xff] %vm256_vm14, %v6494_v41  ;;  %v6515_v43 = vadd.f32 %v6514_v42, %v6497_v40 }
 0x3cb   : > { %6516 = vst.msk [vmem:[#allocation3] sm:$0xff] %vm256_vm14, %v6515_v43 }
 0x3d0   : > { %v6520_v44 = vld [vmem:[#allocation2] sm:$0xff] }
 0x3d1   : > { %v6521_v45 = vmul.f32 0.001953125, %v6520_v44 }
 0x3d2   : > { %v6522_v46 = vld [vmem:[#allocation3] sm:$0xff] }
 0x3d3   : > { %v6524_v47 = vmul.f32 %v6521_v45, %v6521_v45  ;;  %v6523_v48 = vmul.f32 0.001953125, %v6522_v46  ;;  %6527 = vst.msk [vmem:[%s250_s25] sm:$0xff] %vm256_vm14, %v6521_v45 }
 0x3d5   : > { %v6525_v49 = vsub.f32 %v6523_v48, %v6524_v47 }
 0x3d7   : > { %v6526_v50 = vmax.f32 %v6525_v49, 0.0 }
 0x3d9   : > { %v6528_v51 = vadd.f32 1e-05, %v6526_v50 }
 0x3db   : > { %7391 = vrsqrt.f32 %v6528_v51 }
 0x3e5   : > { %v7392_v52 = vpop.eup %7391 }
 0x3e6   : > { %6531 = vrot.lane.b32.xlu0 %v7392_v52, %s7447_s26 }
 0x458   : > { %v6532_v53 = vpop.permute.xlu0 %6531 }
 0x459   : > { %6535 = vst.msk [vmem:[%s250_s25] sm:$0xff] %vm6534_vm1, %v6532_v53 }
 0x45a PF: > { %s15_s17 = sadd.s32 1, %s7416_s17   ;;  %s8720_s15 = smov %s7412_s16 }
 0x45b   : > { %p12_p5 = scmp.ge.s32.totalorder %s15_s17, 4   ;;  %s8721_s16 = smov %s8723_s18 }
 0x45d   :  { %14 = sbr.rel (!%p12_p5) target bundleno = 2 (0x2), region = 112 }

</bundles_post_ra>
